<compile_context>
chip_gen: v7x
topology: tpu7x:2x2x1
jax: 0.10.0
libtpu: 0.0.40
codegen_flags: <defaults>
</compile_context>

<pallas_src>
import functools

import numpy as np
import jax
import jax.numpy as jnp
from jax import lax
from jax.experimental import pallas as pl
from jax.experimental.pallas import tpu as pltpu

# (multiplicity, l, parity) -> "16x0e + 16x0o + 32x1e", total dim = 16 + 16 + 96 = 128
IRREPS = [(16, 0, 1), (16, 0, -1), (32, 1, 1)]
EPS = 1e-5


def irreps_dim(irreps):
    return sum(mul * (2 * l + 1) for mul, l, _ in irreps)


# ------------------------- host-side folding of the irreps structure -------------------------
def build_folded_params(irreps, affine_weight, affine_bias):
    """Folds the static per-section normalization into dense operands.

    Returns:
      cmask   (n0, D) f32: one binary row per scalar-even (0e) section (dummy zero row if none)
      A       (D, D)  f32: per-section mean-of-squares broadcast matrix ('component' norm)
      w_feat  (1, D)  f32: per-feature affine weight (per-channel weight repeated over 2l+1)
      b_feat  (1, D)  f32: per-feature affine bias (nonzero only on 0e features)
      scalar_muls: tuple of the `mul` of each 0e section (static, for the in-kernel centering)
    """
    D = irreps_dim(irreps)
    A = np.zeros((D, D), dtype=np.float64)
    w_feat = np.zeros((D,), dtype=np.float64)
    b_feat = np.zeros((D,), dtype=np.float64)
    masks = []
    scalar_muls = []

    affine_weight = np.asarray(affine_weight, dtype=np.float64)
    affine_bias = np.asarray(affine_bias, dtype=np.float64)

    ix = iw = ib = 0
    for mul, l, p in irreps:
        d = 2 * l + 1
        n = mul * d
        sl = slice(ix, ix + n)
        if l == 0 and p == 1:
            m = np.zeros((D,), dtype=np.float64)
            m[sl] = 1.0
            masks.append(m)
            scalar_muls.append(mul)
        # 'component' normalization: mean of squares over the whole (mul, d) section,
        # broadcast back to every feature of the section.
        # TODO(synk): normalization='norm' would set A[sl, sl] = 1.0/mul (sum over the 2l+1
        # components instead of mean); only this host-built matrix changes.
        A[sl, sl] = 1.0 / n
        # per-feature affine weight: one weight per channel, repeated over the 2l+1 components
        w_feat[ix:ix + n] = np.repeat(affine_weight[iw:iw + mul], d)
        iw += mul
        if d == 1 and p == 1:
            # bias only on scalar-even channels
            b_feat[ix:ix + n] = affine_bias[ib:ib + mul]
            ib += mul
        ix += n
    assert ix == D  # trace-time equivalent of the module's runtime AssertionError

    cmask = np.stack(masks, 0) if masks else np.zeros((1, D), dtype=np.float64)
    return (jnp.asarray(cmask, jnp.float32),
            jnp.asarray(A, jnp.float32),
            jnp.asarray(w_feat.reshape(1, D), jnp.float32),
            jnp.asarray(b_feat.reshape(1, D), jnp.float32),
            tuple(scalar_muls))


# ---------------------------------------- Pallas kernel ----------------------------------------
def eqv_layernorm_kernel(x_ref, cmask_ref, a_ref, w_ref, b_ref, o_ref, *, eps, scalar_muls):
    # x_ref: (tn, D); cmask_ref: (n0, D); a_ref: (D, D); w_ref/b_ref: (1, D); o_ref: (tn, D)
    x = x_ref[...].astype(jnp.float32)

    # Center the scalar-even (0e) sections only: masked lane reduce + broadcast subtract.
    # Runs on XLU/VPU slots instead of burning a second near-identity MXU matmul.
    y = x
    for j, mul in enumerate(scalar_muls):          # static unroll (typically one section)
        m = cmask_ref[j:j + 1, :]                  # (1, D) binary mask of section j
        mean_j = jnp.sum(x * m, axis=-1, keepdims=True) * (1.0 / mul)   # (tn, 1)
        y = y - mean_j * m

    # Per-section mean of squares, broadcast back to every feature of the section.
    # Precision pinned so an ambient default-precision change can't degrade the variance;
    # (on v5e, if the MXU slot ever co-binds with DMA, a 3-pass choice also meets 1e-4).
    var = jnp.dot(y * y, a_ref[...],
                  preferred_element_type=jnp.float32,
                  precision=lax.Precision.HIGHEST)
    inv = lax.rsqrt(var + eps)                     # EUP
    o_ref[...] = (y * inv * w_ref[...] + b_ref[...]).astype(o_ref.dtype)


def _choose_row_tile(N, *, min_tn=256, max_tn=2048, target_steps=4):
    """~target_steps grid steps for small N (pipeline depth + megacore), capped tile for big N."""
    tn = pl.next_power_of_2(max(1, pl.cdiv(N, target_steps)))
    tn = max(min_tn, min(max_tn, tn))
    tn = min(tn, max(8, ((N + 7) // 8) * 8))       # never much larger than the input itself
    return int(tn)


def equivariant_layer_norm(x, cmask, A, w_feat, b_feat, scalar_muls, *, eps=EPS, tn=None):
    N, D = x.shape
    n0 = cmask.shape[0]
    if tn is None:
        tn = _choose_row_tile(N)
    grid = (pl.cdiv(N, tn),)                       # ragged tail handled by Pallas: partial last
                                                   # block; rows are independent so the garbage
                                                   # tail rows (possible inf/NaN under rsqrt) are
                                                   # simply never written back.

    cost = pl.CostEstimate(
        flops=2 * N * D * D + (8 + 2 * len(scalar_muls)) * N * D,
        transcendentals=N * D,                     # rsqrt
        bytes_accessed=4 * (2 * N * D + D * D + (2 + n0) * D),
    )

    return pl.pallas_call(
        functools.partial(eqv_layernorm_kernel, eps=eps, scalar_muls=scalar_muls),
        out_shape=jax.ShapeDtypeStruct((N, D), x.dtype),
        grid_spec=pltpu.PrefetchScalarGridSpec(
            num_scalar_prefetch=0,
            grid=grid,
            in_specs=[
                pl.BlockSpec((tn, D), lambda i: (i, 0)),
                # constant blocks: index never changes -> DMA'd once and kept resident.
                # (pipeline_mode=pl.Buffered(1) would drop their dead second buffer on v7x;
                #  negligible ~70 KB at these tile sizes, so omitted.)
                pl.BlockSpec((n0, D), lambda i: (0, 0)),
                pl.BlockSpec((D, D), lambda i: (0, 0)),
                pl.BlockSpec((1, D), lambda i: (0, 0)),
                pl.BlockSpec((1, D), lambda i: (0, 0)),
            ],
            out_specs=pl.BlockSpec((tn, D), lambda i: (i, 0)),
        ),
        compiler_params=pltpu.CompilerParams(
            dimension_semantics=("parallel",),     # row tiles shard across v7x TensorCores
        ),
        cost_estimate=cost,
    )(x, cmask, A, w_feat, b_feat)


# ---------------------------- pure-JAX reference (mirrors the torch code) ----------------------
def reference_forward(x, irreps, affine_weight, affine_bias, eps=EPS):
    # normalization='component', affine=True — same branches as EquivariantLayerNormV2.forward
    fields = []
    ix = iw = ib = 0
    for mul, l, p in irreps:
        d = 2 * l + 1
        field = x[..., ix:ix + mul * d].reshape(x.shape[:-1] + (mul, d))
        ix += mul * d
        if l == 0 and p == 1:
            field = field - jnp.mean(field, axis=-2, keepdims=True)
        field_norm = jnp.mean(field * field, axis=-1)            # 'component'
        field_norm = jnp.mean(field_norm, axis=-1, keepdims=True)
        field_norm = lax.rsqrt(field_norm + eps)
        w = affine_weight[iw:iw + mul]
        iw += mul
        field_norm = field_norm * w
        field = field * field_norm[..., None]
        if d == 1 and p == 1:
            b = affine_bias[ib:ib + mul]
            ib += mul
            field = field + b.reshape(mul, 1)
        fields.append(field.reshape(x.shape[:-1] + (mul * d,)))
    return jnp.concatenate(fields, axis=-1)


# --------------------------------------------- main --------------------------------------------
if __name__ == "__main__":
    key = jax.random.PRNGKey(0)
    kx, kw, kb = jax.random.split(key, 3)

    D = irreps_dim(IRREPS)                                          # 128 (lane-dense)
    num_channels = sum(m for m, _, _ in IRREPS)                     # 64
    num_scalar = sum(m for m, l, p in IRREPS if l == 0 and p == 1)  # 16

    N = 2000  # deliberately NOT a multiple of the row tile: exercises the partial-last-block path
    node_input = jax.random.normal(kx, (N, D), jnp.float32)

    # module initializes weight=1 / bias=0; use perturbed values so the affine path is exercised
    affine_weight = 1.0 + 0.1 * jax.random.normal(kw, (num_channels,), jnp.float32)
    affine_bias = 0.1 * jax.random.normal(kb, (num_scalar,), jnp.float32)

    cmask, A, w_feat, b_feat, scalar_muls = build_folded_params(
        IRREPS, np.asarray(affine_weight), np.asarray(affine_bias))

    out = equivariant_layer_norm(node_input, cmask, A, w_feat, b_feat, scalar_muls, eps=EPS)
    out = jax.block_until_ready(out)

    ref = reference_forward(node_input, IRREPS, affine_weight, affine_bias, eps=EPS)
    assert out.shape == (N, D)
    np.testing.assert_allclose(np.asarray(out), np.asarray(ref), rtol=1e-4, atol=1e-4)

    print("KERNEL_OK")
</pallas_src>

<mosaic_0001>
module attributes {stable_mosaic.version = 11 : i64} {
  func.func @eqv_layernorm_kernel(%arg0: i32, %arg1: memref<512x128xf32, #tpu.memory_space<vmem>>, %arg2: memref<1x128xf32, #tpu.memory_space<vmem>>, %arg3: memref<128x128xf32, #tpu.memory_space<vmem>>, %arg4: memref<1x128xf32, #tpu.memory_space<vmem>>, %arg5: memref<1x128xf32, #tpu.memory_space<vmem>>, %arg6: memref<512x128xf32, #tpu.memory_space<vmem>>) attributes {dimension_semantics = [#tpu.dimension_semantics<parallel>], iteration_bounds = array<i64: 4>, scalar_prefetch = 0 : i64, scratch_operands = 0 : i64, tpu.core_type = #tpu.core_type<tc>, window_params = [{transform_indices = @transform_0, window_bounds = array<i64: 512, 128>}, {pipeline_mode = #tpu.pipeline_mode<synchronous>, transform_indices = @transform_1, window_bounds = array<i64: 1, 128>}, {pipeline_mode = #tpu.pipeline_mode<synchronous>, transform_indices = @transform_2, window_bounds = array<i64: 128, 128>}, {pipeline_mode = #tpu.pipeline_mode<synchronous>, transform_indices = @transform_3, window_bounds = array<i64: 1, 128>}, {pipeline_mode = #tpu.pipeline_mode<synchronous>, transform_indices = @transform_4, window_bounds = array<i64: 1, 128>}, {transform_indices = @transform_5, window_bounds = array<i64: 512, 128>}]} {
    %c0 = arith.constant 0 : index
    %c0_0 = arith.constant 0 : index
    %0 = vector.load %arg1[%c0, %c0_0] : memref<512x128xf32, #tpu.memory_space<vmem>>, vector<512x128xf32>
    %c0_1 = arith.constant 0 : index
    %c0_2 = arith.constant 0 : index
    %1 = vector.load %arg2[%c0_1, %c0_2] : memref<1x128xf32, #tpu.memory_space<vmem>>, vector<1x128xf32>
    %2 = vector.broadcast %1 : vector<1x128xf32> to vector<512x128xf32>
    %3 = arith.mulf %0, %2 : vector<512x128xf32>
    %cst = arith.constant dense<0.000000e+00> : vector<512xf32>
    %4 = vector.multi_reduction <add>, %3, %cst [1] : vector<512x128xf32> to vector<512xf32>
    %5 = vector.shape_cast %4 : vector<512xf32> to vector<512x1xf32>
    %cst_3 = arith.constant 6.250000e-02 : f32
    %6 = vector.broadcast %cst_3 : f32 to vector<512x1xf32>
    %7 = arith.mulf %5, %6 : vector<512x1xf32>
    %8 = vector.broadcast %7 : vector<512x1xf32> to vector<512x128xf32>
    %9 = vector.broadcast %1 : vector<1x128xf32> to vector<512x128xf32>
    %10 = arith.mulf %8, %9 : vector<512x128xf32>
    %11 = arith.subf %0, %10 : vector<512x128xf32>
    %12 = arith.mulf %11, %11 : vector<512x128xf32>
    %c0_4 = arith.constant 0 : index
    %c0_5 = arith.constant 0 : index
    %13 = vector.load %arg3[%c0_4, %c0_5] : memref<128x128xf32, #tpu.memory_space<vmem>>, vector<128x128xf32>
    %cst_6 = arith.constant dense<0.000000e+00> : vector<512x128xf32>
    %14 = tpu.matmul %12, %13, %cst_6 {dimension_numbers = #tpu.dot_dimension_numbers<[1], [0], [0], [1], [0, 0, 1, 1], [], []>, precision = #tpu.contract_precision<fp32>} : vector<512x128xf32>, vector<128x128xf32>, vector<512x128xf32> -> vector<512x128xf32>
    %cst_7 = arith.constant 9.99999974E-6 : f32
    %15 = vector.broadcast %cst_7 : f32 to vector<512x128xf32>
    %16 = arith.addf %14, %15 : vector<512x128xf32>
    %17 = math.rsqrt %16 : vector<512x128xf32>
    %18 = arith.mulf %11, %17 : vector<512x128xf32>
    %c0_8 = arith.constant 0 : index
    %c0_9 = arith.constant 0 : index
    %19 = vector.load %arg4[%c0_8, %c0_9] : memref<1x128xf32, #tpu.memory_space<vmem>>, vector<1x128xf32>
    %20 = vector.broadcast %19 : vector<1x128xf32> to vector<512x128xf32>
    %21 = arith.mulf %18, %20 : vector<512x128xf32>
    %c0_10 = arith.constant 0 : index
    %c0_11 = arith.constant 0 : index
    %22 = vector.load %arg5[%c0_10, %c0_11] : memref<1x128xf32, #tpu.memory_space<vmem>>, vector<1x128xf32>
    %23 = vector.broadcast %22 : vector<1x128xf32> to vector<512x128xf32>
    %24 = arith.addf %21, %23 : vector<512x128xf32>
    %c0_12 = arith.constant 0 : index
    %c0_13 = arith.constant 0 : index
    %25 = vector.load %arg6[%c0_12, %c0_13] : memref<512x128xf32, #tpu.memory_space<vmem>>, vector<512x128xf32>
    tpu.vector_store %arg6[%c0_12, %c0_13], %24 {strides = array<i32>} : memref<512x128xf32, #tpu.memory_space<vmem>>, vector<512x128xf32>,
    return
  }
  func.func @transform_0(%arg0: i32) -> (i32, i32) {
    %c0_i32 = arith.constant 0 : i32
    %c0_i32_0 = arith.constant 0 : i32
    return %arg0, %c0_i32 : i32, i32
  }
  func.func @transform_1(%arg0: i32) -> (i32, i32) {
    %c0_i32 = arith.constant 0 : i32
    %c0_i32_0 = arith.constant 0 : i32
    %c0_i32_1 = arith.constant 0 : i32
    return %c0_i32, %c0_i32_0 : i32, i32
  }
  func.func @transform_2(%arg0: i32) -> (i32, i32) {
    %c0_i32 = arith.constant 0 : i32
    %c0_i32_0 = arith.constant 0 : i32
    %c0_i32_1 = arith.constant 0 : i32
    return %c0_i32, %c0_i32_0 : i32, i32
  }
  func.func @transform_3(%arg0: i32) -> (i32, i32) {
    %c0_i32 = arith.constant 0 : i32
    %c0_i32_0 = arith.constant 0 : i32
    %c0_i32_1 = arith.constant 0 : i32
    return %c0_i32, %c0_i32_0 : i32, i32
  }
  func.func @transform_4(%arg0: i32) -> (i32, i32) {
    %c0_i32 = arith.constant 0 : i32
    %c0_i32_0 = arith.constant 0 : i32
    %c0_i32_1 = arith.constant 0 : i32
    return %c0_i32, %c0_i32_0 : i32, i32
  }
  func.func @transform_5(%arg0: i32) -> (i32, i32) {
    %c0_i32 = arith.constant 0 : i32
    %c0_i32_0 = arith.constant 0 : i32
    return %arg0, %c0_i32 : i32, i32
  }
}

</mosaic_0001>

<bundles_post_ra>
// kernel: tpu_custom_call.1
= control target key start
LH: loop header
LB: loop body
LE: loop exit
PB: predicated region body
PF: predicated region fallthrough
CT: control target
= control target key end

     0   :  { %10 = vsyncpa [#allocation3], 0  ;;  %s9150_s0 = inlined_call_operand.hbm [shape: f32[2000,128], index: 0, kind: input, shape index: {}]   ;;  %s9151_s1 = inlined_call_operand.vmem [shape: f32[1,128], index: 1, kind: input, shape index: {}]   ;;  %s9152_s2 = inlined_call_operand.hbm [shape: f32[128,128], index: 2, kind: input, shape index: {}]   ;;  %s9153_s3 = inlined_call_operand.vmem [shape: f32[1,128], index: 3, kind: input, shape index: {}]   ;;  %s9154_s4 = inlined_call_operand.vmem [shape: f32[1,128], index: 4, kind: input, shape index: {}]   ;;  %s9155_s5 = inlined_call_operand.hbm [shape: f32[2000,128], index: 5, kind: output, shape index: {}]  }
   0x1   :  { %12 = vsyncpa [#allocation3 + $0x1], 0 }
   0x2   :  { %13 = vsyncpa [#allocation6], 0 }
   0x3   :  { %14 = vsyncpa [#allocation4], 0 }
   0x4   :  { %16 = vsyncpa [#allocation4 + $0x1], 0  ;;  %s6839_s18 = smov 0   ;;  %s6841_s19 = smov 0  }
   0x5   :  { %s6843_s20 = smov 0   ;;  %s6845_s21 = smov 0  }
   0x6 LB: > { %s6860_s22 = sadd.s32 4294967295, %s6798_s21   ;;  %s4596_s23 = sadd.s32 4294967294, %s6798_s21   ;;  %s6798_s21 = sphi %s6845_s21, %s9806_s21   ;;  %s6794_s20 = sphi %s6843_s20, %s9805_s20   ;;  %s6790_s19 = sphi %s6841_s19, %s9804_s19   ;;  %s6786_s18 = sphi %s6839_s18, %s9803_s18  }
   0x7   : > { %s6864_s24 = sadd.s32 1, %s6798_s21   ;;  %s29_s25 = sadd.s32 1, %s6794_s20 }
   0x8   : > { %s26_s26 = ssub.s32 %s6798_s21, %s6864_s24  ;;  %p36_p0 = scmp.ne.s32.totalorder %s6794_s20, %s6790_s19 }
   0x9   : > { %p27_p1 = scmp.eq.s32.totalorder %s26_s26, 0  ;;  %p37_p2 = scmp.eq.s32.totalorder %s6798_s21, 0 }
   0xa   : > { %p42_p3 = scmp.ne.s32.totalorder %s6790_s19, %s6786_s18  ;;  %p9156_p4 = scmp.eq.s32.totalorder %s6860_s22, 0 }
   0xb   : > { %s6876_s27 = scalar_select %p27_p1, %s6794_s20, %s29_s25  }
   0xc   : > { %p6878_p5 = por %p37_p2, %p36_p0  ;;  %p6884_p6 = por %p9156_p4, %p42_p3 }
   0xd   : > { %p150_p7 = scmp.eq.s32.totalorder %s6860_s22, 3  ;;  %p156_p8 = scmp.eq.s32.totalorder %s4596_s23, 3 }
   0xe   : > { %s9399_s28 = scalar_select %p6878_p5, 1, 0 }
   0xf   : > { %s9400_s29 = scalar_select %p6884_p6, 1, 0 }
  0x10   : > { %p4597_p9 = scmp.ge.s32.totalorder %s6798_s21, 1  ;;  %p163_p10 = scmp.lt.s32.totalorder %s6798_s21, 5 }
  0x11   : > { %p6891_p11 = por %p150_p7, %p36_p0  ;;  %p6895_p12 = por %p156_p8, %p42_p3 }
  0x12   : > { %p6899_p13 = pnand %p4597_p9, %p163_p10  ;;  %s6800_s8 = smov [#allocation5]  }
  0x13   : > { %s9401_s30 = scalar_select %p6891_p11, 1, 0 }
  0x14   : > { %s9402_s6 = scalar_select %p6895_p12, 1, 0 }
  0x15   : > { %s9403_s7 = scalar_select %p6899_p13, 1, 0 }
  0x16   : > { %p6455_p1 = pneg %p6899_p13  ;;  %s178_s9 = sshll.u32 %s6800_s8, 4  ;;  %s179_s9 = int_to_ptr.vmem [resolvable:$true] %s178_s9 }
  0x17   : > { %s6672_s13 = scalar_lea.hbm %s9152_s2, 2048 }
  0x18   : > { %p6907_p2 = pnand %p6455_p1, %p9156_p4  ;;  %p6673_p0 = scmp.ne.s32.totalorder %s9152_s2, %s6672_s13 }
  0x19   : > { %p6679_p9 = scmp.lt.u32.totalorder %s6672_s13, %s9152_s2 }
  0x1a   : > { %p6674_p3 = pneg %p6907_p2 }
  0x1c   : > { %p6675_p7 = pnand %p6674_p3, %p6673_p0 }
  0x1e   : > { %p6676_p8 = pneg %p6675_p7 }
  0x20   : > { %p6681_p10 = pnand %p6679_p9, %p6676_p8 }
  0x22   : > { %6684 = shalt.err (!%p6681_p10)
}
  0x23   : > { %s6685_s23 = scalar_lea.vmem %s179_s9, 2048  ;;  %p6693_p11 = scmp.lt.s32.totalorder %s179_s9, %s179_s9 }
  0x24   : > { %p6686_p1 = scmp.ne.s32.totalorder %s179_s9, %s6685_s23  ;;  %p6694_p6 = scmp.lt.s32.totalorder %s6685_s23, %s6685_s23 }
  0x26   : > { %p6688_p4 = pnand %p6686_p1, %p6674_p3  ;;  %p6695_p13 = por %p6694_p6, %p6693_p11 }
  0x28   : > { %p6689_p12 = pneg %p6688_p4 }
  0x2a   : > { %p6696_p5 = pnand %p6695_p13, %p6689_p12 }
  0x2c   : > { %6699 = shalt.err (!%p6696_p5)
}
  0x2d   : > { %s6801_s25 = smov 128   ;;  %s6802_s26 = smov 8  }
  0x2e   : > { %6458 = dma.hbm_to_vmem [thread:$0]  (!%p6907_p2), %s9152_s2, 2048, %s179_s9, [#allocation6], %s6801_s25, %s6801_s25, %s6802_s26  }
  0x2f   : > { %p4599_p0 = scmp.ge.s32.totalorder %s6798_s21, 4 }
  0x30   : > { %p9405_p7 = scmp.ne.s32.totalorder (!%p4599_p0), %s9399_s28, 0 }
  0x31   : > { %194 = sbr.rel (%p4599_p0) target bundleno = 91 (0x5b), region = 32 }
  0x38   : > { %197 = sbr.rel (!%p9405_p7) target bundleno = 91 (0x5b), region = 36  ;;  %s198_s12 = sand.u32 (%p9405_p7), 1, %s6794_s20  }
  0x39   : > { %s4601_s13 = sshll.u32 (%p9405_p7), %s6798_s21, 6  ;;  %s4600_s14 = sshll.u32 (%p9405_p7), %s198_s12, 9 }
  0x3a   : > { %s204_s15 = ssub.s32 (%p9405_p7), 250, %s4601_s13  ;;  %s6935_s17 = scalar_lea.sflag (%p9405_p7), [#allocation3], %s198_s12 }
  0x3b   : > { %p205_p4 = scmp.lt.s32.totalorder (%p9405_p7), %s204_s15, 64  ;;  %s202_s9 = scalar_lea.vmem (%p9405_p7), [#allocation2], %s4600_s14 }
  0x3f   : > { %s9808_s15 = smov (!%p205_p4, %s204_s15), 64 }
  0x40   : > { %s6932_s16 = sshll.u32 %s9808_s15, 7 }
  0x41   : > { %s209_s10 = ssub.s32 8192, %s6932_s16 }
  0x42   : > { %210 = vsyncadd %s6935_s17, %s209_s10  ;;  %p4603_p5 = scmp.ne.s32.totalorder %s6932_s16, 0  ;;  %s4623_s28 = sshll.u32 %s6798_s21, 13 }
  0x43   : > { %s6943_s26 = scalar_lea.hbm %s9150_s0, %s4623_s28  ;;  %s215_s8 = sshll.u32 %s202_s9, 4  ;;  %s6945_s8 = int_to_ptr.vmem [resolvable:$true] %s215_s8 }
  0x44   : > { %s6700_s11 = scalar_lea.hbm %s6943_s26, %s6932_s16  ;;  %s6704_s14 = scalar_lea.hbm %s9150_s0, 32000 }
  0x45   : > { %p6701_p6 = scmp.ne.s32.totalorder %s6943_s26, %s6700_s11  ;;  %p6705_p13 = scmp.lt.u32.totalorder %s6943_s26, %s9150_s0 }
  0x46   : > { %p6706_p2 = scmp.lt.u32.totalorder %s6704_s14, %s6700_s11  ;;  %p6708_p8 = scmp.lt.u32.totalorder %s6700_s11, %s6943_s26 }
  0x47   : > { %p6702_p11 = pnand %p6701_p6, %p4603_p5 }
  0x48   : > { %p6707_p3 = por %p6706_p2, %p6705_p13 }
  0x49   : > { %p6703_p12 = pneg %p6702_p11 }
  0x4a   : > { %p6709_p9 = por %p6708_p8, %p6707_p3 }
  0x4c   : > { %p6710_p10 = pnand %p6709_p9, %p6703_p12 }
  0x4e   : > { %6713 = shalt.err (!%p6710_p10)
}
  0x4f   : > { %s6714_s9 = scalar_lea.vmem %s6945_s8, %s6932_s16  ;;  %s6803_s28 = smov [#allocation2]  }
  0x50   : > { %p6715_p1 = scmp.ne.s32.totalorder %s6945_s8, %s6714_s9  ;;  %s6718_s23 = sshll.u32 %s6803_s28, 4  ;;  %s6719_s23 = int_to_ptr.vmem [resolvable:$false] %s6718_s23 }
  0x51   : > { %s6720_s25 = scalar_lea.vmem %s6719_s23, 16384  ;;  %p6721_p4 = scmp.lt.s32.totalorder %s6945_s8, %s6719_s23 }
  0x52   : > { %p6716_p0 = pnand %p6715_p1, %p4603_p5  ;;  %p6722_p6 = scmp.lt.s32.totalorder %s6720_s25, %s6714_s9 }
  0x54   : > { %p6717_p7 = pneg %p6716_p0  ;;  %p6723_p11 = por %p6722_p6, %p6721_p4 }
  0x56   : > { %p6724_p13 = pnand %p6723_p11, %p6717_p7 }
  0x58   : > { %6727 = shalt.err (!%p6724_p13)
}
  0x59   : > { %s6804_s11 = smov 128   ;;  %s6805_s12 = smov 8  }
  0x5a   : > { %221 = dma.hbm_to_vmem [thread:$0]  (%p4603_p5), %s6943_s26, %s6932_s16, %s6945_s8, %s6935_s17, %s6804_s11, %s6804_s11, %s6805_s12  }
  0x5b PF: > { %p9406_p12 = scmp.ne.s32.totalorder %s9403_s7, 0 }
  0x5d   : > { %227 = sbr.rel (%p9406_p12) target bundleno = 938 (0x3aa), region = 40 }
  0x64   : > { %s6975_s13 = sand.u32 1, %s6790_s19   ;;  %p9407_p2 = scmp.ne.s32.totalorder %s9400_s29, 0 }
  0x65   : > { %s4608_s14 = sshll.u32 %s6975_s13, 9  ;;  %s230_s15 = scalar_lea.sflag [#allocation3], %s6975_s13 }
  0x66   : > { %s6981_s10 = scalar_lea.vmem [#allocation2], %s4608_s14 }
  0x67   : > { %6773 = dma.done.wait (%p9407_p2), %s230_s15, 8192  }
  0x68   : > { %6775 = vsyncadd (%p9407_p2), %s230_s15, 4294959104  ;;  %p9408_p5 = scmp.eq.s32.totalorder %s6860_s22, 0 }
  0x6a   : > { %6777 = dma.done.wait (%p9408_p5), [#allocation6], 2048   ;;  %p9409_p3 = pmov %p9408_p5 }
  0x6b   : > { %v6992_v0 = vld [vmem:[%s6981_s10 + $0x10] sm:$0xff]  ;;  %v6997_v1 = vld [vmem:[%s9151_s1] ss:$0 sm:$0xff]  ;;  %v7007_v5 = vld [vmem:[%s6981_s10 + $0x18] sm:$0xff]  ;;  %s8828_s11 = scalar_lea.vmem [#allocation7], %s4608_s14  ;;  %s4494_s7 = scalar_lea.sflag [#allocation4], %s6975_s13 }
  0x6c   : > { %6779 = vsyncadd (%p9409_p3), [#allocation6], 4294965248  ;;  %v7000_v2 = vld [vmem:[%s6981_s10] sm:$0xff]  ;;  %v347_v3 = vmul.f32 %v6997_v1, %v6992_v0  ;;  %v7010_v6 = vld [vmem:[%s6981_s10 + $0x8] sm:$0xff]  ;;  %v348_v7 = vmul.f32 %v6997_v1, %v7007_v5  ;;  %p9801_p8 = scmp.ne.s32.totalorder %s9401_s30, 0 }
  0x6d   : > { %v345_v4 = vmul.f32 %v6997_v1, %v7000_v2  ;;  %v346_v8 = vmul.f32 %v6997_v1, %v7010_v6  ;;  %v7017_v9 = vld [vmem:[%s6981_s10 + $0x28] sm:$0xff]  ;;  %v7020_v10 = vld [vmem:[%s6981_s10 + $0x20] sm:$0xff]  ;;  %v7027_v13 = vld [vmem:[%s6981_s10 + $0x38] sm:$0xff]  ;;  %s4615_s16 = sshll.u32 (%p9801_p8), %s6860_s22, 6 }
  0x6e   : > { %413 = vadd.xlane.f32.xlu1 %v347_v3  ;;  %v350_v11 = vmul.f32 %v6997_v1, %v7017_v9  ;;  %v349_v12 = vmul.f32 %v6997_v1, %v7020_v10  ;;  %v7030_v14 = vld [vmem:[%s6981_s10 + $0x30] sm:$0xff]  ;;  %v352_v15 = vmul.f32 %v6997_v1, %v7027_v13  ;;  %v7037_v17 = vld [vmem:[%s6981_s10 + $0x48] sm:$0xff]  ;;  %v7040_v18 = vld [vmem:[%s6981_s10 + $0x40] sm:$0xff]  ;;  %s4502_s29 = ssub.s32 (%p9801_p8), 250, %s4615_s16 }
  0x6f   : > { %409 = vadd.xlane.f32.xlu0 %v345_v4  ;;  %v351_v16 = vmul.f32 %v6997_v1, %v7030_v14  ;;  %v354_v19 = vmul.f32 %v6997_v1, %v7037_v17  ;;  %v353_v20 = vmul.f32 %v6997_v1, %v7040_v18  ;;  %v7047_v21 = vld [vmem:[%s6981_s10 + $0x58] sm:$0xff]  ;;  %v7050_v22 = vld [vmem:[%s6981_s10 + $0x50] sm:$0xff]  ;;  %v7057_v25 = vld [vmem:[%s6981_s10 + $0x68] sm:$0xff]  ;;  %p4503_p9 = scmp.lt.s32.totalorder (%p9801_p8), %s4502_s29, 64 }
  0x70   : > { %v356_v23 = vmul.f32 %v6997_v1, %v7047_v21  ;;  %v355_v24 = vmul.f32 %v6997_v1, %v7050_v22  ;;  %v7060_v26 = vld [vmem:[%s6981_s10 + $0x60] sm:$0xff]  ;;  %v358_v28 = vmul.f32 %v6997_v1, %v7057_v25  ;;  %v7066_v29 = vld [vmem:[#allocation5 + $0x8] sm:$0xff]  ;;  %v7069_v31 = vld [vmem:[#allocation5 + $0x10] sm:$0xff] }
  0x71   : > { %v7062_v27 = vld [vmem:[#allocation5] sm:$0xff]  ;;  %v7071_v32 = vld [vmem:[#allocation5 + $0x18] sm:$0xff]  ;;  %v357_v33 = vmul.f32 %v6997_v1, %v7060_v26  ;;  %v813_v34 = vand.u32 4294901760, %v7066_v29  ;;  %v9170_v35 = vand.u32 4294901760, %v7069_v31  ;;  %v7080_v38 = vld [vmem:[#allocation5 + $0x28] sm:$0xff] }
  0x72   : > { %415 = vadd.xlane.f32.xlu1 %v348_v7  ;;  %v810_v30 = vand.u32 4294901760, %v7062_v27  ;;  %v9169_v36 = vand.u32 4294901760, %v7071_v32  ;;  %v7078_v37 = vld [vmem:[#allocation5 + $0x20] sm:$0xff]  ;;  %v7083_v39 = vld [vmem:[%s6981_s10 + $0x78] sm:$0xff]  ;;  %v7086_v40 = vld [vmem:[%s6981_s10 + $0x70] sm:$0xff]  ;;  %v9165_v44 = vand.u32 4294901760, %v7080_v38 }
  0x73   : > { %411 = vadd.xlane.f32.xlu0 %v346_v8  ;;  %v9168_v43 = vand.u32 4294901760, %v7078_v37  ;;  %v360_v45 = vmul.f32 %v6997_v1, %v7083_v39  ;;  %v359_v46 = vmul.f32 %v6997_v1, %v7086_v40  ;;  %v7106_v47 = vld [vmem:[#allocation5 + $0x30] sm:$0xff]  ;;  %v7108_v48 = vld [vmem:[#allocation5 + $0x38] sm:$0xff]  ;;  %v7111_v49 = vld [vmem:[%s6981_s10 + $0x88] sm:$0xff] }
  0x74   : > { %v7092_v41 = vpack.c.bf16 %v813_v34, %v810_v30  ;;  %v7098_v42 = vpack.c.bf16 %v9169_v36, %v9170_v35  ;;  %v7114_v50 = vld [vmem:[%s6981_s10 + $0x80] sm:$0xff]  ;;  %v9164_v52 = vand.u32 4294901760, %v7106_v47  ;;  %v9163_v53 = vand.u32 4294901760, %v7108_v48  ;;  %v7136_v57 = vld [vmem:[#allocation5 + $0x48] sm:$0xff]  ;;  %v7139_v58 = vld [vmem:[%s6981_s10 + $0x98] sm:$0xff] }
  0x75   : > { %v7126_v51 = vpack.c.bf16 %v9165_v44, %v9168_v43  ;;  %v362_v54 = vmul.f32 %v6997_v1, %v7111_v49  ;;  %v361_v55 = vmul.f32 %v6997_v1, %v7114_v50  ;;  %v7134_v56 = vld [vmem:[#allocation5 + $0x40] sm:$0xff]  ;;  %v7142_v59 = vld [vmem:[%s6981_s10 + $0x90] sm:$0xff]  ;;  %v9159_v62 = vand.u32 4294901760, %v7136_v57  ;;  %v7162_v7 = vld [vmem:[#allocation5 + $0x58] sm:$0xff] }
  0x76   : > { %419 = vadd.xlane.f32.xlu1 %v350_v11  ;;  %9410 = vst [vmem:[#allocation11_spill] sm:$0xff] %v7092_v41  ;;  %9411 = vst [vmem:[#allocation12_spill] sm:$0xff] %v7098_v42  ;;  %5970 = vmatprep.subr.bf16.mxu0 %v7092_v41  ;;  %v7152_v60 = vpack.c.bf16 %v9163_v53, %v9164_v52  ;;  %v9160_v61 = vand.u32 4294901760, %v7134_v56  ;;  %v364_v63 = vmul.f32 %v6997_v1, %v7139_v58  ;;  %v7160_v4 = vld [vmem:[#allocation5 + $0x50] sm:$0xff]  ;;  %v7165_v8 = vld [vmem:[%s6981_s10 + $0xa8] sm:$0xff] }
  0x77   : > { %417 = vadd.xlane.f32.xlu0 %v349_v12  ;;  %5874 = vmatprep.subr.bf16.mxu1 %v7092_v41  ;;  %9412 = vst [vmem:[#allocation13_spill] sm:$0xff] %v7126_v51  ;;  %v363_v3 = vmul.f32 %v6997_v1, %v7142_v59  ;;  %v7168_v11 = vld [vmem:[%s6981_s10 + $0xa0] sm:$0xff]  ;;  %v7237_v53 = vsub.f32 %v7062_v27, %v810_v30  ;;  %v7252_v43 = vld [vmem:[%s6981_s10 + $0xd0] sm:$0xff]  ;;  %v7273_v35 = vld [vmem:[%s6981_s10 + $0xe8] sm:$0xff] }
  0x78   : > { %5972 = vmatpush3.bf16.msra.mxu0 %v7092_v41  ;;  %5876 = vmatpush3.bf16.msra.mxu1 %v7092_v41  ;;  %9413 = vst [vmem:[#allocation14_spill] sm:$0xff] %v7152_v60  ;;  %v7178_v12 = vpack.c.bf16 %v9159_v62, %v9160_v61  ;;  %v7214_v62 = vld [vmem:[#allocation5 + $0x78] sm:$0xff]  ;;  %v7217_v61 = vld [vmem:[%s6981_s10 + $0xc8] sm:$0xff]  ;;  %v7242_v52 = vsub.f32 %v7066_v29, %v813_v34  ;;  %9424 = vst [vmem:[#allocation25_spill] sm:$0xff] %v7252_v43 }
  0x79   : > { %5974 = vmatprep.subr.bf16.mxu0 %v7098_v42  ;;  %5878 = vmatprep.subr.bf16.mxu1 %v7098_v42  ;;  %9417 = vst [vmem:[#allocation18_spill] sm:$0xff] %v7214_v62  ;;  %9418 = vst [vmem:[#allocation19_spill] sm:$0xff] %v7217_v61  ;;  %v370_v44 = vmul.f32 %v6997_v1, %v7217_v61  ;;  %v1533_v27 = vand.u32 4294901760, %v7237_v53  ;;  %v371_v36 = vmul.f32 %v6997_v1, %v7252_v43 }
  0x7a   : > { %423 = vadd.xlane.f32.xlu1 %v352_v15  ;;  %9414 = vst [vmem:[#allocation15_spill] sm:$0xff] %v7178_v12  ;;  %v9162_v15 = vand.u32 4294901760, %v7160_v4  ;;  %9421 = vst [vmem:[#allocation22_spill] sm:$0xff] %v7237_v53  ;;  %v1540_v30 = vand.u32 4294901760, %v7242_v52 }
  0x7b   : > { %421 = vadd.xlane.f32.xlu0 %v351_v16  ;;  %v9161_v16 = vand.u32 4294901760, %v7162_v7  ;;  %9422 = vst [vmem:[#allocation23_spill] sm:$0xff] %v7242_v52  ;;  %v1534_v34 = vsub.f32 %v7237_v53, %v1533_v27  ;;  %9426 = vst [vmem:[#allocation27_spill] sm:$0xff] %v7273_v35 }
  0x7c   : > { %5976 = vmatpush3.bf16.msra.mxu0 %v7098_v42  ;;  %5880 = vmatpush3.bf16.msra.mxu1 %v7098_v42  ;;  %v337_v42 = vld [vmem:[%s6981_s10 + $0x1f8] sm:$0xff] }
  0x7d   : > { %5978 = vmatprep.subr.bf16.mxu0 %v7126_v51  ;;  %5882 = vmatprep.subr.bf16.mxu1 %v7126_v51 }
  0x7e   : > { %427 = vadd.xlane.f32.xlu1 %v354_v19  ;;  %v366_v19 = vmul.f32 %v6997_v1, %v7165_v8 }
  0x7f   : > { %425 = vadd.xlane.f32.xlu0 %v353_v20  ;;  %v365_v20 = vmul.f32 %v6997_v1, %v7168_v11 }
  0x80   : > { %5980 = vmatpush3.bf16.msra.mxu0 %v7126_v51  ;;  %5884 = vmatpush3.bf16.msra.mxu1 %v7126_v51  ;;  %v308_v51 = vld [vmem:[%s6981_s10 + $0x110] sm:$0xff] }
  0x81   : > { %5982 = vmatprep.subr.bf16.mxu0 %v7152_v60  ;;  %5886 = vmatprep.subr.bf16.mxu1 %v7152_v60 }
  0x82   : > { %431 = vadd.xlane.f32.xlu1 %v356_v23  ;;  %v7186_v23 = vld [vmem:[#allocation5 + $0x60] sm:$0xff] }
  0x83   : > { %429 = vadd.xlane.f32.xlu0 %v355_v24  ;;  %v7188_v24 = vld [vmem:[#allocation5 + $0x68] sm:$0xff] }
  0x84   : > { %5984 = vmatpush3.bf16.msra.mxu0 %v7152_v60  ;;  %5888 = vmatpush3.bf16.msra.mxu1 %v7152_v60  ;;  %v309_v60 = vld [vmem:[%s6981_s10 + $0x118] sm:$0xff] }
  0x85   : > { %5986 = vmatprep.subr.bf16.mxu0 %v7178_v12  ;;  %5890 = vmatprep.subr.bf16.mxu1 %v7178_v12 }
  0x86   : > { %435 = vadd.xlane.f32.xlu1 %v358_v28  ;;  %v7191_v28 = vld [vmem:[%s6981_s10 + $0xb8] sm:$0xff] }
  0x87   : > { %433 = vadd.xlane.f32.xlu0 %v357_v33  ;;  %v7194_v33 = vld [vmem:[%s6981_s10 + $0xb0] sm:$0xff] }
  0x88   : > { %5988 = vmatpush3.bf16.msra.mxu0 %v7178_v12  ;;  %5892 = vmatpush3.bf16.msra.mxu1 %v7178_v12  ;;  %v7291_v12 = vld [vmem:[%s6981_s10 + $0xf8] sm:$0xff] }
  0x89   : > { %9428 = vst [vmem:[#allocation29_spill] sm:$0xff] %v7291_v12 }
  0x8a   : > { %439 = vadd.xlane.f32.xlu1 %v360_v45  ;;  %v7204_v45 = vpack.c.bf16 %v9161_v16, %v9162_v15  ;;  %v7220_v16 = vld [vmem:[%s6981_s10 + $0xc0] sm:$0xff]  ;;  %v9173_v15 = vand.u32 4294901760, %v7214_v62 }
  0x8b   : > { %437 = vadd.xlane.f32.xlu0 %v359_v46  ;;  %v9167_v46 = vand.u32 4294901760, %v7186_v23  ;;  %9419 = vst [vmem:[#allocation20_spill] sm:$0xff] %v7220_v16 }
  0x8c   : > { %9415 = vst [vmem:[#allocation16_spill] sm:$0xff] %v7204_v45  ;;  %5990 = vmatprep.subr.bf16.mxu0 %v7204_v45  ;;  %5894 = vmatprep.subr.bf16.mxu1 %v7204_v45 }
  0x8d   : > { %5992 = vmatpush3.bf16.msra.mxu0 %v7204_v45  ;;  %5896 = vmatpush3.bf16.msra.mxu1 %v7204_v45  ;;  %v7276_v45 = vld [vmem:[%s6981_s10 + $0xe0] sm:$0xff] }
  0x8e   : > { %443 = vadd.xlane.f32.xlu1 %v362_v54  ;;  %v9166_v54 = vand.u32 4294901760, %v7188_v24  ;;  %9427 = vst [vmem:[#allocation28_spill] sm:$0xff] %v7276_v45 }
  0x8f   : > { %441 = vadd.xlane.f32.xlu0 %v361_v55  ;;  %v7208_v55 = vld [vmem:[#allocation5 + $0x70] sm:$0xff] }
  0x90   : > { %9416 = vst [vmem:[#allocation17_spill] sm:$0xff] %v7208_v55 }
  0x92   : > { %447 = vadd.xlane.f32.xlu1 %v364_v63  ;;  %v368_v63 = vmul.f32 %v6997_v1, %v7191_v28 }
  0x93   : > { %445 = vadd.xlane.f32.xlu0 %v363_v3  ;;  %v367_v3 = vmul.f32 %v6997_v1, %v7194_v33 }
  0x96   : > { %451 = vadd.xlane.f32.xlu1 %v366_v19  ;;  %v9174_v19 = vand.u32 4294901760, %v7208_v55 }
  0x97   : > { %449 = vadd.xlane.f32.xlu0 %v365_v20  ;;  %v7231_v20 = vpack.c.bf16 %v9166_v54, %v9167_v46  ;;  %v369_v54 = vmul.f32 %v6997_v1, %v7220_v16  ;;  %v7249_v46 = vld [vmem:[%s6981_s10 + $0xd8] sm:$0xff] }
  0x98   : > { %9423 = vst [vmem:[#allocation24_spill] sm:$0xff] %v7249_v46  ;;  %v7264_v29 = vpack.c.bf16 %v9173_v15, %v9174_v19  ;;  %v1535_v15 = vand.u32 4294901760, %v1534_v34  ;;  %v374_v34 = vmul.f32 %v6997_v1, %v7273_v35 }
  0x99   : > { %9420 = vst [vmem:[#allocation21_spill] sm:$0xff] %v7231_v20  ;;  %5994 = vmatprep.subr.bf16.mxu0 %v7231_v20  ;;  %5898 = vmatprep.subr.bf16.mxu1 %v7231_v20 }
  0x9a   : > { %455 = vadd.xlane.f32.xlu1 %v368_v63  ;;  %9425 = vst [vmem:[#allocation26_spill] sm:$0xff] %v7264_v29  ;;  %v1541_v63 = vsub.f32 %v7242_v52, %v1540_v30  ;;  %5996 = vmatpush3.bf16.msra.mxu0 %v7231_v20 }
  0x9b   : > { %453 = vadd.xlane.f32.xlu0 %v367_v3  ;;  %v372_v3 = vmul.f32 %v6997_v1, %v7249_v46  ;;  %5900 = vmatpush3.bf16.msra.mxu1 %v7231_v20  ;;  %v304_v20 = vld [vmem:[%s6981_s10 + $0xf0] sm:$0xff] }
  0x9c   : > { %v1542_v19 = vand.u32 4294901760, %v1541_v63  ;;  %5998 = vmatprep.subr.bf16.mxu0 %v7264_v29  ;;  %5902 = vmatprep.subr.bf16.mxu1 %v7264_v29  ;;  %v373_v63 = vmul.f32 %v6997_v1, %v7276_v45 }
  0x9e   : > { %459 = vadd.xlane.f32.xlu1 %v370_v44  ;;  %v7282_v44 = vpack.c.bf16 %v1542_v19, %v1535_v15  ;;  %6000 = vmatpush3.bf16.msra.mxu0 %v7264_v29  ;;  %v375_v15 = vmul.f32 %v6997_v1, %v304_v20  ;;  %v307_v19 = vld [vmem:[%s6981_s10 + $0x108] sm:$0xff] }
  0x9f   : > { %457 = vadd.xlane.f32.xlu0 %v369_v54  ;;  %v7284_v54 = vpack.c.bf16 %v1540_v30, %v1533_v27  ;;  %5904 = vmatpush3.bf16.msra.mxu1 %v7264_v29  ;;  %v306_v27 = vld [vmem:[%s6981_s10 + $0x100] sm:$0xff]  ;;  %v378_v30 = vmul.f32 %v6997_v1, %v307_v19  ;;  %v9429_v29 = vand.u32 4294901760, %v7069_v31  ;;  %v311_v19 = vld [vmem:[%s6981_s10 + $0x128] sm:$0xff] }
  0xa0   : > { %5906 = vmatprep.subr.bf16.mxu1 %v7282_v44 }
  0xa1   : > { %6002 = vmatprep.subr.bf16.mxu0 %v7284_v54 }
  0xa2   : > { %463 = vadd.xlane.f32.xlu1 %v372_v3  ;;  %v377_v3 = vmul.f32 %v6997_v1, %v306_v27  ;;  %v310_v27 = vld [vmem:[%s6981_s10 + $0x120] sm:$0xff] }
  0xa3   : > { %461 = vadd.xlane.f32.xlu0 %v371_v36  ;;  %v376_v36 = vmul.f32 %v6997_v1, %v7291_v12 }
  0xa6   : > { %467 = vadd.xlane.f32.xlu1 %v374_v34  ;;  %v7308_v34 = vsub.f32 %v7069_v31, %v9429_v29  ;;  %v382_v31 = vmul.f32 %v6997_v1, %v311_v19  ;;  %v313_v29 = vld [vmem:[%s6981_s10 + $0x138] sm:$0xff] }
  0xa7   : > { %465 = vadd.xlane.f32.xlu0 %v373_v63  ;;  %v9431_v63 = vand.u32 4294901760, %v7071_v32  ;;  %v317_v19 = vld [vmem:[%s6981_s10 + $0x158] sm:$0xff] }
  0xa8   : > { %9430 = vst [vmem:[#allocation30_spill] sm:$0xff] %v7308_v34 }
  0xa9   : > { %v7313_v20 = vsub.f32 %v7071_v32, %v9431_v63  ;;  %v381_v32 = vmul.f32 %v6997_v1, %v310_v27  ;;  %v312_v63 = vld [vmem:[%s6981_s10 + $0x130] sm:$0xff] }
  0xaa   : > { %471 = vadd.xlane.f32.xlu1 %v376_v36  ;;  %v380_v36 = vmul.f32 %v6997_v1, %v309_v60  ;;  %v383_v60 = vmul.f32 %v6997_v1, %v312_v63  ;;  %v316_v27 = vld [vmem:[%s6981_s10 + $0x150] sm:$0xff] }
  0xab   : > { %469 = vadd.xlane.f32.xlu0 %v375_v15  ;;  %9432 = vst [vmem:[#allocation31_spill] sm:$0xff] %v7313_v20  ;;  %v379_v15 = vmul.f32 %v6997_v1, %v308_v51  ;;  %v315_v51 = vld [vmem:[%s6981_s10 + $0x148] sm:$0xff] }
  0xae   : > { %475 = vadd.xlane.f32.xlu1 %v378_v30  ;;  %v384_v30 = vmul.f32 %v6997_v1, %v313_v29  ;;  %v9435_v29 = vand.u32 4294901760, %v7080_v38 }
  0xaf   : > { %473 = vadd.xlane.f32.xlu0 %v377_v3  ;;  %v314_v3 = vld [vmem:[%s6981_s10 + $0x140] sm:$0xff] }
  0xb0   : > { %v7341_v63 = vsub.f32 %v7080_v38, %v9435_v29  ;;  %v321_v38 = vld [vmem:[%s6981_s10 + $0x178] sm:$0xff]  ;;  %v320_v29 = vld [vmem:[%s6981_s10 + $0x170] sm:$0xff] }
  0xb2   : > { %479 = vadd.xlane.f32.xlu1 %v380_v36  ;;  %v386_v36 = vmul.f32 %v6997_v1, %v315_v51  ;;  %9436 = vst [vmem:[#allocation33_spill] sm:$0xff] %v7341_v63  ;;  %v319_v51 = vld [vmem:[%s6981_s10 + $0x168] sm:$0xff] }
  0xb3   : > { %477 = vadd.xlane.f32.xlu0 %v379_v15  ;;  %v385_v15 = vmul.f32 %v6997_v1, %v314_v3  ;;  %v318_v3 = vld [vmem:[%s6981_s10 + $0x160] sm:$0xff] }
  0xb6   : > { %483 = vadd.xlane.f32.xlu1 %v382_v31  ;;  %v9433_v31 = vand.u32 4294901760, %v7078_v37 }
  0xb7   : > { %481 = vadd.xlane.f32.xlu0 %v381_v32 }
  0xb8   : > { %v7336_v32 = vsub.f32 %v7078_v37, %v9433_v31  ;;  %v390_v37 = vmul.f32 %v6997_v1, %v319_v51  ;;  %v389_v31 = vmul.f32 %v6997_v1, %v318_v3  ;;  %v325_v51 = vld [vmem:[%s6981_s10 + $0x198] sm:$0xff]  ;;  %v324_v3 = vld [vmem:[%s6981_s10 + $0x190] sm:$0xff] }
  0xba   : > { %487 = vadd.xlane.f32.xlu1 %v384_v30  ;;  %9434 = vst [vmem:[#allocation32_spill] sm:$0xff] %v7336_v32  ;;  %v388_v30 = vmul.f32 %v6997_v1, %v317_v19  ;;  %v323_v19 = vld [vmem:[%s6981_s10 + $0x188] sm:$0xff] }
  0xbb   : > { %485 = vadd.xlane.f32.xlu0 %v383_v60  ;;  %v387_v60 = vmul.f32 %v6997_v1, %v316_v27  ;;  %v322_v27 = vld [vmem:[%s6981_s10 + $0x180] sm:$0xff] }
  0xbe   : > { %491 = vadd.xlane.f32.xlu1 %v386_v36  ;;  %v392_v36 = vmul.f32 %v6997_v1, %v321_v38  ;;  %v327_v38 = vld [vmem:[%s6981_s10 + $0x1a8] sm:$0xff] }
  0xbf   : > { %489 = vadd.xlane.f32.xlu0 %v385_v15  ;;  %v391_v15 = vmul.f32 %v6997_v1, %v320_v29  ;;  %v326_v29 = vld [vmem:[%s6981_s10 + $0x1a0] sm:$0xff] }
  0xc2   : > { %495 = vadd.xlane.f32.xlu1 %v388_v30  ;;  %v394_v30 = vmul.f32 %v6997_v1, %v323_v19  ;;  %v329_v19 = vld [vmem:[%s6981_s10 + $0x1b8] sm:$0xff] }
  0xc3   : > { %493 = vadd.xlane.f32.xlu0 %v387_v60  ;;  %v393_v60 = vmul.f32 %v6997_v1, %v322_v27  ;;  %v328_v27 = vld [vmem:[%s6981_s10 + $0x1b0] sm:$0xff] }
  0xc6   : > { %499 = vadd.xlane.f32.xlu1 %v390_v37  ;;  %v396_v37 = vmul.f32 %v6997_v1, %v325_v51  ;;  %v331_v51 = vld [vmem:[%s6981_s10 + $0x1c8] sm:$0xff] }
  0xc7   : > { %497 = vadd.xlane.f32.xlu0 %v389_v31  ;;  %v395_v31 = vmul.f32 %v6997_v1, %v324_v3  ;;  %v330_v3 = vld [vmem:[%s6981_s10 + $0x1c0] sm:$0xff] }
  0xca   : > { %503 = vadd.xlane.f32.xlu1 %v392_v36  ;;  %v398_v36 = vmul.f32 %v6997_v1, %v327_v38  ;;  %v333_v38 = vld [vmem:[%s6981_s10 + $0x1d8] sm:$0xff] }
  0xcb   : > { %501 = vadd.xlane.f32.xlu0 %v391_v15  ;;  %v397_v15 = vmul.f32 %v6997_v1, %v326_v29  ;;  %v332_v29 = vld [vmem:[%s6981_s10 + $0x1d0] sm:$0xff] }
  0xce   : > { %507 = vadd.xlane.f32.xlu1 %v394_v30  ;;  %v400_v30 = vmul.f32 %v6997_v1, %v329_v19  ;;  %v335_v19 = vld [vmem:[%s6981_s10 + $0x1e8] sm:$0xff] }
  0xcf   : > { %505 = vadd.xlane.f32.xlu0 %v393_v60  ;;  %v399_v60 = vmul.f32 %v6997_v1, %v328_v27  ;;  %v334_v27 = vld [vmem:[%s6981_s10 + $0x1e0] sm:$0xff] }
  0xd2   : > { %511 = vadd.xlane.f32.xlu1 %v396_v37  ;;  %v402_v37 = vmul.f32 %v6997_v1, %v331_v51  ;;  %v336_v51 = vld [vmem:[%s6981_s10 + $0x1f0] sm:$0xff] }
  0xd3   : > { %509 = vadd.xlane.f32.xlu0 %v395_v31  ;;  %v401_v31 = vmul.f32 %v6997_v1, %v330_v3  ;;  %v408_v3 = vmul.f32 %v6997_v1, %v337_v42  ;;  %v1561_v42 = vand.u32 4294901760, %v7336_v32 }
  0xd6   : > { %515 = vadd.xlane.f32.xlu1 %v398_v36  ;;  %v404_v36 = vmul.f32 %v6997_v1, %v333_v38  ;;  %v1554_v38 = vand.u32 4294901760, %v7313_v20 }
  0xd7   : > { %513 = vadd.xlane.f32.xlu0 %v397_v15  ;;  %v403_v15 = vmul.f32 %v6997_v1, %v332_v29  ;;  %v9437_v29 = vand.u32 4294901760, %v7106_v47 }
  0xda   : > { %519 = vadd.xlane.f32.xlu1 %v400_v30  ;;  %v406_v30 = vmul.f32 %v6997_v1, %v335_v19 }
  0xdb   : > { %517 = vadd.xlane.f32.xlu0 %v399_v60  ;;  %v405_v60 = vmul.f32 %v6997_v1, %v334_v27  ;;  %v1568_v27 = vand.u32 4294901760, %v7341_v63 }
  0xde   : > { %523 = vadd.xlane.f32.xlu1 %v402_v37  ;;  %v407_v37 = vmul.f32 %v6997_v1, %v336_v51  ;;  %v9442_v51 = vand.u32 4294901760, %v7136_v57 }
  0xdf   : > { %521 = vadd.xlane.f32.xlu0 %v401_v31  ;;  %v1547_v31 = vand.u32 4294901760, %v7308_v34 }
  0xe1   : > { %v7431_v45 = vpack.c.bf16 %v1554_v38, %v1547_v31 }
  0xe2   : > { %527 = vadd.xlane.f32.xlu1 %v404_v36  ;;  %v7390_v36 = vsub.f32 %v7106_v47, %v9437_v29  ;;  %v1548_v47 = vsub.f32 %v7308_v34, %v1547_v31 }
  0xe3   : > { %525 = vadd.xlane.f32.xlu0 %v403_v15  ;;  %v9439_v15 = vand.u32 4294901760, %v7108_v48 }
  0xe4   : > { %9438 = vst [vmem:[#allocation34_spill] sm:$0xff] %v7390_v36  ;;  %v1549_v52 = vand.u32 4294901760, %v1548_v47 }
  0xe5   : > { %v7395_v19 = vsub.f32 %v7108_v48, %v9439_v15  ;;  %v1575_v48 = vand.u32 4294901760, %v7390_v36  ;;  %v9443_v15 = vand.u32 4294901760, %v7160_v4 }
  0xe6   : > { %531 = vadd.xlane.f32.xlu1 %v406_v30  ;;  %v9441_v30 = vand.u32 4294901760, %v7134_v56 }
  0xe7   : > { %529 = vadd.xlane.f32.xlu0 %v405_v60  ;;  %9440 = vst [vmem:[#allocation35_spill] sm:$0xff] %v7395_v19  ;;  %v1582_v29 = vand.u32 4294901760, %v7395_v19  ;;  %v7416_v41 = vsub.f32 %v7160_v4, %v9443_v15  ;;  %v1576_v4 = vsub.f32 %v7390_v36, %v1575_v48 }
  0xe8   : > { %v7402_v60 = vsub.f32 %v7134_v56, %v9441_v30  ;;  %v9444_v56 = vand.u32 4294901760, %v7162_v7 }
  0xe9   : > { %v1583_v15 = vsub.f32 %v7395_v19, %v1582_v29  ;;  %v1603_v12 = vand.u32 4294901760, %v7416_v41  ;;  %v7439_v19 = vpack.c.bf16 %v1568_v27, %v1561_v42 }
  0xea   : > { %535 = vadd.xlane.f32.xlu1 %v408_v3  ;;  %v7407_v3 = vsub.f32 %v7136_v57, %v9442_v51  ;;  %v7421_v30 = vsub.f32 %v7162_v7, %v9444_v56  ;;  %v1562_v57 = vsub.f32 %v7336_v32, %v1561_v42  ;;  %v1569_v51 = vsub.f32 %v7341_v63, %v1568_v27 }
  0xeb   : > { %533 = vadd.xlane.f32.xlu0 %v407_v37  ;;  %v1555_v37 = vsub.f32 %v7313_v20, %v1554_v38  ;;  %v1589_v20 = vand.u32 4294901760, %v7402_v60  ;;  %v1604_v31 = vsub.f32 %v7416_v41, %v1603_v12 }
  0xec   : > { %v1596_v34 = vand.u32 4294901760, %v7407_v3  ;;  %v1610_v7 = vand.u32 4294901760, %v7421_v30  ;;  %v1563_v63 = vand.u32 4294901760, %v1562_v57  ;;  %v1570_v35 = vand.u32 4294901760, %v1569_v51 }
  0xed   : > { %v1556_v53 = vand.u32 4294901760, %v1555_v37  ;;  %v1590_v43 = vsub.f32 %v7402_v60, %v1589_v20 }
  0xee   : > { %v1597_v47 = vsub.f32 %v7407_v3, %v1596_v34  ;;  %v1611_v38 = vsub.f32 %v7421_v30, %v1610_v7 }
  0xef   : > { %v7437_v46 = vpack.c.bf16 %v1556_v53, %v1549_v52  ;;  %v7449_v52 = vpack.c.bf16 %v1570_v35, %v1563_v63  ;;  %v7451_v53 = vpack.c.bf16 %v1582_v29, %v1575_v48  ;;  %v1591_v42 = vand.u32 4294901760, %v1590_v43 }
  0xf0   : > { %v1598_v27 = vand.u32 4294901760, %v1597_v47  ;;  %v7461_v35 = vpack.c.bf16 %v1596_v34, %v1589_v20  ;;  %v1612_v63 = vand.u32 4294901760, %v1611_v38 }
  0xfb   : > { %v414_v62 = vpop.xlane.xlu1 %413 }
  0xfc   : > { %v410_v55 = vpop.xlane.xlu0 %409  ;;  %v539_v56 = vmul.f32 0.0625, %v414_v62  ;;  %v1577_v62 = vand.u32 4294901760, %v1576_v4 }
  0xfd   : > { %v537_v32 = vmul.f32 0.0625, %v410_v55  ;;  %v1584_v55 = vand.u32 4294901760, %v1583_v15 }
  0xfe   : > { %v603_v37 = vmul.f32 %v6997_v1, %v539_v56 }
  0xff   : > { %v601_v36 = vmul.f32 %v6997_v1, %v537_v32  ;;  %v416_v16 = vpop.xlane.xlu1 %415 }
 0x100   : > { %v412_v61 = vpop.xlane.xlu0 %411  ;;  %v7444_v57 = vsub.f32 %v6992_v0, %v603_v37  ;;  %v540_v56 = vmul.f32 0.0625, %v416_v16  ;;  %v7459_v16 = vpack.c.bf16 %v1584_v55, %v1577_v62  ;;  %v7475_v62 = vpack.c.bf16 %v1610_v7, %v1603_v12 }
 0x101   : > { %v7447_v51 = vsub.f32 %v7000_v2, %v601_v36  ;;  %v538_v32 = vmul.f32 0.0625, %v412_v61  ;;  %v1605_v61 = vand.u32 4294901760, %v1604_v31  ;;  %v9451_v7 = vand.u32 4294901760, %v7186_v23 }
 0x102   : > { %9445 = vst [vmem:[#allocation36_spill] sm:$0xff] %v7444_v57  ;;  %v731_v4 = vmul.f32 %v7444_v57, %v7444_v57  ;;  %v604_v0 = vmul.f32 %v6997_v1, %v540_v56  ;;  %v7473_v57 = vpack.c.bf16 %v1598_v27, %v1591_v42 }
 0x103   : > { %9446 = vst [vmem:[#allocation37_spill] sm:$0xff] %v7447_v51  ;;  %v729_v15 = vmul.f32 %v7447_v51, %v7447_v51  ;;  %v602_v37 = vmul.f32 %v6997_v1, %v538_v32  ;;  %v420_v2 = vpop.xlane.xlu1 %419  ;;  %v7489_v12 = vpack.c.bf16 %v1612_v63, %v1605_v61  ;;  %v7494_v27 = vsub.f32 %v7186_v23, %v9451_v7 }
 0x104   : > { %v418_v36 = vpop.xlane.xlu0 %417  ;;  %v7463_v43 = vand.u32 4294901760, %v731_v4  ;;  %v7468_v29 = vsub.f32 %v7007_v5, %v604_v0  ;;  %v542_v56 = vmul.f32 0.0625, %v420_v2  ;;  %v9458_v51 = vand.u32 4294901760, %v7188_v24 }
 0x105   : > { %v7465_v48 = vand.u32 4294901760, %v729_v15  ;;  %v7471_v47 = vsub.f32 %v7010_v6, %v602_v37  ;;  %v541_v32 = vmul.f32 0.0625, %v418_v36 }
 0x106   : > { %9447 = vst [vmem:[#allocation38_spill] sm:$0xff] %v7468_v29  ;;  %v732_v34 = vmul.f32 %v7468_v29, %v7468_v29  ;;  %v7485_v5 = vsub.f32 %v731_v4, %v7463_v43  ;;  %v606_v6 = vmul.f32 %v6997_v1, %v542_v56 }
 0x107   : > { %9448 = vst [vmem:[#allocation39_spill] sm:$0xff] %v7471_v47  ;;  %v730_v20 = vmul.f32 %v7471_v47, %v7471_v47  ;;  %v7482_v55 = vsub.f32 %v729_v15, %v7465_v48  ;;  %v605_v31 = vmul.f32 %v6997_v1, %v541_v32  ;;  %v424_v38 = vpop.xlane.xlu1 %423  ;;  %v7534_v47 = vsub.f32 %v7188_v24, %v9458_v51 }
 0x108   : > { %9450 = vst [vmem:[#allocation41_spill] sm:$0xff] %v7485_v5  ;;  %v422_v42 = vpop.xlane.xlu0 %421  ;;  %v7496_v0 = vand.u32 4294901760, %v732_v34  ;;  %v544_v37 = vmul.f32 0.0625, %v424_v38  ;;  %v7501_v2 = vsub.f32 %v7017_v9, %v606_v6  ;;  %v912_v63 = vand.u32 4294901760, %v7485_v5 }
 0x109   : > { %9449 = vst [vmem:[#allocation40_spill] sm:$0xff] %v7482_v55  ;;  %v7498_v15 = vand.u32 4294901760, %v730_v20  ;;  %v543_v4 = vmul.f32 0.0625, %v422_v42  ;;  %v7504_v36 = vsub.f32 %v7020_v10, %v605_v31  ;;  %v892_v61 = vand.u32 4294901760, %v7482_v55 }
 0x10a   : > { %9452 = vst [vmem:[#allocation42_spill] sm:$0xff] %v7501_v2  ;;  %v608_v56 = vmul.f32 %v6997_v1, %v544_v37  ;;  %v7514_v38 = vsub.f32 %v732_v34, %v7496_v0  ;;  %v734_v9 = vmul.f32 %v7501_v2, %v7501_v2  ;;  %v913_v7 = vsub.f32 %v7485_v5, %v912_v63 }
 0x10b   : > { %9453 = vst [vmem:[#allocation43_spill] sm:$0xff] %v7504_v36  ;;  %v607_v23 = vmul.f32 %v6997_v1, %v543_v4  ;;  %v7511_v32 = vsub.f32 %v730_v20, %v7498_v15  ;;  %v733_v10 = vmul.f32 %v7504_v36, %v7504_v36  ;;  %5521 = vmatprep.mubr.f32.mxu0 %v892_v61  ;;  %v428_v6 = vpop.xlane.xlu1 %427 }
 0x10c   : > { %9455 = vst [vmem:[#allocation45_spill] sm:$0xff] %v7514_v38  ;;  %v426_v31 = vpop.xlane.xlu0 %425  ;;  %v893_v42 = vsub.f32 %v7482_v55, %v892_v61  ;;  %v7523_v37 = vsub.f32 %v7027_v13, %v608_v56  ;;  %v546_v34 = vmul.f32 0.0625, %v428_v6  ;;  %v7536_v61 = vand.u32 4294901760, %v734_v9 }
 0x10d   : > { %9454 = vst [vmem:[#allocation44_spill] sm:$0xff] %v7511_v32  ;;  %v7526_v20 = vsub.f32 %v7030_v14, %v607_v23  ;;  %v545_v4 = vmul.f32 0.0625, %v426_v31  ;;  %v7528_v29 = vand.u32 4294901760, %v733_v10  ;;  %v902_v36 = vand.u32 4294901760, %v7511_v32 }
 0x10e   : > { %9456 = vst [vmem:[#allocation46_spill] sm:$0xff] %v7523_v37  ;;  %v894_v2 = vand.u32 4294901760, %v893_v42  ;;  %v610_v14 = vmul.f32 %v6997_v1, %v546_v34  ;;  %v7544_v23 = vmul.f32 %v7523_v37, %v7523_v37  ;;  %v922_v51 = vand.u32 4294901760, %v7514_v38 }
 0x10f   : > { %9457 = vst [vmem:[#allocation47_spill] sm:$0xff] %v7526_v20  ;;  %v735_v13 = vmul.f32 %v7526_v20, %v7526_v20  ;;  %v609_v56 = vmul.f32 %v6997_v1, %v545_v4  ;;  %5522 = vmatmul.mubr.f32.vlgmr.msra.gmra.mrb[0].mxu0 %v902_v36  ;;  %v432_v6 = vpop.xlane.xlu1 %431  ;;  %v903_v24 = vsub.f32 %v7511_v32, %v902_v36 }
 0x110   : > { %5137 = vmatprep.mubr.f32.mxu1 %v894_v2  ;;  %v430_v31 = vpop.xlane.xlu0 %429  ;;  %v7549_v42 = vsub.f32 %v733_v10, %v7528_v29  ;;  %v7554_v34 = vsub.f32 %v7037_v17, %v610_v14  ;;  %5524 = vmatprep.mubr.f32.mxu0 %v912_v63  ;;  %v914_v2 = vand.u32 4294901760, %v913_v7  ;;  %v548_v37 = vmul.f32 0.0625, %v432_v6 }
 0x111   : > { %v7551_v20 = vand.u32 4294901760, %v735_v13  ;;  %v7557_v4 = vsub.f32 %v7040_v18, %v609_v56  ;;  %6004 = vmatpush3.bf16.msra.mxu0 %v7284_v54  ;;  %v547_v5 = vmul.f32 0.0625, %v430_v31  ;;  %v904_v36 = vand.u32 4294901760, %v903_v24 }
 0x112   : > { %9459 = vst [vmem:[#allocation48_spill] sm:$0xff] %v7549_v42  ;;  %9460 = vst [vmem:[#allocation49_spill] sm:$0xff] %v7554_v34  ;;  %v932_v32 = vand.u32 4294901760, %v7549_v42  ;;  %6006 = vmatprep.subr.bf16.mxu0 %v7431_v45  ;;  %v738_v10 = vmul.f32 %v7554_v34, %v7554_v34  ;;  %v923_v18 = vsub.f32 %v7514_v38, %v922_v51  ;;  %v7574_v31 = vand.u32 4294901760, %v7544_v23 }
 0x113   : > { %9461 = vst [vmem:[#allocation50_spill] sm:$0xff] %v7557_v4  ;;  %v737_v17 = vmul.f32 %v7557_v4, %v7557_v4  ;;  %v7568_v63 = vsub.f32 %v734_v9, %v7536_v61  ;;  %v612_v54 = vmul.f32 %v6997_v1, %v548_v37  ;;  %v611_v7 = vmul.f32 %v6997_v1, %v547_v5  ;;  %v436_v14 = vpop.xlane.xlu1 %435 }
 0x114   : > { %5138 = vmatmul.mubr.f32.vlgmr.msra.gmra.mrb[0].mxu1 %v904_v36  ;;  %5525 = vmatmul.mubr.f32.gmra.mrb[2].mxu0 %v922_v51  ;;  %v434_v56 = vpop.xlane.xlu0 %433  ;;  %v933_v6 = vsub.f32 %v7549_v42, %v932_v32  ;;  %v7576_v24 = vand.u32 4294901760, %v738_v10  ;;  %v550_v4 = vmul.f32 0.0625, %v436_v14  ;;  %v924_v51 = vand.u32 4294901760, %v923_v18 }
 0x115   : > { %9462 = vst [vmem:[#allocation51_spill] sm:$0xff] %v7568_v63  ;;  %5908 = vmatpush3.bf16.msra.mxu1 %v7282_v44  ;;  %5140 = vmatprep.mubr.f32.mxu1 %v914_v2  ;;  %v549_v9 = vmul.f32 0.0625, %v434_v56  ;;  %v7580_v37 = vsub.f32 %v7047_v21, %v612_v54  ;;  %v7583_v5 = vsub.f32 %v7050_v22, %v611_v7  ;;  %v942_v36 = vand.u32 4294901760, %v7568_v63 }
 0x116   : > { %5527 = vmatprep.mubr.f32.mxu0 %v932_v32  ;;  %5910 = vmatprep.subr.bf16.mxu1 %v7437_v46  ;;  %v614_v34 = vmul.f32 %v6997_v1, %v550_v4  ;;  %v934_v44 = vand.u32 4294901760, %v933_v6  ;;  %v7590_v2 = vsub.f32 %v735_v13, %v7551_v20  ;;  %v7593_v21 = vand.u32 4294901760, %v737_v17 }
 0x117   : > { %9463 = vst [vmem:[#allocation52_spill] sm:$0xff] %v7580_v37  ;;  %9464 = vst [vmem:[#allocation53_spill] sm:$0xff] %v7583_v5  ;;  %v613_v42 = vmul.f32 %v6997_v1, %v549_v9  ;;  %6008 = vmatpush3.bf16.msra.mxu0 %v7431_v45  ;;  %v7597_v22 = vmul.f32 %v7580_v37, %v7580_v37  ;;  %v7601_v32 = vmul.f32 %v7583_v5, %v7583_v5  ;;  %v440_v4 = vpop.xlane.xlu1 %439 }
 0x118   : > { %9465 = vst [vmem:[#allocation54_spill] sm:$0xff] %v7590_v2  ;;  %5141 = vmatmul.mubr.f32.gmra.mrb[2].mxu1 %v924_v51  ;;  %5528 = vmatmul.mubr.f32.gmra.mrb[4].mxu0 %v942_v36  ;;  %v438_v18 = vpop.xlane.xlu0 %437  ;;  %v943_v54 = vsub.f32 %v7568_v63, %v942_v36  ;;  %v7605_v13 = vsub.f32 %v7057_v25, %v614_v34  ;;  %v552_v7 = vmul.f32 0.0625, %v440_v4  ;;  %v952_v14 = vand.u32 4294901760, %v7590_v2 }
 0x119   : > { %v7608_v45 = vsub.f32 %v7060_v26, %v613_v42  ;;  %5143 = vmatprep.mubr.f32.mxu1 %v934_v44  ;;  %5912 = vmatpush3.bf16.msra.mxu1 %v7437_v46  ;;  %v551_v56 = vmul.f32 0.0625, %v438_v18  ;;  %v7625_v46 = vsub.f32 %v7544_v23, %v7574_v31  ;;  %v7630_v4 = vsub.f32 %v737_v17, %v7593_v21 }
 0x11a   : > { %9466 = vst [vmem:[#allocation55_spill] sm:$0xff] %v7605_v13  ;;  %v944_v6 = vand.u32 4294901760, %v943_v54  ;;  %5914 = vmatprep.subr.bf16.mxu1 %v7449_v52  ;;  %6010 = vmatprep.subr.bf16.mxu0 %v7439_v19  ;;  %v7618_v26 = vmul.f32 %v7605_v13, %v7605_v13  ;;  %v616_v34 = vmul.f32 %v6997_v1, %v552_v7  ;;  %v7636_v7 = vand.u32 4294901760, %v7597_v22 }
 0x11b   : > { %9467 = vst [vmem:[#allocation56_spill] sm:$0xff] %v7608_v45  ;;  %v741_v42 = vmul.f32 %v7608_v45, %v7608_v45  ;;  %5530 = vmatprep.mubr.f32.mxu0 %v952_v14  ;;  %9468 = vst [vmem:[#allocation57_spill] sm:$0xff] %v7625_v46  ;;  %v615_v51 = vmul.f32 %v6997_v1, %v551_v56  ;;  %v444_v36 = vpop.xlane.xlu1 %443  ;;  %v953_v44 = vsub.f32 %v7590_v2, %v952_v14 }
 0x11c   : > { %5144 = vmatmul.mubr.f32.gmra.mrb[4].mxu1 %v944_v6  ;;  %9469 = vst [vmem:[#allocation58_spill] sm:$0xff] %v7630_v4  ;;  %v442_v18 = vpop.xlane.xlu0 %441  ;;  %v7633_v54 = vsub.f32 %v738_v10, %v7576_v24  ;;  %v7639_v25 = vand.u32 4294901760, %v7601_v32  ;;  %v7642_v23 = vsub.f32 %v7083_v39, %v616_v34  ;;  %v962_v56 = vand.u32 4294901760, %v7625_v46  ;;  %6012 = vmatpush3.bf16.msra.mxu0 %v7439_v19 }
 0x11d   : > { %5916 = vmatpush3.bf16.msra.mxu1 %v7449_v52  ;;  %v7648_v17 = vsub.f32 %v7086_v40, %v615_v51  ;;  %v554_v10 = vmul.f32 0.0625, %v444_v36  ;;  %v954_v14 = vand.u32 4294901760, %v953_v44  ;;  %v972_v6 = vand.u32 4294901760, %v7630_v4  ;;  %6014 = vmatprep.subr.bf16.mxu0 %v7451_v53 }
 0x11e   : > { %9470 = vst [vmem:[#allocation59_spill] sm:$0xff] %v7633_v54  ;;  %9471 = vst [vmem:[#allocation60_spill] sm:$0xff] %v7642_v23  ;;  %5918 = vmatprep.subr.bf16.mxu1 %v7459_v16  ;;  %v7655_v39 = vmul.f32 %v7642_v23, %v7642_v23  ;;  %5531 = vmatmul.mubr.f32.gmra.mrb[6].mxu0 %v962_v56  ;;  %v553_v34 = vmul.f32 0.0625, %v442_v18  ;;  %v963_v52 = vsub.f32 %v7625_v46, %v962_v56 }
 0x11f   : > { %9472 = vst [vmem:[#allocation61_spill] sm:$0xff] %v7648_v17  ;;  %v982_v19 = vand.u32 4294901760, %v7633_v54  ;;  %v7660_v40 = vand.u32 4294901760, %v7618_v26  ;;  %v7662_v51 = vand.u32 4294901760, %v741_v42  ;;  %v618_v36 = vmul.f32 %v6997_v1, %v554_v10  ;;  %5146 = vmatprep.mubr.f32.mxu1 %v954_v14  ;;  %5533 = vmatprep.mubr.f32.mxu0 %v972_v6  ;;  %v448_v44 = vpop.xlane.xlu1 %447 }
 0x120   : > { %v973_v9 = vsub.f32 %v7630_v4, %v972_v6  ;;  %v446_v23 = vpop.xlane.xlu0 %445  ;;  %v7668_v18 = vmul.f32 %v7648_v17, %v7648_v17  ;;  %v617_v56 = vmul.f32 %v6997_v1, %v553_v34  ;;  %v964_v45 = vand.u32 4294901760, %v963_v52  ;;  %6016 = vmatpush3.bf16.msra.mxu0 %v7451_v53 }
 0x121   : > { %v556_v13 = vmul.f32 0.0625, %v448_v44  ;;  %5920 = vmatpush3.bf16.msra.mxu1 %v7459_v16  ;;  %v7674_v10 = vand.u32 4294901760, %v7655_v39  ;;  %v7677_v14 = vsub.f32 %v7111_v49, %v618_v36  ;;  %v7681_v5 = vsub.f32 %v7601_v32, %v7639_v25  ;;  %6018 = vmatprep.subr.bf16.mxu0 %v7461_v35 }
 0x122   : > { %v974_v6 = vand.u32 4294901760, %v973_v9  ;;  %5922 = vmatprep.subr.bf16.mxu1 %v7473_v57  ;;  %v7686_v34 = vsub.f32 %v7114_v50, %v617_v56  ;;  %5147 = vmatmul.mubr.f32.gmra.mrb[6].mxu1 %v964_v45  ;;  %v555_v16 = vmul.f32 0.0625, %v446_v23  ;;  %v983_v49 = vsub.f32 %v7633_v54, %v982_v19  ;;  %v7712_v23 = vld [vmem:[%s9151_s1] ss:$0 sm:$0xff] }
 0x123   : > { %9473 = vst [vmem:[#allocation62_spill] sm:$0xff] %v7677_v14  ;;  %9474 = vst [vmem:[#allocation63_spill] sm:$0xff] %v7681_v5  ;;  %5534 = vmatmul.mubr.f32.gmra.mrb[8].mxu0 %v982_v19  ;;  %v620_v53 = vmul.f32 %v6997_v1, %v556_v13  ;;  %v7692_v9 = vmul.f32 %v7677_v14, %v7677_v14  ;;  %v992_v32 = vand.u32 4294901760, %v7681_v5  ;;  %v452_v50 = vpop.xlane.xlu1 %451 }
 0x124   : > { %9475 = vst [vmem:[#allocation64_spill] sm:$0xff] %v7686_v34  ;;  %5149 = vmatprep.mubr.f32.mxu1 %v974_v6  ;;  %v7697_v52 = vsub.f32 %v7597_v22, %v7636_v7  ;;  %v7700_v45 = vsub.f32 %v741_v42, %v7662_v51  ;;  %v450_v36 = vpop.xlane.xlu0 %449  ;;  %v7704_v1 = vmul.f32 %v7686_v34, %v7686_v34  ;;  %v984_v19 = vand.u32 4294901760, %v983_v49 }
 0x125   : > { %v7707_v13 = vsub.f32 %v7139_v58, %v620_v53  ;;  %v619_v22 = vmul.f32 %v7712_v23, %v555_v16  ;;  %5924 = vmatpush3.bf16.msra.mxu1 %v7473_v57  ;;  %6020 = vmatpush3.bf16.msra.mxu0 %v7461_v35  ;;  %v7718_v42 = vand.u32 4294901760, %v7668_v18  ;;  %v558_v58 = vmul.f32 0.0625, %v452_v50 }
 0x126   : > { %9476 = vst [vmem:[#allocation65_spill] sm:$0xff] %v7697_v52  ;;  %9477 = vst [vmem:[#allocation66_spill] sm:$0xff] %v7700_v45  ;;  %5536 = vmatprep.mubr.f32.mxu0 %v992_v32  ;;  %v1002_v44 = vand.u32 4294901760, %v7697_v52  ;;  %v993_v56 = vsub.f32 %v7681_v5, %v992_v32  ;;  %5926 = vmatprep.subr.bf16.mxu1 %v7489_v12  ;;  %v7724_v6 = vand.u32 4294901760, %v7692_v9  ;;  %v1012_v35 = vand.u32 4294901760, %v7700_v45 }
 0x127   : > { %9478 = vst [vmem:[#allocation67_spill] sm:$0xff] %v7707_v13  ;;  %v7728_v53 = vmul.f32 %v7707_v13, %v7707_v13  ;;  %v7731_v57 = vsub.f32 %v7142_v59, %v619_v22  ;;  %5150 = vmatmul.mubr.f32.gmra.mrb[8].mxu1 %v984_v19  ;;  %6022 = vmatprep.subr.bf16.mxu0 %v7475_v62  ;;  %v557_v32 = vmul.f32 0.0625, %v450_v36  ;;  %v456_v34 = vpop.xlane.xlu1 %455  ;;  %v7738_v13 = vand.u32 4294901760, %v7704_v1 }
 0x128   : > { %5537 = vmatmul.mubr.f32.gmra.mrb[10].mxu0 %v1002_v44  ;;  %v622_v16 = vmul.f32 %v7712_v23, %v558_v58  ;;  %v994_v49 = vand.u32 4294901760, %v993_v56  ;;  %v1003_v50 = vsub.f32 %v7697_v52, %v1002_v44  ;;  %v454_v14 = vpop.xlane.xlu0 %453  ;;  %v7744_v22 = vsub.f32 %v7618_v26, %v7660_v40 }
 0x129   : > { %9479 = vst [vmem:[#allocation68_spill] sm:$0xff] %v7731_v57  ;;  %v747_v59 = vmul.f32 %v7731_v57, %v7731_v57  ;;  %5539 = vmatprep.mubr.f32.mxu0 %v1012_v35  ;;  %v560_v19 = vmul.f32 0.0625, %v456_v34  ;;  %5928 = vmatpush3.bf16.msra.mxu1 %v7489_v12  ;;  %v621_v44 = vmul.f32 %v7712_v23, %v557_v32  ;;  %v7754_v57 = vand.u32 4294901760, %v7728_v53 }
 0x12a   : > { %9480 = vst [vmem:[#allocation69_spill] sm:$0xff] %v7744_v22  ;;  %v7748_v36 = vsub.f32 %v7165_v8, %v622_v16  ;;  %5152 = vmatprep.mubr.f32.mxu1 %v994_v49  ;;  %v1004_v58 = vand.u32 4294901760, %v1003_v50  ;;  %v1013_v56 = vsub.f32 %v7700_v45, %v1012_v35  ;;  %6024 = vmatpush3.bf16.msra.mxu0 %v7475_v62  ;;  %v1022_v26 = vand.u32 4294901760, %v7744_v22 }
 0x12b   : > { %v624_v34 = vmul.f32 %v7712_v23, %v560_v19  ;;  %v7760_v12 = vsub.f32 %v7668_v18, %v7718_v42  ;;  %v7767_v16 = vsub.f32 %v7168_v11, %v621_v44  ;;  %v559_v35 = vmul.f32 0.0625, %v454_v14  ;;  %v460_v49 = vpop.xlane.xlu1 %459 }
 0x12c   : > { %9481 = vst [vmem:[#allocation70_spill] sm:$0xff] %v7748_v36  ;;  %v7764_v8 = vmul.f32 %v7748_v36, %v7748_v36  ;;  %5153 = vmatmul.mubr.f32.gmra.mrb[10].mxu1 %v1004_v58  ;;  %v1014_v62 = vand.u32 4294901760, %v1013_v56  ;;  %v458_v32 = vpop.xlane.xlu0 %457  ;;  %5540 = vmatmul.mubr.f32.gmra.mrb[12].mxu0 %v1022_v26  ;;  %v1023_v18 = vsub.f32 %v7744_v22, %v1022_v26  ;;  %v7778_v17 = vand.u32 4294901760, %v747_v59 }
 0x12d   : > { %9482 = vst [vmem:[#allocation71_spill] sm:$0xff] %v7760_v12  ;;  %9483 = vst [vmem:[#allocation72_spill] sm:$0xff] %v7767_v16  ;;  %v7770_v50 = vsub.f32 %v7191_v28, %v624_v34  ;;  %v1032_v19 = vand.u32 4294901760, %v7760_v12  ;;  %v7776_v36 = vsub.f32 %v7655_v39, %v7674_v10  ;;  %v749_v11 = vmul.f32 %v7767_v16, %v7767_v16 }
 0x12e   : > { %5155 = vmatprep.mubr.f32.mxu1 %v1014_v62  ;;  %v623_v14 = vmul.f32 %v7712_v23, %v559_v35  ;;  %v562_v44 = vmul.f32 0.0625, %v460_v49  ;;  %v7784_v28 = vand.u32 4294901760, %v7764_v8  ;;  %v1024_v58 = vand.u32 4294901760, %v1023_v18 }
 0x12f   : > { %9484 = vst [vmem:[#allocation73_spill] sm:$0xff] %v7770_v50  ;;  %9485 = vst [vmem:[#allocation74_spill] sm:$0xff] %v7776_v36  ;;  %5542 = vmatprep.mubr.f32.mxu0 %v1032_v19  ;;  %v1042_v56 = vand.u32 4294901760, %v7776_v36  ;;  %v1033_v26 = vsub.f32 %v7760_v12, %v1032_v19  ;;  %v7790_v39 = vmul.f32 %v7770_v50, %v7770_v50  ;;  %v464_v49 = vpop.xlane.xlu1 %463  ;;  %v7800_v18 = vand.u32 4294901760, %v749_v11 }
 0x130   : > { %v7793_v34 = vsub.f32 %v7194_v33, %v623_v14  ;;  %v626_v62 = vmul.f32 %v7712_v23, %v562_v44  ;;  %v7798_v35 = vsub.f32 %v7704_v1, %v7738_v13  ;;  %v462_v16 = vpop.xlane.xlu0 %461  ;;  %5156 = vmatmul.mubr.f32.gmra.mrb[12].mxu1 %v1024_v58  ;;  %v561_v37 = vmul.f32 0.0625, %v458_v32  ;;  %v9488_v14 = vld [vmem:[#allocation19_spill] sm:$0xff] }
 0x131   : > { %5543 = vmatmul.mubr.f32.gmra.mrb[14].mxu0 %v1042_v56  ;;  %v1034_v19 = vand.u32 4294901760, %v1033_v26  ;;  %v1043_v50 = vsub.f32 %v7776_v36, %v1042_v56  ;;  %v7813_v12 = vsub.f32 %v7692_v9, %v7724_v6  ;;  %v564_v32 = vmul.f32 0.0625, %v464_v49 }
 0x132   : > { %9486 = vst [vmem:[#allocation75_spill] sm:$0xff] %v7793_v34  ;;  %9487 = vst [vmem:[#allocation76_spill] sm:$0xff] %v7798_v35  ;;  %v7805_v33 = vmul.f32 %v7793_v34, %v7793_v34  ;;  %v7808_v44 = vsub.f32 %v9488_v14, %v626_v62  ;;  %v1052_v1 = vand.u32 4294901760, %v7798_v35  ;;  %v625_v58 = vmul.f32 %v7712_v23, %v561_v37  ;;  %v9492_v37 = vld [vmem:[#allocation20_spill] sm:$0xff] }
 0x133   : > { %9490 = vst [vmem:[#allocation77_spill] sm:$0xff] %v7813_v12  ;;  %5158 = vmatprep.mubr.f32.mxu1 %v1034_v19  ;;  %v1044_v26 = vand.u32 4294901760, %v1043_v50  ;;  %v7817_v56 = vsub.f32 %v747_v59, %v7778_v17  ;;  %v7820_v34 = vand.u32 4294901760, %v7790_v39  ;;  %v1062_v14 = vand.u32 4294901760, %v7813_v12  ;;  %v468_v19 = vpop.xlane.xlu1 %467 }
 0x134   : > { %9489 = vst [vmem:[#allocation19_spill] sm:$0xff] %v7808_v44  ;;  %v7824_v62 = vmul.f32 %v7808_v44, %v7808_v44  ;;  %5545 = vmatprep.mubr.f32.mxu0 %v1052_v1  ;;  %v1053_v9 = vsub.f32 %v7798_v35, %v1052_v1  ;;  %v466_v36 = vpop.xlane.xlu0 %465  ;;  %v7829_v50 = vsub.f32 %v9492_v37, %v625_v58  ;;  %v563_v22 = vmul.f32 0.0625, %v462_v16 }
 0x135   : > { %9491 = vst [vmem:[#allocation78_spill] sm:$0xff] %v7817_v56  ;;  %5159 = vmatmul.mubr.f32.gmra.mrb[14].mxu1 %v1044_v26  ;;  %v628_v59 = vmul.f32 %v7712_v23, %v564_v32  ;;  %v1072_v49 = vand.u32 4294901760, %v7817_v56  ;;  %v7834_v45 = vand.u32 4294901760, %v7805_v33  ;;  %5546 = vmatmul.mubr.f32.gmra.mrb[16].mxu0 %v1062_v14  ;;  %v1063_v52 = vsub.f32 %v7813_v12, %v1062_v14  ;;  %v9495_v26 = vld [vmem:[#allocation24_spill] sm:$0xff] }
 0x136   : > { %9493 = vst [vmem:[#allocation20_spill] sm:$0xff] %v7829_v50  ;;  %v1054_v44 = vand.u32 4294901760, %v1053_v9  ;;  %v7839_v1 = vsub.f32 %v7728_v53, %v7754_v57  ;;  %v753_v58 = vmul.f32 %v7829_v50, %v7829_v50  ;;  %v627_v16 = vmul.f32 %v7712_v23, %v563_v22  ;;  %v9499_v22 = vld [vmem:[#allocation25_spill] sm:$0xff] }
 0x137   : > { %v7844_v37 = vsub.f32 %v9495_v26, %v628_v59  ;;  %5548 = vmatprep.mubr.f32.mxu0 %v1072_v49  ;;  %v566_v32 = vmul.f32 0.0625, %v468_v19  ;;  %v1064_v35 = vand.u32 4294901760, %v1063_v52  ;;  %v1073_v14 = vsub.f32 %v7817_v56, %v1072_v49  ;;  %v472_v53 = vpop.xlane.xlu1 %471 }
 0x138   : > { %9494 = vst [vmem:[#allocation79_spill] sm:$0xff] %v7839_v1  ;;  %5161 = vmatprep.mubr.f32.mxu1 %v1054_v44  ;;  %v1082_v9 = vand.u32 4294901760, %v7839_v1  ;;  %v7850_v12 = vsub.f32 %v749_v11, %v7800_v18  ;;  %v470_v5 = vpop.xlane.xlu0 %469  ;;  %v7853_v50 = vand.u32 4294901760, %v7824_v62  ;;  %v7860_v19 = vsub.f32 %v9499_v22, %v627_v16 }
 0x139   : > { %9496 = vst [vmem:[#allocation24_spill] sm:$0xff] %v7844_v37  ;;  %v7857_v59 = vmul.f32 %v7844_v37, %v7844_v37  ;;  %v630_v52 = vmul.f32 %v7712_v23, %v566_v32  ;;  %5162 = vmatmul.mubr.f32.gmra.mrb[16].mxu1 %v1064_v35  ;;  %v1074_v44 = vand.u32 4294901760, %v1073_v14  ;;  %v565_v49 = vmul.f32 0.0625, %v466_v36  ;;  %v9502_v37 = vld [vmem:[#allocation27_spill] sm:$0xff] }
 0x13a   : > { %9497 = vst [vmem:[#allocation80_spill] sm:$0xff] %v7850_v12  ;;  %9498 = vst [vmem:[#allocation81_spill] sm:$0xff] %v7853_v50  ;;  %5549 = vmatmul.mubr.f32.gmra.mrb[18].mxu0 %v1082_v9  ;;  %v1092_v11 = vand.u32 4294901760, %v7850_v12  ;;  %v1083_v26 = vsub.f32 %v7839_v1, %v1082_v9  ;;  %v7865_v56 = vand.u32 4294901760, %v753_v58  ;;  %v7869_v54 = vmul.f32 %v7860_v19, %v7860_v19 }
 0x13b   : > { %9500 = vst [vmem:[#allocation25_spill] sm:$0xff] %v7860_v19  ;;  %v7872_v4 = vsub.f32 %v9502_v37, %v630_v52  ;;  %v7876_v16 = vsub.f32 %v7764_v8, %v7784_v28  ;;  %5164 = vmatprep.mubr.f32.mxu1 %v1074_v44  ;;  %v629_v35 = vmul.f32 %v7712_v23, %v565_v49  ;;  %v568_v32 = vmul.f32 0.0625, %v472_v53  ;;  %v476_v14 = vpop.xlane.xlu1 %475  ;;  %v9507_v44 = vld [vmem:[#allocation28_spill] sm:$0xff] }
 0x13c   : > { %9501 = vst [vmem:[#allocation82_spill] sm:$0xff] %v7865_v56  ;;  %5551 = vmatprep.mubr.f32.mxu0 %v1092_v11  ;;  %v1084_v36 = vand.u32 4294901760, %v1083_v26  ;;  %v1093_v9 = vsub.f32 %v7850_v12, %v1092_v11  ;;  %v474_v22 = vpop.xlane.xlu0 %473  ;;  %v7881_v19 = vand.u32 4294901760, %v7857_v59  ;;  %v7890_v52 = vsub.f32 %v7805_v33, %v7834_v45 }
 0x13d   : > { %9503 = vst [vmem:[#allocation27_spill] sm:$0xff] %v7872_v4  ;;  %9504 = vst [vmem:[#allocation83_spill] sm:$0xff] %v7876_v16  ;;  %v7885_v37 = vmul.f32 %v7872_v4, %v7872_v4  ;;  %v1102_v8 = vand.u32 4294901760, %v7876_v16  ;;  %v7893_v49 = vsub.f32 %v9507_v44, %v629_v35  ;;  %v632_v53 = vmul.f32 %v7712_v23, %v568_v32 }
 0x13e   : > { %9505 = vst [vmem:[#allocation84_spill] sm:$0xff] %v7881_v19  ;;  %9506 = vst [vmem:[#allocation85_spill] sm:$0xff] %v7890_v52  ;;  %5165 = vmatmul.mubr.f32.gmra.mrb[18].mxu1 %v1084_v36  ;;  %v1094_v11 = vand.u32 4294901760, %v1093_v9  ;;  %v567_v26 = vmul.f32 0.0625, %v470_v5  ;;  %v7897_v12 = vand.u32 4294901760, %v7869_v54  ;;  %v1112_v4 = vand.u32 4294901760, %v7890_v52 }
 0x13f   : > { %9508 = vst [vmem:[#allocation28_spill] sm:$0xff] %v7893_v49  ;;  %5552 = vmatmul.mubr.f32.gmra.mrb[20].mxu0 %v1102_v8  ;;  %v1103_v1 = vsub.f32 %v7876_v16, %v1102_v8  ;;  %v7903_v33 = vsub.f32 %v7790_v39, %v7820_v34  ;;  %v7907_v35 = vmul.f32 %v7893_v49, %v7893_v49  ;;  %v9511_v36 = vld [vmem:[#allocation29_spill] sm:$0xff]  ;;  %v570_v9 = vmul.f32 0.0625, %v476_v14  ;;  %v480_v44 = vpop.xlane.xlu1 %479 }
 0x140   : > { %9509 = vst [vmem:[#allocation86_spill] sm:$0xff] %v7897_v12  ;;  %v7910_v32 = vsub.f32 %v9511_v36, %v632_v53  ;;  %5167 = vmatprep.mubr.f32.mxu1 %v1094_v11  ;;  %v631_v5 = vmul.f32 %v7712_v23, %v567_v26  ;;  %v478_v46 = vpop.xlane.xlu0 %477  ;;  %5554 = vmatprep.mubr.f32.mxu0 %v1112_v4  ;;  %v7919_v49 = vand.u32 4294901760, %v7885_v37  ;;  %v6634_v14 = vld [vmem:[%s6981_s10 + $0xf0] sm:$0xff]  ;;  %v569_v36 = vmul.f32 0.0625, %v474_v22 }
 0x141   : > { %9510 = vst [vmem:[#allocation87_spill] sm:$0xff] %v7903_v33  ;;  %v1104_v8 = vand.u32 4294901760, %v1103_v1  ;;  %v1122_v16 = vand.u32 4294901760, %v7903_v33  ;;  %v1113_v39 = vsub.f32 %v7890_v52, %v1112_v4  ;;  %v7916_v2 = vsub.f32 %v753_v58, %v7865_v56 }
 0x142   : > { %9512 = vst [vmem:[#allocation29_spill] sm:$0xff] %v7910_v32  ;;  %9514 = vst [vmem:[#allocation89_spill] sm:$0xff] %v7919_v49  ;;  %v7923_v53 = vmul.f32 %v7910_v32, %v7910_v32  ;;  %v7926_v11 = vsub.f32 %v6634_v14, %v631_v5  ;;  %v634_v1 = vmul.f32 %v7712_v23, %v570_v9  ;;  %v7932_v52 = vand.u32 4294901760, %v7907_v35  ;;  %v6635_v5 = vld [vmem:[%s6981_s10 + $0x108] sm:$0xff] }
 0x143   : > { %9513 = vst [vmem:[#allocation88_spill] sm:$0xff] %v7916_v2  ;;  %5168 = vmatmul.mubr.f32.gmra.mrb[20].mxu1 %v1104_v8  ;;  %5555 = vmatmul.mubr.f32.gmra.mrb[22].mxu0 %v1122_v16  ;;  %v1114_v26 = vand.u32 4294901760, %v1113_v39  ;;  %v1132_v4 = vand.u32 4294901760, %v7916_v2  ;;  %v1123_v58 = vsub.f32 %v7903_v33, %v1122_v16  ;;  %v7943_v9 = vsub.f32 %v7824_v62, %v7853_v50  ;;  %v484_v8 = vpop.xlane.xlu1 %483 }
 0x144   : > { %9515 = vst [vmem:[#allocation90_spill] sm:$0xff] %v7926_v11  ;;  %9516 = vst [vmem:[#allocation91_spill] sm:$0xff] %v7932_v52  ;;  %v7936_v32 = vmul.f32 %v7926_v11, %v7926_v11  ;;  %v7939_v14 = vsub.f32 %v6635_v5, %v634_v1  ;;  %v482_v39 = vpop.xlane.xlu0 %481  ;;  %v633_v16 = vmul.f32 %v7712_v23, %v569_v36  ;;  %v572_v33 = vmul.f32 0.0625, %v480_v44  ;;  %v6636_v5 = vld [vmem:[%s6981_s10 + $0x100] sm:$0xff] }
 0x145   : > { %9518 = vst [vmem:[#allocation93_spill] sm:$0xff] %v7943_v9  ;;  %5170 = vmatprep.mubr.f32.mxu1 %v1114_v26  ;;  %5557 = vmatprep.mubr.f32.mxu0 %v1132_v4  ;;  %v1124_v22 = vand.u32 4294901760, %v1123_v58  ;;  %v1133_v63 = vsub.f32 %v7916_v2, %v1132_v4  ;;  %v7948_v11 = vand.u32 4294901760, %v7923_v53  ;;  %v1142_v62 = vand.u32 4294901760, %v7943_v9 }
 0x146   : > { %9517 = vst [vmem:[#allocation92_spill] sm:$0xff] %v7939_v14  ;;  %v7952_v1 = vmul.f32 %v7939_v14, %v7939_v14  ;;  %v7957_v26 = vsub.f32 %v7869_v54, %v7897_v12  ;;  %v7960_v36 = vsub.f32 %v6636_v5, %v633_v16  ;;  %v636_v44 = vmul.f32 %v7712_v23, %v572_v33 }
 0x147   : > { %9519 = vst [vmem:[#allocation94_spill] sm:$0xff] %v7948_v11  ;;  %5171 = vmatmul.mubr.f32.gmra.mrb[22].mxu1 %v1124_v22  ;;  %v1134_v4 = vand.u32 4294901760, %v1133_v63  ;;  %v571_v58 = vmul.f32 0.0625, %v478_v46  ;;  %v7964_v2 = vand.u32 4294901760, %v7936_v32  ;;  %5558 = vmatmul.mubr.f32.gmra.mrb[24].mxu0 %v1142_v62  ;;  %v1143_v38 = vsub.f32 %v7943_v9, %v1142_v62  ;;  %v488_v16 = vpop.xlane.xlu1 %487  ;;  %v6637_v63 = vld [vmem:[%s6981_s10 + $0x118] sm:$0xff] }
 0x148   : > { %9520 = vst [vmem:[#allocation95_spill] sm:$0xff] %v7957_v26  ;;  %9521 = vst [vmem:[#allocation96_spill] sm:$0xff] %v7960_v36  ;;  %v1152_v14 = vand.u32 4294901760, %v7957_v26  ;;  %v7970_v54 = vsub.f32 %v7857_v59, %v7881_v19  ;;  %v486_v5 = vpop.xlane.xlu0 %485  ;;  %v761_v33 = vmul.f32 %v7960_v36, %v7960_v36  ;;  %v7975_v46 = vsub.f32 %v6637_v63, %v636_v44 }
 0x149   : > { %9522 = vst [vmem:[#allocation97_spill] sm:$0xff] %v7964_v2  ;;  %5173 = vmatprep.mubr.f32.mxu1 %v1134_v4  ;;  %v635_v22 = vmul.f32 %v7712_v23, %v571_v58  ;;  %v574_v55 = vmul.f32 0.0625, %v484_v8  ;;  %v1144_v12 = vand.u32 4294901760, %v1143_v38  ;;  %v7982_v9 = vsub.f32 %v7907_v35, %v7932_v52  ;;  %v6638_v4 = vld [vmem:[%s6981_s10 + $0x110] sm:$0xff] }
 0x14a   : > { %9523 = vst [vmem:[#allocation98_spill] sm:$0xff] %v7970_v54  ;;  %9524 = vst [vmem:[#allocation99_spill] sm:$0xff] %v7975_v46  ;;  %5560 = vmatprep.mubr.f32.mxu0 %v1152_v14  ;;  %v1162_v62 = vand.u32 4294901760, %v7970_v54  ;;  %v1153_v59 = vsub.f32 %v7957_v26, %v1152_v14  ;;  %v7985_v36 = vand.u32 4294901760, %v7952_v1  ;;  %v7989_v44 = vmul.f32 %v7975_v46, %v7975_v46 }
 0x14b   : > { %9525 = vst [vmem:[#allocation100_spill] sm:$0xff] %v7982_v9  ;;  %v7992_v8 = vsub.f32 %v6638_v4, %v635_v22  ;;  %v638_v38 = vmul.f32 %v7712_v23, %v574_v55  ;;  %5174 = vmatmul.mubr.f32.gmra.mrb[24].mxu1 %v1144_v12  ;;  %v1172_v58 = vand.u32 4294901760, %v7982_v9  ;;  %v573_v35 = vmul.f32 0.0625, %v482_v39  ;;  %v492_v26 = vpop.xlane.xlu1 %491  ;;  %v6639_v22 = vld [vmem:[%s6981_s10 + $0x128] sm:$0xff] }
 0x14c   : > { %9526 = vst [vmem:[#allocation101_spill] sm:$0xff] %v7985_v36  ;;  %5561 = vmatmul.mubr.f32.gmra.mrb[26].mxu0 %v1162_v62  ;;  %v1154_v14 = vand.u32 4294901760, %v1153_v59  ;;  %v1163_v63 = vsub.f32 %v7970_v54, %v1162_v62  ;;  %v490_v52 = vpop.xlane.xlu0 %489  ;;  %v7997_v19 = vand.u32 4294901760, %v761_v33  ;;  %v8008_v55 = vsub.f32 %v7885_v37, %v7919_v49 }
 0x14d   : > { %9527 = vst [vmem:[#allocation102_spill] sm:$0xff] %v7992_v8  ;;  %v8001_v46 = vmul.f32 %v7992_v8, %v7992_v8  ;;  %v8004_v4 = vsub.f32 %v6639_v22, %v638_v38  ;;  %5563 = vmatprep.mubr.f32.mxu0 %v1172_v58  ;;  %v637_v12 = vmul.f32 %v7712_v23, %v573_v35  ;;  %v576_v62 = vmul.f32 0.0625, %v488_v16 }
 0x14e   : > { %9528 = vst [vmem:[#allocation103_spill] sm:$0xff] %v7997_v19  ;;  %9530 = vst [vmem:[#allocation105_spill] sm:$0xff] %v8008_v55  ;;  %5176 = vmatprep.mubr.f32.mxu1 %v1154_v14  ;;  %v1164_v39 = vand.u32 4294901760, %v1163_v63  ;;  %v1173_v59 = vsub.f32 %v7982_v9, %v1172_v58  ;;  %v8013_v54 = vand.u32 4294901760, %v7989_v44  ;;  %v1182_v38 = vand.u32 4294901760, %v8008_v55  ;;  %v6640_v14 = vld [vmem:[%s6981_s10 + $0x120] sm:$0xff] }
 0x14f   : > { %9529 = vst [vmem:[#allocation104_spill] sm:$0xff] %v8004_v4  ;;  %v8017_v8 = vmul.f32 %v8004_v4, %v8004_v4  ;;  %v8022_v37 = vsub.f32 %v7936_v32, %v7964_v2  ;;  %v8025_v35 = vsub.f32 %v6640_v14, %v637_v12  ;;  %v640_v16 = vmul.f32 %v7712_v23, %v576_v62  ;;  %v496_v22 = vpop.xlane.xlu1 %495  ;;  %v6641_v62 = vld [vmem:[%s6981_s10 + $0x138] sm:$0xff] }
 0x150   : > { %9531 = vst [vmem:[#allocation106_spill] sm:$0xff] %v8013_v54  ;;  %5177 = vmatmul.mubr.f32.gmra.mrb[26].mxu1 %v1164_v39  ;;  %v1174_v58 = vand.u32 4294901760, %v1173_v59  ;;  %v575_v63 = vmul.f32 0.0625, %v486_v5  ;;  %v494_v9 = vpop.xlane.xlu0 %493  ;;  %v8029_v4 = vand.u32 4294901760, %v8001_v46  ;;  %5564 = vmatmul.mubr.f32.gmra.mrb[28].mxu0 %v1182_v38  ;;  %v1183_v32 = vsub.f32 %v8008_v55, %v1182_v38 }
 0x151   : > { %9532 = vst [vmem:[#allocation107_spill] sm:$0xff] %v8022_v37  ;;  %9533 = vst [vmem:[#allocation108_spill] sm:$0xff] %v8025_v35  ;;  %v1192_v49 = vand.u32 4294901760, %v8022_v37  ;;  %v8035_v12 = vsub.f32 %v7923_v53, %v7948_v11  ;;  %v765_v39 = vmul.f32 %v8025_v35, %v8025_v35  ;;  %v8040_v5 = vsub.f32 %v6641_v62, %v640_v16 }
 0x152   : > { %9534 = vst [vmem:[#allocation109_spill] sm:$0xff] %v8029_v4  ;;  %5179 = vmatprep.mubr.f32.mxu1 %v1174_v58  ;;  %v639_v59 = vmul.f32 %v7712_v23, %v575_v63  ;;  %v578_v14 = vmul.f32 0.0625, %v492_v26  ;;  %v1184_v2 = vand.u32 4294901760, %v1183_v32  ;;  %v8046_v55 = vsub.f32 %v761_v33, %v7997_v19  ;;  %v6642_v58 = vld [vmem:[%s6981_s10 + $0x130] sm:$0xff] }
 0x153   : > { %9535 = vst [vmem:[#allocation110_spill] sm:$0xff] %v8035_v12  ;;  %9536 = vst [vmem:[#allocation111_spill] sm:$0xff] %v8040_v5  ;;  %5566 = vmatprep.mubr.f32.mxu0 %v1192_v49  ;;  %v1202_v50 = vand.u32 4294901760, %v8035_v12  ;;  %v1193_v38 = vsub.f32 %v8022_v37, %v1192_v49  ;;  %v8049_v53 = vand.u32 4294901760, %v8017_v8  ;;  %v8053_v16 = vmul.f32 %v8040_v5, %v8040_v5  ;;  %v500_v32 = vpop.xlane.xlu1 %499 }
 0x154   : > { %9537 = vst [vmem:[#allocation112_spill] sm:$0xff] %v8046_v55  ;;  %v8056_v63 = vsub.f32 %v6642_v58, %v639_v59  ;;  %v642_v26 = vmul.f32 %v7712_v23, %v578_v14  ;;  %v498_v62 = vpop.xlane.xlu0 %497  ;;  %5180 = vmatmul.mubr.f32.gmra.mrb[28].mxu1 %v1184_v2  ;;  %v1212_v33 = vand.u32 4294901760, %v8046_v55  ;;  %v577_v35 = vmul.f32 0.0625, %v490_v52  ;;  %v6643_v59 = vld [vmem:[%s6981_s10 + $0x148] sm:$0xff] }
 0x155   : > { %9538 = vst [vmem:[#allocation113_spill] sm:$0xff] %v8049_v53  ;;  %5567 = vmatmul.mubr.f32.gmra.mrb[30].mxu0 %v1202_v50  ;;  %v1194_v49 = vand.u32 4294901760, %v1193_v38  ;;  %v1203_v37 = vsub.f32 %v8035_v12, %v1202_v50  ;;  %v8061_v19 = vand.u32 4294901760, %v765_v39  ;;  %v8072_v2 = vsub.f32 %v7952_v1, %v7985_v36 }
 0x156   : > { %9539 = vst [vmem:[#allocation114_spill] sm:$0xff] %v8056_v63  ;;  %v8065_v5 = vmul.f32 %v8056_v63, %v8056_v63  ;;  %v8068_v58 = vsub.f32 %v6643_v59, %v642_v26  ;;  %5569 = vmatprep.mubr.f32.mxu0 %v1212_v33  ;;  %v641_v52 = vmul.f32 %v7712_v23, %v577_v35  ;;  %v580_v50 = vmul.f32 0.0625, %v496_v22 }
 0x157   : > { %9540 = vst [vmem:[#allocation115_spill] sm:$0xff] %v8061_v19  ;;  %9542 = vst [vmem:[#allocation117_spill] sm:$0xff] %v8072_v2  ;;  %5182 = vmatprep.mubr.f32.mxu1 %v1194_v49  ;;  %v1204_v14 = vand.u32 4294901760, %v1203_v37  ;;  %v1213_v38 = vsub.f32 %v8046_v55, %v1212_v33  ;;  %v8077_v12 = vand.u32 4294901760, %v8053_v16  ;;  %v1222_v26 = vand.u32 4294901760, %v8072_v2  ;;  %v504_v49 = vpop.xlane.xlu1 %503  ;;  %v6644_v37 = vld [vmem:[%s6981_s10 + $0x140] sm:$0xff] }
 0x158   : > { %9541 = vst [vmem:[#allocation116_spill] sm:$0xff] %v8068_v58  ;;  %v8081_v63 = vmul.f32 %v8068_v58, %v8068_v58  ;;  %v8086_v1 = vsub.f32 %v8001_v46, %v8029_v4  ;;  %v502_v35 = vpop.xlane.xlu0 %501  ;;  %v8089_v22 = vsub.f32 %v6644_v37, %v641_v52  ;;  %v644_v33 = vmul.f32 %v7712_v23, %v580_v50 }
 0x159   : > { %9543 = vst [vmem:[#allocation118_spill] sm:$0xff] %v8077_v12  ;;  %5183 = vmatmul.mubr.f32.gmra.mrb[30].mxu1 %v1204_v14  ;;  %v1214_v59 = vand.u32 4294901760, %v1213_v38  ;;  %v579_v55 = vmul.f32 0.0625, %v494_v9  ;;  %v8093_v58 = vand.u32 4294901760, %v8065_v5  ;;  %5570 = vmatmul.mubr.f32.gmra.mrb[32].mxu0 %v1222_v26  ;;  %v1223_v11 = vsub.f32 %v8072_v2, %v1222_v26  ;;  %v6645_v14 = vld [vmem:[%s6981_s10 + $0x158] sm:$0xff] }
 0x15a   : > { %9544 = vst [vmem:[#allocation119_spill] sm:$0xff] %v8086_v1  ;;  %9545 = vst [vmem:[#allocation120_spill] sm:$0xff] %v8089_v22  ;;  %v1232_v36 = vand.u32 4294901760, %v8086_v1  ;;  %v8099_v46 = vsub.f32 %v7989_v44, %v8013_v54  ;;  %v8103_v52 = vmul.f32 %v8089_v22, %v8089_v22  ;;  %v8106_v50 = vsub.f32 %v6645_v14, %v644_v33 }
 0x15b   : > { %9546 = vst [vmem:[#allocation121_spill] sm:$0xff] %v8093_v58  ;;  %5185 = vmatprep.mubr.f32.mxu1 %v1214_v59  ;;  %v643_v9 = vmul.f32 %v7712_v23, %v579_v55  ;;  %v582_v38 = vmul.f32 0.0625, %v500_v32  ;;  %v1224_v37 = vand.u32 4294901760, %v1223_v11  ;;  %v8112_v44 = vsub.f32 %v765_v39, %v8061_v19  ;;  %v508_v54 = vpop.xlane.xlu1 %507  ;;  %v6646_v55 = vld [vmem:[%s6981_s10 + $0x150] sm:$0xff] }
 0x15c   : > { %9547 = vst [vmem:[#allocation122_spill] sm:$0xff] %v8099_v46  ;;  %9548 = vst [vmem:[#allocation123_spill] sm:$0xff] %v8106_v50  ;;  %5572 = vmatprep.mubr.f32.mxu0 %v1232_v36  ;;  %v1242_v26 = vand.u32 4294901760, %v8099_v46  ;;  %v1233_v2 = vsub.f32 %v8086_v1, %v1232_v36  ;;  %v506_v22 = vpop.xlane.xlu0 %505  ;;  %v8115_v4 = vand.u32 4294901760, %v8081_v63  ;;  %v8119_v33 = vmul.f32 %v8106_v50, %v8106_v50 }
 0x15d   : > { %9549 = vst [vmem:[#allocation124_spill] sm:$0xff] %v8112_v44  ;;  %v8122_v32 = vsub.f32 %v6646_v55, %v643_v9  ;;  %v646_v11 = vmul.f32 %v7712_v23, %v582_v38  ;;  %5186 = vmatmul.mubr.f32.gmra.mrb[32].mxu1 %v1224_v37  ;;  %v1252_v39 = vand.u32 4294901760, %v8112_v44  ;;  %v581_v59 = vmul.f32 0.0625, %v498_v62  ;;  %v6647_v9 = vld [vmem:[%s6981_s10 + $0x168] sm:$0xff] }
 0x15e   : > { %9550 = vst [vmem:[#allocation125_spill] sm:$0xff] %v8115_v4  ;;  %5573 = vmatmul.mubr.f32.gmra.mrb[34].mxu0 %v1242_v26  ;;  %v1234_v36 = vand.u32 4294901760, %v1233_v2  ;;  %v1243_v14 = vsub.f32 %v8099_v46, %v1242_v26  ;;  %v8128_v1 = vand.u32 4294901760, %v8103_v52  ;;  %v8139_v38 = vsub.f32 %v8017_v8, %v8049_v53 }
 0x15f   : > { %9551 = vst [vmem:[#allocation126_spill] sm:$0xff] %v8122_v32  ;;  %v8132_v50 = vmul.f32 %v8122_v32, %v8122_v32  ;;  %v8135_v55 = vsub.f32 %v6647_v9, %v646_v11  ;;  %5575 = vmatprep.mubr.f32.mxu0 %v1252_v39  ;;  %v645_v62 = vmul.f32 %v7712_v23, %v581_v59  ;;  %v584_v37 = vmul.f32 0.0625, %v504_v49  ;;  %v512_v46 = vpop.xlane.xlu1 %511  ;;  %v6648_v59 = vld [vmem:[%s6981_s10 + $0x160] sm:$0xff] }
 0x160   : > { %9552 = vst [vmem:[#allocation127_spill] sm:$0xff] %v8128_v1  ;;  %9554 = vst [vmem:[#allocation129_spill] sm:$0xff] %v8139_v38  ;;  %5188 = vmatprep.mubr.f32.mxu1 %v1234_v36  ;;  %v1244_v2 = vand.u32 4294901760, %v1243_v14  ;;  %v1253_v26 = vsub.f32 %v8112_v44, %v1252_v39  ;;  %v510_v19 = vpop.xlane.xlu0 %509  ;;  %v8144_v32 = vand.u32 4294901760, %v8119_v33  ;;  %v1262_v8 = vand.u32 4294901760, %v8139_v38 }
 0x161   : > { %9553 = vst [vmem:[#allocation128_spill] sm:$0xff] %v8135_v55  ;;  %v8148_v11 = vmul.f32 %v8135_v55, %v8135_v55  ;;  %v8153_v36 = vsub.f32 %v8065_v5, %v8093_v58  ;;  %v8156_v49 = vsub.f32 %v6648_v59, %v645_v62  ;;  %v648_v39 = vmul.f32 %v7712_v23, %v584_v37 }
 0x162   : > { %9555 = vst [vmem:[#allocation130_spill] sm:$0xff] %v8144_v32  ;;  %5189 = vmatmul.mubr.f32.gmra.mrb[34].mxu1 %v1244_v2  ;;  %v1254_v14 = vand.u32 4294901760, %v1253_v26  ;;  %v583_v9 = vmul.f32 0.0625, %v502_v35  ;;  %v8160_v44 = vand.u32 4294901760, %v8132_v50  ;;  %5576 = vmatmul.mubr.f32.gmra.mrb[36].mxu0 %v1262_v8  ;;  %v1263_v53 = vsub.f32 %v8139_v38, %v1262_v8  ;;  %v6649_v2 = vld [vmem:[%s6981_s10 + $0x178] sm:$0xff] }
 0x163   : > { %9556 = vst [vmem:[#allocation131_spill] sm:$0xff] %v8153_v36  ;;  %9557 = vst [vmem:[#allocation132_spill] sm:$0xff] %v8156_v49  ;;  %v1272_v55 = vand.u32 4294901760, %v8153_v36  ;;  %v8166_v5 = vsub.f32 %v8053_v16, %v8077_v12  ;;  %v773_v62 = vmul.f32 %v8156_v49, %v8156_v49  ;;  %v8171_v37 = vsub.f32 %v6649_v2, %v648_v39  ;;  %v516_v59 = vpop.xlane.xlu1 %515 }
 0x164   : > { %9558 = vst [vmem:[#allocation133_spill] sm:$0xff] %v8160_v44  ;;  %5191 = vmatprep.mubr.f32.mxu1 %v1254_v14  ;;  %v647_v35 = vmul.f32 %v7712_v23, %v583_v9  ;;  %v586_v26 = vmul.f32 0.0625, %v508_v54  ;;  %v1264_v58 = vand.u32 4294901760, %v1263_v53  ;;  %v8178_v16 = vsub.f32 %v8103_v52, %v8128_v1  ;;  %v6650_v54 = vld [vmem:[%s6981_s10 + $0x170] sm:$0xff]  ;;  %v514_v9 = vpop.xlane.xlu0 %513 }
 0x165   : > { %9559 = vst [vmem:[#allocation134_spill] sm:$0xff] %v8166_v5  ;;  %9560 = vst [vmem:[#allocation135_spill] sm:$0xff] %v8171_v37  ;;  %5578 = vmatprep.mubr.f32.mxu0 %v1272_v55  ;;  %v1282_v8 = vand.u32 4294901760, %v8166_v5  ;;  %v1273_v38 = vsub.f32 %v8153_v36, %v1272_v55  ;;  %v8181_v49 = vand.u32 4294901760, %v8148_v11  ;;  %v8185_v39 = vmul.f32 %v8171_v37, %v8171_v37 }
 0x166   : > { %9561 = vst [vmem:[#allocation136_spill] sm:$0xff] %v8178_v16  ;;  %v8188_v14 = vsub.f32 %v6650_v54, %v647_v35  ;;  %v650_v53 = vmul.f32 %v7712_v23, %v586_v26  ;;  %5192 = vmatmul.mubr.f32.gmra.mrb[36].mxu1 %v1264_v58  ;;  %v1292_v2 = vand.u32 4294901760, %v8178_v16  ;;  %v585_v52 = vmul.f32 0.0625, %v506_v22  ;;  %v6651_v35 = vld [vmem:[%s6981_s10 + $0x188] sm:$0xff] }
 0x167   : > { %9562 = vst [vmem:[#allocation137_spill] sm:$0xff] %v8181_v49  ;;  %5579 = vmatmul.mubr.f32.gmra.mrb[38].mxu0 %v1282_v8  ;;  %v1274_v55 = vand.u32 4294901760, %v1273_v38  ;;  %v1283_v36 = vsub.f32 %v8166_v5, %v1282_v8  ;;  %v8193_v1 = vand.u32 4294901760, %v773_v62  ;;  %v8204_v58 = vsub.f32 %v8081_v63, %v8115_v4 }
 0x168   : > { %9563 = vst [vmem:[#allocation138_spill] sm:$0xff] %v8188_v14  ;;  %v8197_v37 = vmul.f32 %v8188_v14, %v8188_v14  ;;  %v8200_v54 = vsub.f32 %v6651_v35, %v650_v53  ;;  %5581 = vmatprep.mubr.f32.mxu0 %v1292_v2  ;;  %v649_v22 = vmul.f32 %v7712_v23, %v585_v52  ;;  %v588_v26 = vmul.f32 0.0625, %v512_v46  ;;  %v6652_v52 = vld [vmem:[%s6981_s10 + $0x180] sm:$0xff] }
 0x169   : > { %9564 = vst [vmem:[#allocation139_spill] sm:$0xff] %v8193_v1  ;;  %9566 = vst [vmem:[#allocation141_spill] sm:$0xff] %v8204_v58  ;;  %5194 = vmatprep.mubr.f32.mxu1 %v1274_v55  ;;  %v1284_v38 = vand.u32 4294901760, %v1283_v36  ;;  %v1293_v8 = vsub.f32 %v8178_v16, %v1292_v2  ;;  %v8209_v5 = vand.u32 4294901760, %v8185_v39  ;;  %v1302_v53 = vand.u32 4294901760, %v8204_v58  ;;  %v520_v55 = vpop.xlane.xlu1 %519 }
 0x16a   : > { %9565 = vst [vmem:[#allocation140_spill] sm:$0xff] %v8200_v54  ;;  %v8213_v14 = vmul.f32 %v8200_v54, %v8200_v54  ;;  %v8218_v63 = vsub.f32 %v8132_v50, %v8160_v44  ;;  %v8221_v36 = vsub.f32 %v6652_v52, %v649_v22  ;;  %v652_v46 = vmul.f32 %v7712_v23, %v588_v26  ;;  %v518_v22 = vpop.xlane.xlu0 %517  ;;  %v6653_v26 = vld [vmem:[%s6981_s10 + $0x198] sm:$0xff] }
 0x16b   : > { %9567 = vst [vmem:[#allocation142_spill] sm:$0xff] %v8209_v5  ;;  %5195 = vmatmul.mubr.f32.gmra.mrb[38].mxu1 %v1284_v38  ;;  %v1294_v2 = vand.u32 4294901760, %v1293_v8  ;;  %v587_v35 = vmul.f32 0.0625, %v510_v19  ;;  %v8225_v16 = vand.u32 4294901760, %v8197_v37  ;;  %5582 = vmatmul.mubr.f32.gmra.mrb[40].mxu0 %v1302_v53  ;;  %v1303_v4 = vsub.f32 %v8204_v58, %v1302_v53 }
 0x16c   : > { %9568 = vst [vmem:[#allocation143_spill] sm:$0xff] %v8218_v63  ;;  %9569 = vst [vmem:[#allocation144_spill] sm:$0xff] %v8221_v36  ;;  %v1312_v54 = vand.u32 4294901760, %v8218_v63  ;;  %v8231_v50 = vsub.f32 %v8119_v33, %v8144_v32  ;;  %v777_v38 = vmul.f32 %v8221_v36, %v8221_v36  ;;  %v8236_v8 = vsub.f32 %v6653_v26, %v652_v46 }
 0x16d   : > { %9570 = vst [vmem:[#allocation145_spill] sm:$0xff] %v8225_v16  ;;  %5197 = vmatprep.mubr.f32.mxu1 %v1294_v2  ;;  %v651_v19 = vmul.f32 %v7712_v23, %v587_v35  ;;  %v590_v52 = vmul.f32 0.0625, %v516_v59  ;;  %v1304_v44 = vand.u32 4294901760, %v1303_v4  ;;  %v8242_v33 = vsub.f32 %v773_v62, %v8193_v1  ;;  %v6654_v2 = vld [vmem:[%s6981_s10 + $0x190] sm:$0xff]  ;;  %v524_v36 = vpop.xlane.xlu1 %523 }
 0x16e   : > { %9571 = vst [vmem:[#allocation146_spill] sm:$0xff] %v8231_v50  ;;  %9572 = vst [vmem:[#allocation147_spill] sm:$0xff] %v8236_v8  ;;  %5584 = vmatprep.mubr.f32.mxu0 %v1312_v54  ;;  %v1322_v53 = vand.u32 4294901760, %v8231_v50  ;;  %v1313_v58 = vsub.f32 %v8218_v63, %v1312_v54  ;;  %v8245_v32 = vand.u32 4294901760, %v8213_v14  ;;  %v8249_v46 = vmul.f32 %v8236_v8, %v8236_v8 }
 0x16f   : > { %9573 = vst [vmem:[#allocation148_spill] sm:$0xff] %v8242_v33  ;;  %v8252_v35 = vsub.f32 %v6654_v2, %v651_v19  ;;  %v654_v4 = vmul.f32 %v7712_v23, %v590_v52  ;;  %5198 = vmatmul.mubr.f32.gmra.mrb[40].mxu1 %v1304_v44  ;;  %v1332_v54 = vand.u32 4294901760, %v8242_v33  ;;  %v589_v26 = vmul.f32 0.0625, %v514_v9  ;;  %v6655_v19 = vld [vmem:[%s6981_s10 + $0x1a8] sm:$0xff] }
 0x170   : > { %9574 = vst [vmem:[#allocation149_spill] sm:$0xff] %v8245_v32  ;;  %5585 = vmatmul.mubr.f32.gmra.mrb[42].mxu0 %v1322_v53  ;;  %v1314_v59 = vand.u32 4294901760, %v1313_v58  ;;  %v1323_v62 = vsub.f32 %v8231_v50, %v1322_v53  ;;  %v8257_v63 = vand.u32 4294901760, %v777_v38  ;;  %v8268_v44 = vsub.f32 %v8148_v11, %v8181_v49  ;;  %v522_v50 = vpop.xlane.xlu0 %521 }
 0x171   : > { %9575 = vst [vmem:[#allocation150_spill] sm:$0xff] %v8252_v35  ;;  %v8261_v8 = vmul.f32 %v8252_v35, %v8252_v35  ;;  %v8264_v2 = vsub.f32 %v6655_v19, %v654_v4  ;;  %5587 = vmatprep.mubr.f32.mxu0 %v1332_v54  ;;  %v653_v9 = vmul.f32 %v7712_v23, %v589_v26  ;;  %v592_v52 = vmul.f32 0.0625, %v520_v55  ;;  %v6656_v26 = vld [vmem:[%s6981_s10 + $0x1a0] sm:$0xff] }
 0x172   : > { %9576 = vst [vmem:[#allocation151_spill] sm:$0xff] %v8257_v63  ;;  %9578 = vst [vmem:[#allocation153_spill] sm:$0xff] %v8268_v44  ;;  %5200 = vmatprep.mubr.f32.mxu1 %v1314_v59  ;;  %v1324_v58 = vand.u32 4294901760, %v1323_v62  ;;  %v1333_v53 = vsub.f32 %v8242_v33, %v1332_v54  ;;  %v8273_v1 = vand.u32 4294901760, %v8249_v46  ;;  %v1342_v11 = vand.u32 4294901760, %v8268_v44 }
 0x173   : > { %9577 = vst [vmem:[#allocation152_spill] sm:$0xff] %v8264_v2  ;;  %v8277_v4 = vmul.f32 %v8264_v2, %v8264_v2  ;;  %v8282_v59 = vsub.f32 %v8197_v37, %v8225_v16  ;;  %v8285_v62 = vsub.f32 %v6656_v26, %v653_v9  ;;  %v656_v55 = vmul.f32 %v7712_v23, %v592_v52  ;;  %v528_v26 = vpop.xlane.xlu1 %527 }
 0x174   : > { %5201 = vmatmul.mubr.f32.gmra.mrb[42].mxu1 %v1324_v58  ;;  %v1334_v54 = vand.u32 4294901760, %v1333_v53  ;;  %v591_v19 = vmul.f32 0.0625, %v518_v22  ;;  %v8289_v35 = vand.u32 4294901760, %v8261_v8  ;;  %5588 = vmatmul.mubr.f32.gmra.mrb[44].mxu0 %v1342_v11  ;;  %v1343_v33 = vsub.f32 %v8268_v44, %v1342_v11  ;;  %v6657_v58 = vld [vmem:[%s6981_s10 + $0x1b8] sm:$0xff] }
 0x175   : > { %9579 = vst [vmem:[#allocation154_spill] sm:$0xff] %v8282_v59  ;;  %9580 = vst [vmem:[#allocation155_spill] sm:$0xff] %v8285_v62  ;;  %v1352_v2 = vand.u32 4294901760, %v8282_v59  ;;  %v8295_v37 = vsub.f32 %v8185_v39, %v8209_v5  ;;  %v8299_v9 = vmul.f32 %v8285_v62, %v8285_v62  ;;  %v8302_v52 = vsub.f32 %v6657_v58, %v656_v55 }
 0x176   : > { %9581 = vst [vmem:[#allocation156_spill] sm:$0xff] %v8289_v35  ;;  %5203 = vmatprep.mubr.f32.mxu1 %v1334_v54  ;;  %v655_v22 = vmul.f32 %v7712_v23, %v591_v19  ;;  %v594_v53 = vmul.f32 0.0625, %v524_v36  ;;  %v1344_v16 = vand.u32 4294901760, %v1343_v33  ;;  %v8308_v39 = vsub.f32 %v777_v38, %v8257_v63  ;;  %v6658_v54 = vld [vmem:[%s6981_s10 + $0x1b0] sm:$0xff]  ;;  %v526_v19 = vpop.xlane.xlu0 %525 }
 0x177   : > { %9582 = vst [vmem:[#allocation157_spill] sm:$0xff] %v8295_v37  ;;  %9583 = vst [vmem:[#allocation158_spill] sm:$0xff] %v8302_v52  ;;  %5590 = vmatprep.mubr.f32.mxu0 %v1352_v2  ;;  %v1362_v11 = vand.u32 4294901760, %v8295_v37  ;;  %v1353_v44 = vsub.f32 %v8282_v59, %v1352_v2  ;;  %v8311_v62 = vand.u32 4294901760, %v8277_v4  ;;  %v8315_v55 = vmul.f32 %v8302_v52, %v8302_v52 }
 0x178   : > { %9584 = vst [vmem:[#allocation159_spill] sm:$0xff] %v8308_v39  ;;  %v8318_v36 = vsub.f32 %v6658_v54, %v655_v22  ;;  %v658_v33 = vmul.f32 %v7712_v23, %v594_v53  ;;  %5204 = vmatmul.mubr.f32.gmra.mrb[44].mxu1 %v1344_v16  ;;  %v1372_v58 = vand.u32 4294901760, %v8308_v39  ;;  %v593_v38 = vmul.f32 0.0625, %v522_v50  ;;  %v6659_v22 = vld [vmem:[%s6981_s10 + $0x1c8] sm:$0xff] }
 0x179   : > { %5591 = vmatmul.mubr.f32.gmra.mrb[46].mxu0 %v1362_v11  ;;  %v1354_v2 = vand.u32 4294901760, %v1353_v44  ;;  %v1363_v59 = vsub.f32 %v8295_v37, %v1362_v11  ;;  %v8324_v63 = vand.u32 4294901760, %v8299_v9  ;;  %v8335_v16 = vsub.f32 %v8213_v14, %v8245_v32 }
 0x17a   : > { %9585 = vst [vmem:[#allocation160_spill] sm:$0xff] %v8318_v36  ;;  %v8328_v52 = vmul.f32 %v8318_v36, %v8318_v36  ;;  %v8331_v54 = vsub.f32 %v6659_v22, %v658_v33  ;;  %5593 = vmatprep.mubr.f32.mxu0 %v1372_v58  ;;  %v657_v50 = vmul.f32 %v7712_v23, %v593_v38  ;;  %v596_v53 = vmul.f32 0.0625, %v528_v26  ;;  %v6660_v38 = vld [vmem:[%s6981_s10 + $0x1c0] sm:$0xff] }
 0x17b   : > { %9587 = vst [vmem:[#allocation162_spill] sm:$0xff] %v8335_v16  ;;  %5206 = vmatprep.mubr.f32.mxu1 %v1354_v2  ;;  %v1364_v44 = vand.u32 4294901760, %v1363_v59  ;;  %v1373_v11 = vsub.f32 %v8308_v39, %v1372_v58  ;;  %v8340_v37 = vand.u32 4294901760, %v8315_v55  ;;  %v1382_v33 = vand.u32 4294901760, %v8335_v16  ;;  %v532_v2 = vpop.xlane.xlu1 %531 }
 0x17c   : > { %9586 = vst [vmem:[#allocation161_spill] sm:$0xff] %v8331_v54  ;;  %v8344_v36 = vmul.f32 %v8331_v54, %v8331_v54  ;;  %v8349_v14 = vsub.f32 %v8261_v8, %v8289_v35  ;;  %v8352_v59 = vsub.f32 %v6660_v38, %v657_v50  ;;  %v660_v26 = vmul.f32 %v7712_v23, %v596_v53 }
 0x17d   : > { %5207 = vmatmul.mubr.f32.gmra.mrb[46].mxu1 %v1364_v44  ;;  %v1374_v58 = vand.u32 4294901760, %v1373_v11  ;;  %v595_v22 = vmul.f32 0.0625, %v526_v19  ;;  %v8356_v39 = vand.u32 4294901760, %v8328_v52  ;;  %5594 = vmatmul.mubr.f32.gmra.mrb[48].mxu0 %v1382_v33  ;;  %v9590_v32 = vand.u32 4294901760, %v7494_v27  ;;  %v530_v44 = vpop.xlane.xlu0 %529  ;;  %v6661_v19 = vld [vmem:[%s6981_s10 + $0x1d8] sm:$0xff] }
 0x17e   : > { %9588 = vst [vmem:[#allocation163_spill] sm:$0xff] %v8349_v14  ;;  %9589 = vst [vmem:[#allocation164_spill] sm:$0xff] %v8352_v59  ;;  %v1392_v54 = vand.u32 4294901760, %v8349_v14  ;;  %v9591_v35 = vand.u32 4294901760, %v7534_v47  ;;  %v8367_v53 = vmul.f32 %v8352_v59, %v8352_v59  ;;  %v8370_v11 = vsub.f32 %v6661_v19, %v660_v26 }
 0x17f   : > { %v1618_v8 = vsub.f32 %v7494_v27, %v9590_v32  ;;  %5209 = vmatprep.mubr.f32.mxu1 %v1374_v58  ;;  %v659_v38 = vmul.f32 %v7712_v23, %v595_v22  ;;  %v1383_v5 = vsub.f32 %v8335_v16, %v1382_v33  ;;  %v8376_v12 = vsub.f32 %v8249_v46, %v8273_v1  ;;  %v6662_v58 = vld [vmem:[%s6981_s10 + $0x1d0] sm:$0xff]  ;;  %v6665_v16 = vld [vmem:[%s6981_s10 + $0x1e0] sm:$0xff] }
 0x180   : > { %v1625_v50 = vsub.f32 %v7534_v47, %v9591_v35  ;;  %9592 = vst [vmem:[#allocation165_spill] sm:$0xff] %v8370_v11  ;;  %5596 = vmatprep.mubr.f32.mxu0 %v1392_v54  ;;  %v598_v35 = vmul.f32 0.0625, %v532_v2  ;;  %v8379_v56 = vand.u32 4294901760, %v8344_v36  ;;  %v8383_v26 = vmul.f32 %v8370_v11, %v8370_v11  ;;  %v536_v2 = vpop.xlane.xlu1 %535 }
 0x181   : > { %v1619_v32 = vand.u32 4294901760, %v1618_v8  ;;  %9593 = vst [vmem:[#allocation166_spill] sm:$0xff] %v8376_v12  ;;  %v8386_v22 = vsub.f32 %v6662_v58, %v659_v38  ;;  %v1384_v33 = vand.u32 4294901760, %v1383_v5  ;;  %v1402_v8 = vand.u32 4294901760, %v8376_v12 }
 0x182   : > { %v1626_v49 = vand.u32 4294901760, %v1625_v50  ;;  %9594 = vst [vmem:[#allocation167_spill] sm:$0xff] %v8379_v56  ;;  %v662_v50 = vmul.f32 %v7712_v23, %v598_v35  ;;  %v1393_v46 = vsub.f32 %v8349_v14, %v1392_v54  ;;  %v8392_v59 = vand.u32 4294901760, %v8367_v53  ;;  %v6663_v23 = vld [vmem:[%s6981_s10 + $0x1e8] sm:$0xff] }
 0x183   : > { %9595 = vst [vmem:[#allocation168_spill] sm:$0xff] %v8386_v22  ;;  %v787_v11 = vmul.f32 %v8386_v22, %v8386_v22  ;;  %5210 = vmatmul.mubr.f32.gmra.mrb[48].mxu1 %v1384_v33  ;;  %v8398_v38 = vsub.f32 %v8299_v9, %v8324_v63  ;;  %v9599_v5 = vand.u32 4294901760, %v7534_v47  ;;  %5597 = vmatmul.mubr.f32.gmra.mrb[50].mxu0 %v1402_v8  ;;  %v597_v58 = vmul.f32 0.0625, %v530_v44  ;;  %v534_v22 = vpop.xlane.xlu0 %533  ;;  %v6664_v44 = vld [vmem:[%s9151_s1] ss:$0 sm:$0xff] }
 0x184   : > { %v5929_v19 = vpack.c.bf16 %v1626_v49, %v1619_v32  ;;  %9596 = vst [vmem:[#allocation169_spill] sm:$0xff] %v8392_v59  ;;  %v9598_v49 = vand.u32 4294901760, %v7494_v27  ;;  %v8405_v54 = vsub.f32 %v6663_v23, %v662_v50  ;;  %v1394_v35 = vand.u32 4294901760, %v1393_v46 }
 0x185   : > { %9597 = vst [vmem:[#allocation170_spill] sm:$0xff] %v8398_v38  ;;  %v1403_v14 = vsub.f32 %v8376_v12, %v1402_v8  ;;  %v8409_v33 = vand.u32 4294901760, %v8383_v26  ;;  %v1412_v9 = vand.u32 4294901760, %v8398_v38  ;;  %v8416_v50 = vand.u32 4294901760, %v787_v11 }
 0x186   : > { %v6025_v32 = vpack.c.bf16 %v9599_v5, %v9598_v49  ;;  %5930 = vmatprep.subr.bf16.mxu1 %v5929_v19  ;;  %9600 = vst [vmem:[#allocation171_spill] sm:$0xff] %v8405_v54  ;;  %v8414_v49 = vsub.f32 %v8277_v4, %v8311_v62  ;;  %v600_v5 = vmul.f32 0.0625, %v536_v2  ;;  %5212 = vmatprep.mubr.f32.mxu1 %v1394_v35  ;;  %v599_v12 = vmul.f32 0.0625, %v534_v22 }
 0x187   : > { %9601 = vst [vmem:[#allocation172_spill] sm:$0xff] %v8409_v33  ;;  %5932 = vmatpush3.bf16.msra.mxu1 %v5929_v19  ;;  %9603 = vst [vmem:[#allocation174_spill] sm:$0xff] %v8416_v50  ;;  %v661_v8 = vmul.f32 %v6664_v44, %v597_v58  ;;  %v1404_v19 = vand.u32 4294901760, %v1403_v14  ;;  %v8423_v46 = vsub.f32 %v8328_v52, %v8356_v39  ;;  %5599 = vmatprep.mubr.f32.mxu0 %v1412_v9 }
 0x188   : > { %6026 = vmatprep.subr.bf16.mxu0 %v6025_v32  ;;  %9602 = vst [vmem:[#allocation173_spill] sm:$0xff] %v8414_v49  ;;  %v1422_v4 = vand.u32 4294901760, %v8414_v49  ;;  %v664_v23 = vmul.f32 %v6664_v44, %v600_v5  ;;  %v1413_v2 = vsub.f32 %v8398_v38, %v1412_v9  ;;  %v8429_v35 = vmul.f32 %v8405_v54, %v8405_v54  ;;  %v6669_v38 = vld [vmem:[#allocation5 + $0x78] sm:$0xff] }
 0x189   : > { %6028 = vmatpush3.bf16.msra.mxu0 %v6025_v32  ;;  %9604 = vst [vmem:[#allocation175_spill] sm:$0xff] %v8423_v46  ;;  %v8432_v58 = vsub.f32 %v6665_v16, %v661_v8  ;;  %5213 = vmatmul.mubr.f32.gmra.mrb[50].mxu1 %v1404_v19  ;;  %v1432_v14 = vand.u32 4294901760, %v8423_v46  ;;  %v8437_v52 = vsub.f32 %v8315_v55, %v8340_v37  ;;  %v6666_v32 = vld [vmem:[%s6981_s10 + $0x1f8] sm:$0xff] }
 0x18a   : > { %5600 = vmatmul.mubr.f32.gmra.mrb[52].mxu0 %v1422_v4  ;;  %v8440_v5 = vsub.f32 %v6666_v32, %v664_v23  ;;  %v1414_v22 = vand.u32 4294901760, %v1413_v2  ;;  %v663_v9 = vmul.f32 %v6664_v44, %v599_v12  ;;  %v1423_v54 = vsub.f32 %v8414_v49, %v1422_v4  ;;  %v6667_v2 = vld [vmem:[%s6981_s10 + $0x1f0] sm:$0xff] }
 0x18b   : > { %9605 = vst [vmem:[#allocation176_spill] sm:$0xff] %v8432_v58  ;;  %9606 = vst [vmem:[#allocation177_spill] sm:$0xff] %v8437_v52  ;;  %v789_v16 = vmul.f32 %v8432_v58, %v8432_v58  ;;  %5602 = vmatprep.mubr.f32.mxu0 %v1432_v14  ;;  %v1442_v8 = vand.u32 4294901760, %v8437_v52  ;;  %v1433_v19 = vsub.f32 %v8423_v46, %v1432_v14  ;;  %v8461_v32 = vand.u32 4294901760, %v8429_v35 }
 0x18c   : > { %9607 = vst [vmem:[#allocation178_spill] sm:$0xff] %v8440_v5  ;;  %v8449_v55 = vsub.f32 %v8367_v53, %v8392_v59  ;;  %v792_v23 = vmul.f32 %v8440_v5, %v8440_v5  ;;  %5215 = vmatprep.mubr.f32.mxu1 %v1414_v22  ;;  %v8454_v12 = vsub.f32 %v6667_v2, %v663_v9  ;;  %v1424_v44 = vand.u32 4294901760, %v1423_v54  ;;  %v6668_v2 = vld [vmem:[#allocation5 + $0x70] sm:$0xff] }
 0x18d   : > { %v8458_v4 = vsub.f32 %v8344_v36, %v8379_v56  ;;  %v1434_v14 = vand.u32 4294901760, %v1433_v19  ;;  %v1443_v53 = vsub.f32 %v8437_v52, %v1442_v8  ;;  %v8465_v46 = vand.u32 4294901760, %v789_v16  ;;  %v9614_v5 = vld [vmem:[#allocation17_spill] sm:$0xff] }
 0x18e   : > { %9608 = vst [vmem:[#allocation179_spill] sm:$0xff] %v8449_v55  ;;  %9609 = vst [vmem:[#allocation180_spill] sm:$0xff] %v8454_v12  ;;  %v1452_v58 = vand.u32 4294901760, %v8449_v55  ;;  %v791_v22 = vmul.f32 %v8454_v12, %v8454_v12  ;;  %5216 = vmatmul.mubr.f32.gmra.mrb[52].mxu1 %v1424_v44  ;;  %5603 = vmatmul.mubr.f32.gmra.mrb[54].mxu0 %v1442_v8  ;;  %v8471_v36 = vsub.f32 %v787_v11, %v8416_v50  ;;  %v9616_v12 = vld [vmem:[#allocation18_spill] sm:$0xff] }
 0x18f   : > { %9610 = vst [vmem:[#allocation181_spill] sm:$0xff] %v8458_v4  ;;  %9611 = vst [vmem:[#allocation182_spill] sm:$0xff] %v8465_v46  ;;  %v1462_v54 = vand.u32 4294901760, %v8458_v4  ;;  %v8473_v9 = vand.u32 4294901760, %v792_v23  ;;  %5218 = vmatprep.mubr.f32.mxu1 %v1434_v14  ;;  %v9615_v52 = vand.u32 4294901760, %v9614_v5  ;;  %v9617_v44 = vand.u32 4294901760, %v9616_v12 }
 0x190   : > { %9612 = vst [vmem:[#allocation183_spill] sm:$0xff] %v8471_v36  ;;  %5605 = vmatprep.mubr.f32.mxu0 %v1452_v58  ;;  %v1453_v19 = vsub.f32 %v8449_v55, %v1452_v58  ;;  %v8484_v56 = vand.u32 4294901760, %v791_v22  ;;  %v1444_v11 = vand.u32 4294901760, %v1443_v53  ;;  %v1472_v50 = vand.u32 4294901760, %v8471_v36 }
 0x191   : > { %9613 = vst [vmem:[#allocation184_spill] sm:$0xff] %v8473_v9  ;;  %v8478_v49 = vsub.f32 %v6668_v2, %v9615_v52  ;;  %v8482_v8 = vsub.f32 %v6669_v38, %v9617_v44  ;;  %v1463_v14 = vsub.f32 %v8458_v4, %v1462_v54  ;;  %v8492_v52 = vsub.f32 %v8383_v26, %v8409_v33 }
 0x192   : > { %v1454_v59 = vand.u32 4294901760, %v1453_v19  ;;  %v8495_v5 = vsub.f32 %v791_v22, %v8484_v56  ;;  %5219 = vmatmul.mubr.f32.gmra.mrb[54].mxu1 %v1444_v11  ;;  %5606 = vmatmul.mubr.f32.gmra.mrb[56].mxu0 %v1462_v54  ;;  %v1473_v12 = vsub.f32 %v8471_v36, %v1472_v50  ;;  %v8499_v53 = vsub.f32 %v789_v16, %v8465_v46 }
 0x193   : > { %v1631_v58 = vand.u32 4294901760, %v8478_v49  ;;  %v1638_v55 = vand.u32 4294901760, %v8482_v8  ;;  %9618 = vst [vmem:[#allocation17_spill] sm:$0xff] %v8492_v52  ;;  %v1464_v38 = vand.u32 4294901760, %v1463_v14  ;;  %5608 = vmatprep.mubr.f32.mxu0 %v1472_v50  ;;  %v1482_v26 = vand.u32 4294901760, %v8492_v52 }
 0x194   : > { %9619 = vst [vmem:[#allocation18_spill] sm:$0xff] %v8495_v5  ;;  %9620 = vst [vmem:[#allocation185_spill] sm:$0xff] %v8499_v53  ;;  %5221 = vmatprep.mubr.f32.mxu1 %v1454_v59  ;;  %v1474_v4 = vand.u32 4294901760, %v1473_v12  ;;  %v1492_v22 = vand.u32 4294901760, %v8499_v53  ;;  %v8507_v54 = vsub.f32 %v8429_v35, %v8461_v32  ;;  %v1512_v11 = vand.u32 4294901760, %v8495_v5 }
 0x195   : > { %v1632_v19 = vsub.f32 %v8478_v49, %v1631_v58  ;;  %v1639_v2 = vsub.f32 %v8482_v8, %v1638_v55  ;;  %v6029_v44 = vpack.c.bf16 %v1638_v55, %v1631_v58  ;;  %v8511_v16 = vsub.f32 %v792_v23, %v8473_v9  ;;  %v9623_v23 = vld [vmem:[#allocation22_spill] sm:$0xff]  ;;  %v9624_v9 = vld [vmem:[#allocation23_spill] sm:$0xff] }
 0x196   : > { %9621 = vst [vmem:[#allocation186_spill] sm:$0xff] %v8507_v54  ;;  %v1483_v14 = vsub.f32 %v8492_v52, %v1482_v26  ;;  %5222 = vmatmul.mubr.f32.gmra.mrb[56].mxu1 %v1464_v38  ;;  %5609 = vmatmul.mubr.f32.gmra.mrb[58].mxu0 %v1482_v26  ;;  %v1502_v55 = vand.u32 4294901760, %v8507_v54  ;;  %v1493_v58 = vsub.f32 %v8499_v53, %v1492_v22  ;;  %v9625_v26 = vld [vmem:[#allocation11_spill] sm:$0xff] }
 0x197   : > { %9622 = vst [vmem:[#allocation187_spill] sm:$0xff] %v8511_v16  ;;  %v1633_v59 = vand.u32 4294901760, %v1632_v19  ;;  %v1640_v50 = vand.u32 4294901760, %v1639_v2  ;;  %6030 = vmatprep.subr.bf16.mxu0 %v6029_v44  ;;  %5224 = vmatprep.mubr.f32.mxu1 %v1474_v4  ;;  %v1513_v36 = vsub.f32 %v8495_v5, %v1512_v11  ;;  %v5937_v19 = vpack.c.bf16 %v9624_v9, %v9623_v23  ;;  %v9667_v5 = vld [vmem:[#allocation167_spill] sm:$0xff] }
 0x198   : > { %5611 = vmatprep.mubr.f32.mxu0 %v1492_v22  ;;  %6032 = vmatpush3.bf16.msra.mxu0 %v6029_v44  ;;  %v1494_v35 = vand.u32 4294901760, %v1493_v58  ;;  %v1484_v2 = vand.u32 4294901760, %v1483_v14  ;;  %v1503_v52 = vsub.f32 %v8507_v54, %v1502_v55  ;;  %v1522_v38 = vand.u32 4294901760, %v8511_v16  ;;  %v9630_v14 = vld [vmem:[#allocation33_spill] sm:$0xff]  ;;  %v9668_v54 = vld [vmem:[#allocation174_spill] sm:$0xff]  ;;  %v9669_v53 = vld [vmem:[#allocation184_spill] sm:$0xff] }
 0x199   : > { %v5933_v12 = vpack.c.bf16 %v1640_v50, %v1633_v59  ;;  %6034 = vmatprep.subr.bf16.mxu0 %v9625_v26  ;;  %v1514_v4 = vand.u32 4294901760, %v1513_v36  ;;  %v9626_v36 = vld [vmem:[#allocation30_spill] sm:$0xff]  ;;  %v9628_v59 = vld [vmem:[#allocation12_spill] sm:$0xff]  ;;  %v9631_v58 = vld [vmem:[#allocation13_spill] sm:$0xff] }
 0x19a   : > { %5612 = vmatmul.mubr.f32.gmra.mrb[60].mxu0 %v1502_v55  ;;  %5225 = vmatmul.mubr.f32.gmra.mrb[58].mxu1 %v1484_v2  ;;  %v1504_v44 = vand.u32 4294901760, %v1503_v52  ;;  %v1523_v22 = vsub.f32 %v8511_v16, %v1522_v38  ;;  %v9629_v50 = vld [vmem:[#allocation32_spill] sm:$0xff]  ;;  %v5953_v2 = vpack.c.bf16 %v7407_v3, %v7402_v60  ;;  %v5961_v3 = vpack.c.bf16 %v7534_v47, %v7494_v27  ;;  %v9638_v47 = vld [vmem:[#allocation26_spill] sm:$0xff]  ;;  %v9666_v16 = vld [vmem:[#allocation169_spill] sm:$0xff] }
 0x19b   : > { %5934 = vmatprep.subr.bf16.mxu1 %v5933_v12  ;;  %5614 = vmatprep.mubr.f32.mxu0 %v1512_v11  ;;  %v9627_v11 = vld [vmem:[#allocation31_spill] sm:$0xff]  ;;  %v5945_v55 = vpack.c.bf16 %v9630_v14, %v9629_v50  ;;  %v9636_v60 = vld [vmem:[#allocation16_spill] sm:$0xff]  ;;  %v9639_v27 = vld [vmem:[#allocation82_spill] sm:$0xff] }
 0x19c   : > { %5936 = vmatpush3.bf16.msra.mxu1 %v5933_v12  ;;  %5227 = vmatprep.mubr.f32.mxu1 %v1494_v35  ;;  %v1524_v9 = vand.u32 4294901760, %v1523_v22  ;;  %v5941_v52 = vpack.c.bf16 %v9627_v11, %v9626_v36  ;;  %v9632_v12 = vld [vmem:[#allocation34_spill] sm:$0xff]  ;;  %v9633_v35 = vld [vmem:[#allocation35_spill] sm:$0xff]  ;;  %v9644_v22 = vld [vmem:[#allocation89_spill] sm:$0xff] }
 0x19d   : > { %5938 = vmatprep.subr.bf16.mxu1 %v5937_v19  ;;  %v5949_v23 = vpack.c.bf16 %v9633_v35, %v9632_v12  ;;  %v9646_v36 = vld [vmem:[#allocation94_spill] sm:$0xff]  ;;  %v9647_v11 = vld [vmem:[#allocation103_spill] sm:$0xff] }
 0x19e   : > { %5615 = vmatmul.mubr.f32.gmra.mrb[62].mxu0 %v1522_v38  ;;  %5228 = vmatmul.mubr.f32.gmra.mrb[60].mxu1 %v1504_v44  ;;  %v9635_v38 = vld [vmem:[#allocation15_spill] sm:$0xff]  ;;  %v9650_v50 = vld [vmem:[#allocation106_spill] sm:$0xff] }
 0x19f   : > { %5649 = vmatprep.mubr.f32.mxu0 %v7465_v48  ;;  %5230 = vmatprep.mubr.f32.mxu1 %v1514_v4  ;;  %v9642_v4 = vld [vmem:[#allocation84_spill] sm:$0xff]  ;;  %v9643_v44 = vld [vmem:[#allocation91_spill] sm:$0xff]  ;;  %v9654_v12 = vld [vmem:[#allocation118_spill] sm:$0xff] }
 0x1a0   : > { %v9651_v14 = vld [vmem:[#allocation115_spill] sm:$0xff] }
 0x1a1   : > { %v9655_v35 = vld [vmem:[#allocation127_spill] sm:$0xff] }
 0x1a2   : > { %5650 = vmatmul.mubr.f32.vlgmr.msra.gmra.mrb[0].mxu0 %v7498_v15  ;;  %5231 = vmatmul.mubr.f32.gmra.mrb[62].mxu1 %v1524_v9  ;;  %v9645_v9 = vld [vmem:[#allocation97_spill] sm:$0xff] }
 0x1a3   : > { %5652 = vmatprep.mubr.f32.mxu0 %v7463_v43  ;;  %5265 = vmatprep.mubr.f32.mxu1 %v7465_v48 }
 0x1a4   : > { %6036 = vmatpush3.bf16.msra.mxu0 %v9625_v26  ;;  %v5957_v26 = vpack.c.bf16 %v7421_v30, %v7416_v41  ;;  %v9637_v41 = vld [vmem:[#allocation21_spill] sm:$0xff]  ;;  %v5965_v30 = vpack.c.bf16 %v8482_v8, %v8478_v49  ;;  %v9641_v8 = vld [vmem:[#allocation86_spill] sm:$0xff] }
 0x1a5   : > { %6038 = vmatprep.subr.bf16.mxu0 %v9628_v59  ;;  %v9640_v49 = vld [vmem:[#allocation81_spill] sm:$0xff] }
 0x1a6   : > { %5653 = vmatmul.mubr.f32.gmra.mrb[2].mxu0 %v7496_v0  ;;  %5266 = vmatmul.mubr.f32.vlgmr.msra.gmra.mrb[0].mxu1 %v7498_v15 }
 0x1a7   : > { %5655 = vmatprep.mubr.f32.mxu0 %v7528_v29  ;;  %5940 = vmatpush3.bf16.msra.mxu1 %v5937_v19  ;;  %v9634_v19 = vld [vmem:[#allocation14_spill] sm:$0xff] }
 0x1a8   : > { %5268 = vmatprep.mubr.f32.mxu1 %v7463_v43  ;;  %5942 = vmatprep.subr.bf16.mxu1 %v5941_v52 }
 0x1a9   : > { %6040 = vmatpush3.bf16.msra.mxu0 %v9628_v59  ;;  %v9649_v59 = vld [vmem:[#allocation109_spill] sm:$0xff] }
 0x1aa   : > { %5656 = vmatmul.mubr.f32.gmra.mrb[4].mxu0 %v7536_v61  ;;  %6042 = vmatprep.subr.bf16.mxu0 %v9631_v58 }
 0x1ab   : > { %5269 = vmatmul.mubr.f32.gmra.mrb[2].mxu1 %v7496_v0  ;;  %5658 = vmatprep.mubr.f32.mxu0 %v7551_v20 }
 0x1ac   : > { %5271 = vmatprep.mubr.f32.mxu1 %v7528_v29  ;;  %5944 = vmatpush3.bf16.msra.mxu1 %v5941_v52  ;;  %v9648_v52 = vld [vmem:[#allocation101_spill] sm:$0xff] }
 0x1ad   : > { %5946 = vmatprep.subr.bf16.mxu1 %v5945_v55  ;;  %6044 = vmatpush3.bf16.msra.mxu0 %v9631_v58  ;;  %v9653_v58 = vld [vmem:[#allocation121_spill] sm:$0xff] }
 0x1ae   : > { %5659 = vmatmul.mubr.f32.gmra.mrb[6].mxu0 %v7574_v31  ;;  %6046 = vmatprep.subr.bf16.mxu0 %v9634_v19 }
 0x1af   : > { %5272 = vmatmul.mubr.f32.gmra.mrb[4].mxu1 %v7536_v61  ;;  %5661 = vmatprep.mubr.f32.mxu0 %v7593_v21 }
 0x1b0   : > { %5274 = vmatprep.mubr.f32.mxu1 %v7551_v20  ;;  %5948 = vmatpush3.bf16.msra.mxu1 %v5945_v55  ;;  %v9652_v55 = vld [vmem:[#allocation113_spill] sm:$0xff] }
 0x1b1   : > { %5950 = vmatprep.subr.bf16.mxu1 %v5949_v23  ;;  %6048 = vmatpush3.bf16.msra.mxu0 %v9634_v19  ;;  %v9657_v19 = vld [vmem:[#allocation133_spill] sm:$0xff] }
 0x1b2   : > { %5662 = vmatmul.mubr.f32.gmra.mrb[8].mxu0 %v7576_v24  ;;  %6050 = vmatprep.subr.bf16.mxu0 %v9635_v38 }
 0x1b3   : > { %5275 = vmatmul.mubr.f32.gmra.mrb[6].mxu1 %v7574_v31  ;;  %5664 = vmatprep.mubr.f32.mxu0 %v7639_v25 }
 0x1b4   : > { %5277 = vmatprep.mubr.f32.mxu1 %v7593_v21  ;;  %5952 = vmatpush3.bf16.msra.mxu1 %v5949_v23  ;;  %v9656_v23 = vld [vmem:[#allocation125_spill] sm:$0xff] }
 0x1b5   : > { %5954 = vmatprep.subr.bf16.mxu1 %v5953_v2  ;;  %6052 = vmatpush3.bf16.msra.mxu0 %v9635_v38  ;;  %v9659_v38 = vld [vmem:[#allocation139_spill] sm:$0xff] }
 0x1b6   : > { %5665 = vmatmul.mubr.f32.gmra.mrb[10].mxu0 %v7636_v7  ;;  %6054 = vmatprep.subr.bf16.mxu0 %v9636_v60 }
 0x1b7   : > { %5278 = vmatmul.mubr.f32.gmra.mrb[8].mxu1 %v7576_v24  ;;  %5667 = vmatprep.mubr.f32.mxu0 %v7662_v51 }
 0x1b8   : > { %5280 = vmatprep.mubr.f32.mxu1 %v7639_v25  ;;  %5956 = vmatpush3.bf16.msra.mxu1 %v5953_v2  ;;  %v9658_v2 = vld [vmem:[#allocation130_spill] sm:$0xff] }
 0x1b9   : > { %5958 = vmatprep.subr.bf16.mxu1 %v5957_v26  ;;  %6056 = vmatpush3.bf16.msra.mxu0 %v9636_v60  ;;  %v9661_v60 = vld [vmem:[#allocation145_spill] sm:$0xff] }
 0x1ba   : > { %5668 = vmatmul.mubr.f32.gmra.mrb[12].mxu0 %v7660_v40  ;;  %6058 = vmatprep.subr.bf16.mxu0 %v9637_v41 }
 0x1bb   : > { %5281 = vmatmul.mubr.f32.gmra.mrb[10].mxu1 %v7636_v7  ;;  %5670 = vmatprep.mubr.f32.mxu0 %v7718_v42 }
 0x1bc   : > { %5283 = vmatprep.mubr.f32.mxu1 %v7662_v51  ;;  %5960 = vmatpush3.bf16.msra.mxu1 %v5957_v26  ;;  %v9660_v26 = vld [vmem:[#allocation137_spill] sm:$0xff] }
 0x1bd   : > { %5962 = vmatprep.subr.bf16.mxu1 %v5961_v3  ;;  %6060 = vmatpush3.bf16.msra.mxu0 %v9637_v41  ;;  %v9663_v41 = vld [vmem:[#allocation151_spill] sm:$0xff] }
 0x1be   : > { %5671 = vmatmul.mubr.f32.gmra.mrb[14].mxu0 %v7674_v10  ;;  %6062 = vmatprep.subr.bf16.mxu0 %v9638_v47 }
 0x1bf   : > { %5284 = vmatmul.mubr.f32.gmra.mrb[12].mxu1 %v7660_v40  ;;  %5673 = vmatprep.mubr.f32.mxu0 %v7738_v13 }
 0x1c0   : > { %5286 = vmatprep.mubr.f32.mxu1 %v7718_v42  ;;  %5964 = vmatpush3.bf16.msra.mxu1 %v5961_v3  ;;  %v9662_v3 = vld [vmem:[#allocation142_spill] sm:$0xff] }
 0x1c1   : > { %5966 = vmatprep.subr.bf16.mxu1 %v5965_v30  ;;  %6064 = vmatpush3.bf16.msra.mxu0 %v9638_v47  ;;  %v9665_v47 = vld [vmem:[#allocation156_spill] sm:$0xff] }
 0x1c2   : > { %5674 = vmatmul.mubr.f32.gmra.mrb[16].mxu0 %v7724_v6 }
 0x1c3   : > { %5287 = vmatmul.mubr.f32.gmra.mrb[14].mxu1 %v7674_v10  ;;  %5676 = vmatprep.mubr.f32.mxu0 %v7778_v17 }
 0x1c4   : > { %5289 = vmatprep.mubr.f32.mxu1 %v7738_v13  ;;  %5968 = vmatpush3.bf16.msra.mxu1 %v5965_v30  ;;  %v9664_v30 = vld [vmem:[#allocation149_spill] sm:$0xff] }
 0x1c6   : > { %5677 = vmatmul.mubr.f32.gmra.mrb[18].mxu0 %v7754_v57 }
 0x1c7   : > { %5290 = vmatmul.mubr.f32.gmra.mrb[16].mxu1 %v7724_v6  ;;  %5679 = vmatprep.mubr.f32.mxu0 %v7800_v18 }
 0x1c8   : > { %5292 = vmatprep.mubr.f32.mxu1 %v7778_v17 }
 0x1ca   : > { %5680 = vmatmul.mubr.f32.gmra.mrb[20].mxu0 %v7784_v28 }
 0x1cb   : > { %5293 = vmatmul.mubr.f32.gmra.mrb[18].mxu1 %v7754_v57  ;;  %5682 = vmatprep.mubr.f32.mxu0 %v7834_v45 }
 0x1cc   : > { %5295 = vmatprep.mubr.f32.mxu1 %v7800_v18 }
 0x1ce   : > { %5683 = vmatmul.mubr.f32.gmra.mrb[22].mxu0 %v7820_v34 }
 0x1cf   : > { %5296 = vmatmul.mubr.f32.gmra.mrb[20].mxu1 %v7784_v28  ;;  %5685 = vmatprep.mubr.f32.mxu0 %v9639_v27 }
 0x1d0   : > { %5298 = vmatprep.mubr.f32.mxu1 %v7834_v45 }
 0x1d2   : > { %5686 = vmatmul.mubr.f32.gmra.mrb[24].mxu0 %v9640_v49 }
 0x1d3   : > { %5299 = vmatmul.mubr.f32.gmra.mrb[22].mxu1 %v7820_v34  ;;  %5688 = vmatprep.mubr.f32.mxu0 %v9641_v8 }
 0x1d4   : > { %5301 = vmatprep.mubr.f32.mxu1 %v9639_v27 }
 0x1d6   : > { %5689 = vmatmul.mubr.f32.gmra.mrb[26].mxu0 %v9642_v4 }
 0x1d7   : > { %5302 = vmatmul.mubr.f32.gmra.mrb[24].mxu1 %v9640_v49  ;;  %5691 = vmatprep.mubr.f32.mxu0 %v9643_v44 }
 0x1d8   : > { %5304 = vmatprep.mubr.f32.mxu1 %v9641_v8 }
 0x1da   : > { %5692 = vmatmul.mubr.f32.gmra.mrb[28].mxu0 %v9644_v22 }
 0x1db   : > { %5305 = vmatmul.mubr.f32.gmra.mrb[26].mxu1 %v9642_v4  ;;  %5694 = vmatprep.mubr.f32.mxu0 %v9645_v9 }
 0x1dc   : > { %5307 = vmatprep.mubr.f32.mxu1 %v9643_v44 }
 0x1de   : > { %5695 = vmatmul.mubr.f32.gmra.mrb[30].mxu0 %v9646_v36 }
 0x1df   : > { %5308 = vmatmul.mubr.f32.gmra.mrb[28].mxu1 %v9644_v22  ;;  %5697 = vmatprep.mubr.f32.mxu0 %v9647_v11 }
 0x1e0   : > { %5310 = vmatprep.mubr.f32.mxu1 %v9645_v9 }
 0x1e2   : > { %5698 = vmatmul.mubr.f32.gmra.mrb[32].mxu0 %v9648_v52 }
 0x1e3   : > { %5311 = vmatmul.mubr.f32.gmra.mrb[30].mxu1 %v9646_v36  ;;  %5700 = vmatprep.mubr.f32.mxu0 %v9649_v59 }
 0x1e4   : > { %5313 = vmatprep.mubr.f32.mxu1 %v9647_v11 }
 0x1e6   : > { %5701 = vmatmul.mubr.f32.gmra.mrb[34].mxu0 %v9650_v50 }
 0x1e7   : > { %5314 = vmatmul.mubr.f32.gmra.mrb[32].mxu1 %v9648_v52  ;;  %5703 = vmatprep.mubr.f32.mxu0 %v9651_v14 }
 0x1e8   : > { %5316 = vmatprep.mubr.f32.mxu1 %v9649_v59 }
 0x1ea   : > { %5704 = vmatmul.mubr.f32.gmra.mrb[36].mxu0 %v9652_v55 }
 0x1eb   : > { %5317 = vmatmul.mubr.f32.gmra.mrb[34].mxu1 %v9650_v50  ;;  %5706 = vmatprep.mubr.f32.mxu0 %v9653_v58 }
 0x1ec   : > { %5319 = vmatprep.mubr.f32.mxu1 %v9651_v14 }
 0x1ee   : > { %5707 = vmatmul.mubr.f32.gmra.mrb[38].mxu0 %v9654_v12 }
 0x1ef   : > { %5320 = vmatmul.mubr.f32.gmra.mrb[36].mxu1 %v9652_v55  ;;  %5709 = vmatprep.mubr.f32.mxu0 %v9655_v35 }
 0x1f0   : > { %5322 = vmatprep.mubr.f32.mxu1 %v9653_v58 }
 0x1f2   : > { %5710 = vmatmul.mubr.f32.gmra.mrb[40].mxu0 %v9656_v23 }
 0x1f3   : > { %5323 = vmatmul.mubr.f32.gmra.mrb[38].mxu1 %v9654_v12  ;;  %5712 = vmatprep.mubr.f32.mxu0 %v9657_v19 }
 0x1f4   : > { %5325 = vmatprep.mubr.f32.mxu1 %v9655_v35 }
 0x1f6   : > { %5713 = vmatmul.mubr.f32.gmra.mrb[42].mxu0 %v9658_v2 }
 0x1f7   : > { %5326 = vmatmul.mubr.f32.gmra.mrb[40].mxu1 %v9656_v23  ;;  %5715 = vmatprep.mubr.f32.mxu0 %v9659_v38 }
 0x1f8   : > { %5328 = vmatprep.mubr.f32.mxu1 %v9657_v19 }
 0x1fa   : > { %5716 = vmatmul.mubr.f32.gmra.mrb[44].mxu0 %v9660_v26 }
 0x1fb   : > { %5329 = vmatmul.mubr.f32.gmra.mrb[42].mxu1 %v9658_v2  ;;  %5718 = vmatprep.mubr.f32.mxu0 %v9661_v60 }
 0x1fc   : > { %5331 = vmatprep.mubr.f32.mxu1 %v9659_v38 }
 0x1fe   : > { %5719 = vmatmul.mubr.f32.gmra.mrb[46].mxu0 %v9662_v3 }
 0x1ff   : > { %5332 = vmatmul.mubr.f32.gmra.mrb[44].mxu1 %v9660_v26  ;;  %5721 = vmatprep.mubr.f32.mxu0 %v9663_v41 }
 0x200   : > { %5334 = vmatprep.mubr.f32.mxu1 %v9661_v60 }
 0x202   : > { %5722 = vmatmul.mubr.f32.gmra.mrb[48].mxu0 %v9664_v30 }
 0x203   : > { %5335 = vmatmul.mubr.f32.gmra.mrb[46].mxu1 %v9662_v3  ;;  %5724 = vmatprep.mubr.f32.mxu0 %v9665_v47 }
 0x204   : > { %5337 = vmatprep.mubr.f32.mxu1 %v9663_v41 }
 0x206   : > { %5725 = vmatmul.mubr.f32.gmra.mrb[50].mxu0 %v8273_v1 }
 0x207   : > { %5338 = vmatmul.mubr.f32.gmra.mrb[48].mxu1 %v9664_v30  ;;  %5727 = vmatprep.mubr.f32.mxu0 %v8324_v63 }
 0x208   : > { %5340 = vmatprep.mubr.f32.mxu1 %v9665_v47 }
 0x20a   : > { %5728 = vmatmul.mubr.f32.gmra.mrb[52].mxu0 %v8311_v62 }
 0x20b   : > { %5341 = vmatmul.mubr.f32.gmra.mrb[50].mxu1 %v8273_v1  ;;  %5730 = vmatprep.mubr.f32.mxu0 %v8356_v39 }
 0x20c   : > { %5343 = vmatprep.mubr.f32.mxu1 %v8324_v63 }
 0x20e   : > { %5731 = vmatmul.mubr.f32.gmra.mrb[54].mxu0 %v8340_v37 }
 0x20f   : > { %5344 = vmatmul.mubr.f32.gmra.mrb[52].mxu1 %v8311_v62  ;;  %5733 = vmatprep.mubr.f32.mxu0 %v9666_v16 }
 0x210   : > { %5346 = vmatprep.mubr.f32.mxu1 %v8356_v39 }
 0x212   : > { %5734 = vmatmul.mubr.f32.gmra.mrb[56].mxu0 %v9667_v5 }
 0x213   : > { %5347 = vmatmul.mubr.f32.gmra.mrb[54].mxu1 %v8340_v37  ;;  %5736 = vmatprep.mubr.f32.mxu0 %v9668_v54 }
 0x214   : > { %5349 = vmatprep.mubr.f32.mxu1 %v9666_v16 }
 0x216   : > { %5737 = vmatmul.mubr.f32.gmra.mrb[58].mxu0 %v8409_v33 }
 0x217   : > { %5350 = vmatmul.mubr.f32.gmra.mrb[56].mxu1 %v9667_v5  ;;  %5739 = vmatprep.mubr.f32.mxu0 %v8465_v46 }
 0x218   : > { %5352 = vmatprep.mubr.f32.mxu1 %v9668_v54  ;;  %v9670_v54 = vld [vmem:[#allocation40_spill] sm:$0xff] }
 0x21a   : > { %5740 = vmatmul.mubr.f32.gmra.mrb[60].mxu0 %v8461_v32 }
 0x21b   : > { %5353 = vmatmul.mubr.f32.gmra.mrb[58].mxu1 %v8409_v33  ;;  %5742 = vmatprep.mubr.f32.mxu0 %v8484_v56  ;;  %v9671_v33 = vld [vmem:[#allocation44_spill] sm:$0xff] }
 0x21c   : > { %5355 = vmatprep.mubr.f32.mxu1 %v8465_v46  ;;  %v9672_v46 = vld [vmem:[#allocation41_spill] sm:$0xff] }
 0x21e   : > { %5743 = vmatmul.mubr.f32.gmra.mrb[62].mxu0 %v9669_v53 }
 0x21f   : > { %5356 = vmatmul.mubr.f32.gmra.mrb[60].mxu1 %v8461_v32  ;;  %5777 = vmatprep.mubr.f32.mxu0 %v7465_v48  ;;  %v9673_v48 = vld [vmem:[#allocation45_spill] sm:$0xff] }
 0x220   : > { %5358 = vmatprep.mubr.f32.mxu1 %v8484_v56 }
 0x222   : > { %5778 = vmatmul.mubr.f32.vlgmr.msra.gmra.mrb[0].mxu0 %v7498_v15  ;;  %v9674_v15 = vld [vmem:[#allocation48_spill] sm:$0xff] }
 0x223   : > { %5359 = vmatmul.mubr.f32.gmra.mrb[62].mxu1 %v9669_v53  ;;  %5780 = vmatprep.mubr.f32.mxu0 %v7463_v43  ;;  %v9675_v43 = vld [vmem:[#allocation51_spill] sm:$0xff] }
 0x224   : > { %5393 = vmatprep.mubr.f32.mxu1 %v9670_v54  ;;  %v9699_v54 = vld [vmem:[#allocation105_spill] sm:$0xff] }
 0x226   : > { %5781 = vmatmul.mubr.f32.gmra.mrb[2].mxu0 %v7496_v0  ;;  %v9676_v0 = vld [vmem:[#allocation54_spill] sm:$0xff] }
 0x227   : > { %5394 = vmatmul.mubr.f32.vlgmr.msra.gmra.mrb[0].mxu1 %v9671_v33  ;;  %5783 = vmatprep.mubr.f32.mxu0 %v7528_v29  ;;  %v9677_v29 = vld [vmem:[#allocation57_spill] sm:$0xff]  ;;  %v9697_v33 = vld [vmem:[#allocation98_spill] sm:$0xff] }
 0x228   : > { %5396 = vmatprep.mubr.f32.mxu1 %v9672_v46  ;;  %v9698_v46 = vld [vmem:[#allocation100_spill] sm:$0xff] }
 0x22a   : > { %5784 = vmatmul.mubr.f32.gmra.mrb[4].mxu0 %v7536_v61  ;;  %v9678_v61 = vld [vmem:[#allocation58_spill] sm:$0xff] }
 0x22b   : > { %5397 = vmatmul.mubr.f32.gmra.mrb[2].mxu1 %v9673_v48  ;;  %5786 = vmatprep.mubr.f32.mxu0 %v7551_v20  ;;  %v9679_v20 = vld [vmem:[#allocation59_spill] sm:$0xff]  ;;  %v9734_v48 = vld [vmem:[#allocation186_spill] sm:$0xff] }
 0x22c   : > { %5399 = vmatprep.mubr.f32.mxu1 %v9674_v15  ;;  %v9735_v15 = vld [vmem:[#allocation18_spill] sm:$0xff] }
 0x22e   : > { %5787 = vmatmul.mubr.f32.gmra.mrb[6].mxu0 %v7574_v31  ;;  %v9680_v31 = vld [vmem:[#allocation63_spill] sm:$0xff] }
 0x22f   : > { %5400 = vmatmul.mubr.f32.gmra.mrb[4].mxu1 %v9675_v43  ;;  %5789 = vmatprep.mubr.f32.mxu0 %v7593_v21  ;;  %v9681_v21 = vld [vmem:[#allocation65_spill] sm:$0xff]  ;;  %v9736_v43 = vld [vmem:[#allocation187_spill] sm:$0xff] }
 0x230   : > { %5402 = vmatprep.mubr.f32.mxu1 %v9676_v0 }
 0x232   : > { %5790 = vmatmul.mubr.f32.gmra.mrb[8].mxu0 %v7576_v24  ;;  %v9682_v24 = vld [vmem:[#allocation66_spill] sm:$0xff] }
 0x233   : > { %5403 = vmatmul.mubr.f32.gmra.mrb[6].mxu1 %v9677_v29  ;;  %5792 = vmatprep.mubr.f32.mxu0 %v7639_v25  ;;  %v9683_v25 = vld [vmem:[#allocation69_spill] sm:$0xff] }
 0x234   : > { %5405 = vmatprep.mubr.f32.mxu1 %v9678_v61 }
 0x236   : > { %5793 = vmatmul.mubr.f32.gmra.mrb[10].mxu0 %v7636_v7  ;;  %v9684_v7 = vld [vmem:[#allocation71_spill] sm:$0xff] }
 0x237   : > { %5406 = vmatmul.mubr.f32.gmra.mrb[8].mxu1 %v9679_v20  ;;  %5795 = vmatprep.mubr.f32.mxu0 %v7662_v51  ;;  %v9685_v51 = vld [vmem:[#allocation74_spill] sm:$0xff] }
 0x238   : > { %5408 = vmatprep.mubr.f32.mxu1 %v9680_v31 }
 0x23a   : > { %5796 = vmatmul.mubr.f32.gmra.mrb[12].mxu0 %v7660_v40  ;;  %v9686_v40 = vld [vmem:[#allocation76_spill] sm:$0xff] }
 0x23b   : > { %5409 = vmatmul.mubr.f32.gmra.mrb[10].mxu1 %v9681_v21  ;;  %5798 = vmatprep.mubr.f32.mxu0 %v7718_v42  ;;  %v9687_v42 = vld [vmem:[#allocation77_spill] sm:$0xff] }
 0x23c   : > { %5411 = vmatprep.mubr.f32.mxu1 %v9682_v24 }
 0x23e   : > { %5799 = vmatmul.mubr.f32.gmra.mrb[14].mxu0 %v7674_v10  ;;  %v9688_v10 = vld [vmem:[#allocation78_spill] sm:$0xff] }
 0x23f   : > { %5412 = vmatmul.mubr.f32.gmra.mrb[12].mxu1 %v9683_v25  ;;  %5801 = vmatprep.mubr.f32.mxu0 %v7738_v13  ;;  %v9689_v13 = vld [vmem:[#allocation79_spill] sm:$0xff] }
 0x240   : > { %5414 = vmatprep.mubr.f32.mxu1 %v9684_v7 }
 0x242   : > { %5802 = vmatmul.mubr.f32.gmra.mrb[16].mxu0 %v7724_v6  ;;  %v9690_v6 = vld [vmem:[#allocation80_spill] sm:$0xff] }
 0x243   : > { %5415 = vmatmul.mubr.f32.gmra.mrb[14].mxu1 %v9685_v51  ;;  %5804 = vmatprep.mubr.f32.mxu0 %v7778_v17  ;;  %v9691_v17 = vld [vmem:[#allocation83_spill] sm:$0xff] }
 0x244   : > { %5417 = vmatprep.mubr.f32.mxu1 %v9686_v40 }
 0x246   : > { %5805 = vmatmul.mubr.f32.gmra.mrb[18].mxu0 %v7754_v57  ;;  %v9692_v57 = vld [vmem:[#allocation85_spill] sm:$0xff] }
 0x247   : > { %5418 = vmatmul.mubr.f32.gmra.mrb[16].mxu1 %v9687_v42  ;;  %5807 = vmatprep.mubr.f32.mxu0 %v7800_v18  ;;  %v9693_v18 = vld [vmem:[#allocation87_spill] sm:$0xff] }
 0x248   : > { %5420 = vmatprep.mubr.f32.mxu1 %v9688_v10 }
 0x24a   : > { %5808 = vmatmul.mubr.f32.gmra.mrb[20].mxu0 %v7784_v28  ;;  %v9694_v28 = vld [vmem:[#allocation88_spill] sm:$0xff] }
 0x24b   : > { %5421 = vmatmul.mubr.f32.gmra.mrb[18].mxu1 %v9689_v13  ;;  %5810 = vmatprep.mubr.f32.mxu0 %v7834_v45  ;;  %v9695_v45 = vld [vmem:[#allocation93_spill] sm:$0xff] }
 0x24c   : > { %5423 = vmatprep.mubr.f32.mxu1 %v9690_v6 }
 0x24e   : > { %5811 = vmatmul.mubr.f32.gmra.mrb[22].mxu0 %v7820_v34  ;;  %v9696_v34 = vld [vmem:[#allocation95_spill] sm:$0xff] }
 0x24f   : > { %5424 = vmatmul.mubr.f32.gmra.mrb[20].mxu1 %v9691_v17  ;;  %5813 = vmatprep.mubr.f32.mxu0 %v9639_v27  ;;  %v9700_v27 = vld [vmem:[#allocation107_spill] sm:$0xff] }
 0x250   : > { %5426 = vmatprep.mubr.f32.mxu1 %v9692_v57 }
 0x252   : > { %5814 = vmatmul.mubr.f32.gmra.mrb[24].mxu0 %v9640_v49  ;;  %v9701_v49 = vld [vmem:[#allocation110_spill] sm:$0xff] }
 0x253   : > { %5427 = vmatmul.mubr.f32.gmra.mrb[22].mxu1 %v9693_v18  ;;  %5816 = vmatprep.mubr.f32.mxu0 %v9641_v8  ;;  %v9702_v8 = vld [vmem:[#allocation112_spill] sm:$0xff] }
 0x254   : > { %5429 = vmatprep.mubr.f32.mxu1 %v9694_v28 }
 0x256   : > { %5817 = vmatmul.mubr.f32.gmra.mrb[26].mxu0 %v9642_v4  ;;  %v9703_v4 = vld [vmem:[#allocation117_spill] sm:$0xff] }
 0x257   : > { %5430 = vmatmul.mubr.f32.gmra.mrb[24].mxu1 %v9695_v45  ;;  %5819 = vmatprep.mubr.f32.mxu0 %v9643_v44  ;;  %v9704_v44 = vld [vmem:[#allocation119_spill] sm:$0xff] }
 0x258   : > { %5432 = vmatprep.mubr.f32.mxu1 %v9696_v34 }
 0x25a   : > { %5820 = vmatmul.mubr.f32.gmra.mrb[28].mxu0 %v9644_v22  ;;  %v9705_v22 = vld [vmem:[#allocation122_spill] sm:$0xff] }
 0x25b   : > { %5433 = vmatmul.mubr.f32.gmra.mrb[26].mxu1 %v9697_v33  ;;  %5822 = vmatprep.mubr.f32.mxu0 %v9645_v9  ;;  %v9706_v9 = vld [vmem:[#allocation124_spill] sm:$0xff] }
 0x25c   : > { %5435 = vmatprep.mubr.f32.mxu1 %v9698_v46 }
 0x25e   : > { %5823 = vmatmul.mubr.f32.gmra.mrb[30].mxu0 %v9646_v36  ;;  %v9707_v36 = vld [vmem:[#allocation129_spill] sm:$0xff] }
 0x25f   : > { %5436 = vmatmul.mubr.f32.gmra.mrb[28].mxu1 %v9699_v54  ;;  %5825 = vmatprep.mubr.f32.mxu0 %v9647_v11  ;;  %v9708_v11 = vld [vmem:[#allocation131_spill] sm:$0xff] }
 0x260   : > { %5438 = vmatprep.mubr.f32.mxu1 %v9700_v27 }
 0x262   : > { %5826 = vmatmul.mubr.f32.gmra.mrb[32].mxu0 %v9648_v52  ;;  %v9709_v52 = vld [vmem:[#allocation134_spill] sm:$0xff] }
 0x263   : > { %5439 = vmatmul.mubr.f32.gmra.mrb[30].mxu1 %v9701_v49  ;;  %5828 = vmatprep.mubr.f32.mxu0 %v9649_v59  ;;  %v9710_v59 = vld [vmem:[#allocation136_spill] sm:$0xff] }
 0x264   : > { %5441 = vmatprep.mubr.f32.mxu1 %v9702_v8 }
 0x266   : > { %5829 = vmatmul.mubr.f32.gmra.mrb[34].mxu0 %v9650_v50  ;;  %v9711_v50 = vld [vmem:[#allocation141_spill] sm:$0xff] }
 0x267   : > { %5442 = vmatmul.mubr.f32.gmra.mrb[32].mxu1 %v9703_v4  ;;  %5831 = vmatprep.mubr.f32.mxu0 %v9651_v14  ;;  %v9712_v14 = vld [vmem:[#allocation143_spill] sm:$0xff] }
 0x268   : > { %5444 = vmatprep.mubr.f32.mxu1 %v9704_v44 }
 0x26a   : > { %5832 = vmatmul.mubr.f32.gmra.mrb[36].mxu0 %v9652_v55  ;;  %v9713_v55 = vld [vmem:[#allocation146_spill] sm:$0xff] }
 0x26b   : > { %5445 = vmatmul.mubr.f32.gmra.mrb[34].mxu1 %v9705_v22  ;;  %5834 = vmatprep.mubr.f32.mxu0 %v9653_v58  ;;  %v9714_v58 = vld [vmem:[#allocation148_spill] sm:$0xff] }
 0x26c   : > { %5447 = vmatprep.mubr.f32.mxu1 %v9706_v9  ;;  %v8811_v9 = vld [vmem:[%s9153_s3] ss:$0 sm:$0xff] }
 0x26e   : > { %5835 = vmatmul.mubr.f32.gmra.mrb[38].mxu0 %v9654_v12  ;;  %v9715_v12 = vld [vmem:[#allocation153_spill] sm:$0xff] }
 0x26f   : > { %5448 = vmatmul.mubr.f32.gmra.mrb[36].mxu1 %v9707_v36  ;;  %5837 = vmatprep.mubr.f32.mxu0 %v9655_v35  ;;  %v9716_v35 = vld [vmem:[#allocation154_spill] sm:$0xff] }
 0x270   : > { %5450 = vmatprep.mubr.f32.mxu1 %v9708_v11 }
 0x272   : > { %5838 = vmatmul.mubr.f32.gmra.mrb[40].mxu0 %v9656_v23  ;;  %v9717_v23 = vld [vmem:[#allocation157_spill] sm:$0xff] }
 0x273   : > { %5451 = vmatmul.mubr.f32.gmra.mrb[38].mxu1 %v9709_v52  ;;  %5840 = vmatprep.mubr.f32.mxu0 %v9657_v19  ;;  %v9718_v19 = vld [vmem:[#allocation159_spill] sm:$0xff] }
 0x274   : > { %5453 = vmatprep.mubr.f32.mxu1 %v9710_v59  ;;  %v9737_v59 = vld [vmem:[#allocation39_spill] sm:$0xff] }
 0x276   : > { %5841 = vmatmul.mubr.f32.gmra.mrb[42].mxu0 %v9658_v2  ;;  %v9719_v2 = vld [vmem:[#allocation162_spill] sm:$0xff] }
 0x277   : > { %5454 = vmatmul.mubr.f32.gmra.mrb[40].mxu1 %v9711_v50  ;;  %5843 = vmatprep.mubr.f32.mxu0 %v9659_v38  ;;  %v9720_v38 = vld [vmem:[#allocation163_spill] sm:$0xff] }
 0x278   : > { %5456 = vmatprep.mubr.f32.mxu1 %v9712_v14 }
 0x27a   : > { %5844 = vmatmul.mubr.f32.gmra.mrb[44].mxu0 %v9660_v26  ;;  %v9721_v26 = vld [vmem:[#allocation166_spill] sm:$0xff] }
 0x27b   : > { %5457 = vmatmul.mubr.f32.gmra.mrb[42].mxu1 %v9713_v55  ;;  %5846 = vmatprep.mubr.f32.mxu0 %v9661_v60  ;;  %v9722_v60 = vld [vmem:[#allocation170_spill] sm:$0xff] }
 0x27c   : > { %5459 = vmatprep.mubr.f32.mxu1 %v9714_v58 }
 0x27e   : > { %5847 = vmatmul.mubr.f32.gmra.mrb[46].mxu0 %v9662_v3  ;;  %v9723_v3 = vld [vmem:[#allocation173_spill] sm:$0xff] }
 0x27f   : > { %5460 = vmatmul.mubr.f32.gmra.mrb[44].mxu1 %v9715_v12  ;;  %5849 = vmatprep.mubr.f32.mxu0 %v9663_v41  ;;  %v9726_v41 = vld [vmem:[#allocation174_spill] sm:$0xff]  ;;  %v8817_v12 = vld [vmem:[%s9154_s4] ss:$0 sm:$0xff] }
 0x280   : > { %5462 = vmatprep.mubr.f32.mxu1 %v9716_v35  ;;  %v9738_v35 = vld [vmem:[#allocation37_spill] sm:$0xff] }
 0x282   : > { %5850 = vmatmul.mubr.f32.gmra.mrb[48].mxu0 %v9664_v30  ;;  %v9728_v30 = vld [vmem:[#allocation172_spill] sm:$0xff] }
 0x283   : > { %5463 = vmatmul.mubr.f32.gmra.mrb[46].mxu1 %v9717_v23  ;;  %5852 = vmatprep.mubr.f32.mxu0 %v9665_v47  ;;  %v9730_v47 = vld [vmem:[#allocation182_spill] sm:$0xff] }
 0x284   : > { %5465 = vmatprep.mubr.f32.mxu1 %v9718_v19 }
 0x286   : > { %5853 = vmatmul.mubr.f32.gmra.mrb[50].mxu0 %v8273_v1  ;;  %v9724_v1 = vld [vmem:[#allocation175_spill] sm:$0xff] }
 0x287   : > { %5466 = vmatmul.mubr.f32.gmra.mrb[48].mxu1 %v9719_v2  ;;  %5855 = vmatprep.mubr.f32.mxu0 %v8324_v63  ;;  %v9725_v63 = vld [vmem:[#allocation177_spill] sm:$0xff] }
 0x288   : > { %5468 = vmatprep.mubr.f32.mxu1 %v9720_v38 }
 0x28a   : > { %5856 = vmatmul.mubr.f32.gmra.mrb[52].mxu0 %v8311_v62  ;;  %v9727_v62 = vld [vmem:[#allocation179_spill] sm:$0xff] }
 0x28b   : > { %5469 = vmatmul.mubr.f32.gmra.mrb[50].mxu1 %v9721_v26  ;;  %5858 = vmatprep.mubr.f32.mxu0 %v8356_v39  ;;  %v9729_v39 = vld [vmem:[#allocation181_spill] sm:$0xff] }
 0x28c   : > { %5471 = vmatprep.mubr.f32.mxu1 %v9722_v60 }
 0x28e   : > { %5859 = vmatmul.mubr.f32.gmra.mrb[54].mxu0 %v8340_v37  ;;  %v9731_v37 = vld [vmem:[#allocation183_spill] sm:$0xff] }
 0x28f   : > { %5472 = vmatmul.mubr.f32.gmra.mrb[52].mxu1 %v9723_v3  ;;  %5861 = vmatprep.mubr.f32.mxu0 %v9666_v16  ;;  %v9732_v16 = vld [vmem:[#allocation17_spill] sm:$0xff] }
 0x290   : > { %5474 = vmatprep.mubr.f32.mxu1 %v9724_v1 }
 0x292   : > { %5862 = vmatmul.mubr.f32.gmra.mrb[56].mxu0 %v9667_v5  ;;  %v9733_v5 = vld [vmem:[#allocation185_spill] sm:$0xff] }
 0x293   : > { %5475 = vmatmul.mubr.f32.gmra.mrb[54].mxu1 %v9725_v63  ;;  %5864 = vmatprep.mubr.f32.mxu0 %v9726_v41 }
 0x294   : > { %5477 = vmatprep.mubr.f32.mxu1 %v9727_v62 }
 0x296   : > { %5865 = vmatmul.mubr.f32.gmra.mrb[58].mxu0 %v9728_v30  ;;  %v9739_v30 = vld [vmem:[#allocation38_spill] sm:$0xff] }
 0x297   : > { %5478 = vmatmul.mubr.f32.gmra.mrb[56].mxu1 %v9729_v39  ;;  %5867 = vmatprep.mubr.f32.mxu0 %v9730_v47 }
 0x298   : > { %5480 = vmatprep.mubr.f32.mxu1 %v9731_v37 }
 0x29a   : > { %5868 = vmatmul.mubr.f32.gmra.mrb[60].mxu0 %v8461_v32 }
 0x29b   : > { %5481 = vmatmul.mubr.f32.gmra.mrb[58].mxu1 %v9732_v16  ;;  %5870 = vmatprep.mubr.f32.mxu0 %v8484_v56 }
 0x29c   : > { %5483 = vmatprep.mubr.f32.mxu1 %v9733_v5 }
 0x29e   : > { %5871 = vmatmul.mubr.f32.gmra.mrb[62].mxu0 %v9669_v53 }
 0x29f   : > { %5484 = vmatmul.mubr.f32.gmra.mrb[60].mxu1 %v9734_v48  ;;  %v9740_v48 = vld [vmem:[#allocation36_spill] sm:$0xff] }
 0x2a0   : > { %5486 = vmatprep.mubr.f32.mxu1 %v9735_v15 }
 0x2a3   : > { %5487 = vmatmul.mubr.f32.gmra.mrb[62].mxu1 %v9736_v43 }
 0x2f5   : > { %v5779_v0 = vpop.f32.mrb[0].mxu0 }
 0x2f6   : > { %v3777_v29 = vpop.f32.mrb[1].mxu0 }
 0x2f9   : > { %v5782_v61 = vpop.f32.mrb[2].mxu0 }
 0x2fa   : > { %v5395_v20 = vpop.f32.mrb[0].mxu1  ;;  %v3789_v31 = vpop.f32.mrb[3].mxu0 }
 0x2fb   : > { %v6065_v32 = vadd.f32 1e-05, %v5395_v20  ;;  %v2159_v21 = vpop.f32.mrb[1].mxu1 }
 0x2fc   : > { %v6067_v24 = vadd.f32 1e-05, %v2159_v21 }
 0x2fd   : > { %v6066_v25 = vadd.f32 %v6065_v32, %v5779_v0  ;;  %v5785_v56 = vpop.f32.mrb[4].mxu0 }
 0x2fe   : > { %v6068_v7 = vadd.f32 %v6067_v24, %v3777_v29  ;;  %v5398_v51 = vpop.f32.mrb[2].mxu1  ;;  %v3801_v40 = vpop.f32.mrb[5].mxu0 }
 0x2ff   : > { %6505 = vrsqrt.f32 %v6066_v25  ;;  %v6069_v53 = vadd.f32 1e-05, %v5398_v51  ;;  %v2173_v42 = vpop.f32.mrb[3].mxu1 }
 0x300   : > { %6507 = vrsqrt.f32 %v6068_v7  ;;  %v6071_v10 = vadd.f32 1e-05, %v2173_v42 }
 0x301   : > { %v6070_v13 = vadd.f32 %v6069_v53, %v5782_v61  ;;  %v5788_v6 = vpop.f32.mrb[6].mxu0 }
 0x302   : > { %v6072_v17 = vadd.f32 %v6071_v10, %v3789_v31  ;;  %v5401_v57 = vpop.f32.mrb[4].mxu1  ;;  %v3813_v18 = vpop.f32.mrb[7].mxu0  ;;  %v9742_v10 = vld [vmem:[#allocation43_spill] sm:$0xff] }
 0x303   : > { %6509 = vrsqrt.f32 %v6070_v13  ;;  %v6073_v28 = vadd.f32 1e-05, %v5401_v57  ;;  %v2187_v45 = vpop.f32.mrb[5].mxu1 }
 0x304   : > { %6511 = vrsqrt.f32 %v6072_v17  ;;  %v6075_v34 = vadd.f32 1e-05, %v2187_v45 }
 0x305   : > { %v6074_v33 = vadd.f32 %v6073_v28, %v5785_v56  ;;  %v5791_v46 = vpop.f32.mrb[8].mxu0  ;;  %v9741_v56 = vld [vmem:[#allocation42_spill] sm:$0xff] }
 0x306   : > { %v6076_v54 = vadd.f32 %v6075_v34, %v3801_v40  ;;  %v5404_v27 = vpop.f32.mrb[6].mxu1  ;;  %v3825_v49 = vpop.f32.mrb[9].mxu0 }
 0x307   : > { %6513 = vrsqrt.f32 %v6074_v33  ;;  %v6077_v8 = vadd.f32 1e-05, %v5404_v27  ;;  %v2201_v4 = vpop.f32.mrb[7].mxu1  ;;  %v9743_v27 = vld [vmem:[#allocation46_spill] sm:$0xff] }
 0x308   : > { %6515 = vrsqrt.f32 %v6076_v54  ;;  %v6079_v44 = vadd.f32 1e-05, %v2201_v4 }
 0x309   : > { %v6506_v22 = vpop.eup %6505  ;;  %v6078_v36 = vadd.f32 %v6077_v8, %v5788_v6  ;;  %v5794_v11 = vpop.f32.mrb[10].mxu0 }
 0x30a   : > { %v6508_v52 = vpop.eup %6507  ;;  %v4224_v50 = vmul.f32 %v6506_v22, %v9737_v59  ;;  %v6080_v14 = vadd.f32 %v6079_v44, %v3813_v18  ;;  %v5407_v55 = vpop.f32.mrb[8].mxu1 }
 0x30b   : > { %v3837_v58 = vpop.f32.mrb[11].mxu0  ;;  %v4223_v23 = vmul.f32 %v6508_v52, %v9738_v35  ;;  %6517 = vrsqrt.f32 %v6078_v36  ;;  %v6081_v19 = vadd.f32 1e-05, %v5407_v55  ;;  %v2215_v2 = vpop.f32.mrb[9].mxu1  ;;  %v9744_v36 = vld [vmem:[#allocation47_spill] sm:$0xff] }
 0x30c   : > { %v4295_v38 = vmul.f32 %v8811_v9, %v4224_v50  ;;  %6519 = vrsqrt.f32 %v6080_v14  ;;  %v6083_v26 = vadd.f32 1e-05, %v2215_v2 }
 0x30d   : > { %v6510_v60 = vpop.eup %6509  ;;  %v4294_v3 = vmul.f32 %v8811_v9, %v4223_v23  ;;  %v6082_v1 = vadd.f32 %v6081_v19, %v5791_v46  ;;  %v5797_v63 = vpop.f32.mrb[12].mxu0 }
 0x30e   : > { %v6512_v41 = vpop.eup %6511  ;;  %v4366_v62 = vadd.f32 %v8817_v12, %v4295_v38  ;;  %v4226_v39 = vmul.f32 %v6510_v60, %v9739_v30  ;;  %v6084_v47 = vadd.f32 %v6083_v26, %v3825_v49  ;;  %v5410_v37 = vpop.f32.mrb[10].mxu1  ;;  %v9745_v38 = vld [vmem:[#allocation49_spill] sm:$0xff] }
 0x30f   : > { %v3849_v16 = vpop.f32.mrb[13].mxu0  ;;  %v4365_v5 = vadd.f32 %v8817_v12, %v4294_v3  ;;  %v4225_v15 = vmul.f32 %v6512_v41, %v9740_v48  ;;  %6521 = vrsqrt.f32 %v6082_v1  ;;  %v6085_v43 = vadd.f32 1e-05, %v5410_v37  ;;  %v2229_v0 = vpop.f32.mrb[11].mxu1  ;;  %v9746_v41 = vld [vmem:[#allocation50_spill] sm:$0xff] }
 0x310   : > { %4430 = vst [vmem:[%s8828_s11 + $0x8] sm:$0xff] %v4366_v62  ;;  %v4297_v29 = vmul.f32 %v8811_v9, %v4226_v39  ;;  %6523 = vrsqrt.f32 %v6084_v47  ;;  %v6087_v61 = vadd.f32 1e-05, %v2229_v0 }
 0x311   : > { %v6514_v20 = vpop.eup %6513  ;;  %4429 = vst [vmem:[%s8828_s11] sm:$0xff] %v4365_v5  ;;  %v4296_v31 = vmul.f32 %v8811_v9, %v4225_v15  ;;  %v6086_v32 = vadd.f32 %v6085_v43, %v5794_v11  ;;  %v5800_v21 = vpop.f32.mrb[14].mxu0 }
 0x312   : > { %v6516_v24 = vpop.eup %6515  ;;  %v4368_v25 = vadd.f32 %v8817_v12, %v4297_v29  ;;  %v4228_v7 = vmul.f32 %v6514_v20, %v9741_v56  ;;  %v6088_v51 = vadd.f32 %v6087_v61, %v3837_v58  ;;  %v5413_v40 = vpop.f32.mrb[12].mxu1  ;;  %v9747_v29 = vld [vmem:[#allocation52_spill] sm:$0xff] }
 0x313   : > { %v3861_v53 = vpop.f32.mrb[15].mxu0  ;;  %v4367_v42 = vadd.f32 %v8817_v12, %v4296_v31  ;;  %v4227_v13 = vmul.f32 %v6516_v24, %v9742_v10  ;;  %6525 = vrsqrt.f32 %v6086_v32  ;;  %v6089_v6 = vadd.f32 1e-05, %v5413_v40  ;;  %v2243_v17 = vpop.f32.mrb[13].mxu1  ;;  %v9748_v24 = vld [vmem:[#allocation53_spill] sm:$0xff] }
 0x314   : > { %4432 = vst [vmem:[%s8828_s11 + $0x18] sm:$0xff] %v4368_v25  ;;  %v4299_v57 = vmul.f32 %v8811_v9, %v4228_v7  ;;  %6527 = vrsqrt.f32 %v6088_v51  ;;  %v6091_v18 = vadd.f32 1e-05, %v2243_v17 }
 0x315   : > { %v6518_v28 = vpop.eup %6517  ;;  %4431 = vst [vmem:[%s8828_s11 + $0x10] sm:$0xff] %v4367_v42  ;;  %v4298_v45 = vmul.f32 %v8811_v9, %v4227_v13  ;;  %v6090_v34 = vadd.f32 %v6089_v6, %v5797_v63  ;;  %v5803_v33 = vpop.f32.mrb[16].mxu0 }
 0x316   : > { %v6520_v46 = vpop.eup %6519  ;;  %v4370_v54 = vadd.f32 %v8817_v12, %v4299_v57  ;;  %v4230_v49 = vmul.f32 %v6518_v28, %v9743_v27  ;;  %v6092_v8 = vadd.f32 %v6091_v18, %v3849_v16  ;;  %v5416_v4 = vpop.f32.mrb[14].mxu1  ;;  %v9749_v57 = vld [vmem:[#allocation55_spill] sm:$0xff] }
 0x317   : > { %v3873_v44 = vpop.f32.mrb[17].mxu0  ;;  %v4369_v22 = vadd.f32 %v8817_v12, %v4298_v45  ;;  %v4229_v11 = vmul.f32 %v6520_v46, %v9744_v36  ;;  %6529 = vrsqrt.f32 %v6090_v34  ;;  %v6093_v52 = vadd.f32 1e-05, %v5416_v4  ;;  %v2257_v59 = vpop.f32.mrb[15].mxu1  ;;  %v9750_v46 = vld [vmem:[#allocation56_spill] sm:$0xff] }
 0x318   : > { %4434 = vst [vmem:[%s8828_s11 + $0x28] sm:$0xff] %v4370_v54  ;;  %v4301_v50 = vmul.f32 %v8811_v9, %v4230_v49  ;;  %6531 = vrsqrt.f32 %v6092_v8  ;;  %v6095_v14 = vadd.f32 1e-05, %v2257_v59 }
 0x319   : > { %v6522_v55 = vpop.eup %6521  ;;  %4433 = vst [vmem:[%s8828_s11 + $0x20] sm:$0xff] %v4369_v22  ;;  %v4300_v58 = vmul.f32 %v8811_v9, %v4229_v11  ;;  %v6094_v35 = vadd.f32 %v6093_v52, %v5800_v21  ;;  %v5806_v23 = vpop.f32.mrb[18].mxu0 }
 0x31a   : > { %v6524_v19 = vpop.eup %6523  ;;  %v4372_v2 = vadd.f32 %v8817_v12, %v4301_v50  ;;  %v4232_v26 = vmul.f32 %v6522_v55, %v9745_v38  ;;  %v6096_v60 = vadd.f32 %v6095_v14, %v3861_v53  ;;  %v5419_v3 = vpop.f32.mrb[16].mxu1  ;;  %v9751_v50 = vld [vmem:[#allocation60_spill] sm:$0xff] }
 0x31b   : > { %v3885_v1 = vpop.f32.mrb[19].mxu0  ;;  %v4371_v63 = vadd.f32 %v8817_v12, %v4300_v58  ;;  %v4231_v62 = vmul.f32 %v6524_v19, %v9746_v41  ;;  %6533 = vrsqrt.f32 %v6094_v35  ;;  %v6097_v30 = vadd.f32 1e-05, %v5419_v3  ;;  %v2271_v39 = vpop.f32.mrb[17].mxu1  ;;  %v9752_v19 = vld [vmem:[#allocation61_spill] sm:$0xff] }
 0x31c   : > { %4436 = vst [vmem:[%s8828_s11 + $0x38] sm:$0xff] %v4372_v2  ;;  %v4303_v47 = vmul.f32 %v8811_v9, %v4232_v26  ;;  %6535 = vrsqrt.f32 %v6096_v60  ;;  %v6099_v37 = vadd.f32 1e-05, %v2271_v39 }
 0x31d   : > { %v6526_v16 = vpop.eup %6525  ;;  %4435 = vst [vmem:[%s8828_s11 + $0x30] sm:$0xff] %v4371_v63  ;;  %v4302_v5 = vmul.f32 %v8811_v9, %v4231_v62  ;;  %v6098_v48 = vadd.f32 %v6097_v30, %v5803_v33  ;;  %v5809_v15 = vpop.f32.mrb[20].mxu0 }
 0x31e   : > { %v6528_v43 = vpop.eup %6527  ;;  %v4374_v0 = vadd.f32 %v8817_v12, %v4303_v47  ;;  %v4234_v61 = vmul.f32 %v6526_v16, %v9747_v29  ;;  %v6100_v20 = vadd.f32 %v6099_v37, %v3873_v44  ;;  %v5422_v31 = vpop.f32.mrb[18].mxu1  ;;  %v9753_v47 = vld [vmem:[#allocation62_spill] sm:$0xff] }
 0x31f   : > { %v3897_v32 = vpop.f32.mrb[21].mxu0  ;;  %v4373_v21 = vadd.f32 %v8817_v12, %v4302_v5  ;;  %v4233_v25 = vmul.f32 %v6528_v43, %v9748_v24  ;;  %6537 = vrsqrt.f32 %v6098_v48  ;;  %v6101_v56 = vadd.f32 1e-05, %v5422_v31  ;;  %v2285_v7 = vpop.f32.mrb[19].mxu1  ;;  %v9754_v43 = vld [vmem:[#allocation64_spill] sm:$0xff] }
 0x320   : > { %4438 = vst [vmem:[%s8828_s11 + $0x48] sm:$0xff] %v4374_v0  ;;  %v4305_v51 = vmul.f32 %v8811_v9, %v4234_v61  ;;  %6539 = vrsqrt.f32 %v6100_v20  ;;  %v6103_v40 = vadd.f32 1e-05, %v2285_v7 }
 0x321   : > { %v6530_v53 = vpop.eup %6529  ;;  %4437 = vst [vmem:[%s8828_s11 + $0x40] sm:$0xff] %v4373_v21  ;;  %v4304_v42 = vmul.f32 %v8811_v9, %v4233_v25  ;;  %v6102_v10 = vadd.f32 %v6101_v56, %v5806_v23  ;;  %v5812_v13 = vpop.f32.mrb[22].mxu0 }
 0x322   : > { %v6532_v6 = vpop.eup %6531  ;;  %v4376_v17 = vadd.f32 %v8817_v12, %v4305_v51  ;;  %v4236_v18 = vmul.f32 %v6530_v53, %v9749_v57  ;;  %v6104_v28 = vadd.f32 %v6103_v40, %v3885_v1  ;;  %v5425_v45 = vpop.f32.mrb[20].mxu1  ;;  %v9755_v51 = vld [vmem:[#allocation67_spill] sm:$0xff] }
 0x323   : > { %v3909_v34 = vpop.f32.mrb[23].mxu0  ;;  %v4375_v33 = vadd.f32 %v8817_v12, %v4304_v42  ;;  %v4235_v54 = vmul.f32 %v6532_v6, %v9750_v46  ;;  %6541 = vrsqrt.f32 %v6102_v10  ;;  %v6105_v27 = vadd.f32 1e-05, %v5425_v45  ;;  %v2299_v49 = vpop.f32.mrb[21].mxu1  ;;  %v9756_v6 = vld [vmem:[#allocation68_spill] sm:$0xff] }
 0x324   : > { %4440 = vst [vmem:[%s8828_s11 + $0x58] sm:$0xff] %v4376_v17  ;;  %v4307_v8 = vmul.f32 %v8811_v9, %v4236_v18  ;;  %6543 = vrsqrt.f32 %v6104_v28  ;;  %v6107_v4 = vadd.f32 1e-05, %v2299_v49 }
 0x325   : > { %v6534_v44 = vpop.eup %6533  ;;  %4439 = vst [vmem:[%s8828_s11 + $0x50] sm:$0xff] %v4375_v33  ;;  %v4306_v22 = vmul.f32 %v8811_v9, %v4235_v54  ;;  %v6106_v36 = vadd.f32 %v6105_v27, %v5809_v15  ;;  %v5815_v11 = vpop.f32.mrb[24].mxu0 }
 0x326   : > { %v6536_v52 = vpop.eup %6535  ;;  %v4378_v59 = vadd.f32 %v8817_v12, %v4307_v8  ;;  %v4238_v14 = vmul.f32 %v6534_v44, %v9751_v50  ;;  %v6108_v55 = vadd.f32 %v6107_v4, %v3897_v32  ;;  %v5428_v58 = vpop.f32.mrb[22].mxu1  ;;  %v9757_v8 = vld [vmem:[#allocation70_spill] sm:$0xff] }
 0x327   : > { %v3921_v35 = vpop.f32.mrb[25].mxu0  ;;  %v4377_v23 = vadd.f32 %v8817_v12, %v4306_v22  ;;  %v4237_v2 = vmul.f32 %v6536_v52, %v9752_v19  ;;  %6545 = vrsqrt.f32 %v6106_v36  ;;  %v6109_v38 = vadd.f32 1e-05, %v5428_v58  ;;  %v2313_v26 = vpop.f32.mrb[23].mxu1  ;;  %v9758_v52 = vld [vmem:[#allocation72_spill] sm:$0xff] }
 0x328   : > { %4442 = vst [vmem:[%s8828_s11 + $0x68] sm:$0xff] %v4378_v59  ;;  %v4309_v60 = vmul.f32 %v8811_v9, %v4238_v14  ;;  %6547 = vrsqrt.f32 %v6108_v55  ;;  %v6111_v3 = vadd.f32 1e-05, %v2313_v26 }
 0x329   : > { %v6538_v1 = vpop.eup %6537  ;;  %4441 = vst [vmem:[%s8828_s11 + $0x60] sm:$0xff] %v4377_v23  ;;  %v4308_v63 = vmul.f32 %v8811_v9, %v4237_v2  ;;  %v6110_v41 = vadd.f32 %v6109_v38, %v5812_v13  ;;  %v5818_v62 = vpop.f32.mrb[26].mxu0 }
 0x32a   : > { %v6540_v30 = vpop.eup %6539  ;;  %v4380_v39 = vadd.f32 %v8817_v12, %v4309_v60  ;;  %v4240_v37 = vmul.f32 %v6538_v1, %v9753_v47  ;;  %v6112_v16 = vadd.f32 %v6111_v3, %v3909_v34  ;;  %v5431_v5 = vpop.f32.mrb[24].mxu1  ;;  %v9759_v60 = vld [vmem:[#allocation73_spill] sm:$0xff] }
 0x32b   : > { %v3933_v48 = vpop.f32.mrb[27].mxu0  ;;  %v4379_v15 = vadd.f32 %v8817_v12, %v4308_v63  ;;  %v4239_v0 = vmul.f32 %v6540_v30, %v9754_v43  ;;  %6549 = vrsqrt.f32 %v6110_v41  ;;  %v6113_v29 = vadd.f32 1e-05, %v5431_v5  ;;  %v2327_v61 = vpop.f32.mrb[25].mxu1  ;;  %v9760_v30 = vld [vmem:[#allocation75_spill] sm:$0xff] }
 0x32c   : > { %4444 = vst [vmem:[%s8828_s11 + $0x78] sm:$0xff] %v4380_v39  ;;  %v4311_v20 = vmul.f32 %v8811_v9, %v4240_v37  ;;  %6551 = vrsqrt.f32 %v6112_v16  ;;  %v6115_v31 = vadd.f32 1e-05, %v2327_v61 }
 0x32d   : > { %v6542_v32 = vpop.eup %6541  ;;  %4443 = vst [vmem:[%s8828_s11 + $0x70] sm:$0xff] %v4379_v15  ;;  %v4310_v21 = vmul.f32 %v8811_v9, %v4239_v0  ;;  %v6114_v24 = vadd.f32 %v6113_v29, %v5815_v11  ;;  %v5821_v25 = vpop.f32.mrb[28].mxu0 }
 0x32e   : > { %v6544_v56 = vpop.eup %6543  ;;  %v4382_v7 = vadd.f32 %v8817_v12, %v4311_v20  ;;  %v4242_v40 = vmul.f32 %v6542_v32, %v9755_v51  ;;  %v6116_v53 = vadd.f32 %v6115_v31, %v3921_v35  ;;  %v5434_v42 = vpop.f32.mrb[26].mxu1  ;;  %v9761_v20 = vld [vmem:[#allocation19_spill] sm:$0xff] }
 0x32f   : > { %v3945_v10 = vpop.f32.mrb[29].mxu0  ;;  %v4381_v13 = vadd.f32 %v8817_v12, %v4310_v21  ;;  %v4241_v17 = vmul.f32 %v6544_v56, %v9756_v6  ;;  %6553 = vrsqrt.f32 %v6114_v24  ;;  %v6117_v57 = vadd.f32 1e-05, %v5434_v42  ;;  %v2341_v18 = vpop.f32.mrb[27].mxu1  ;;  %v9762_v56 = vld [vmem:[#allocation20_spill] sm:$0xff] }
 0x330   : > { %4446 = vst [vmem:[%s8828_s11 + $0x88] sm:$0xff] %v4382_v7  ;;  %v4313_v28 = vmul.f32 %v8811_v9, %v4242_v40  ;;  %6555 = vrsqrt.f32 %v6116_v53  ;;  %v6119_v45 = vadd.f32 1e-05, %v2341_v18 }
 0x331   : > { %v6546_v34 = vpop.eup %6545  ;;  %4445 = vst [vmem:[%s8828_s11 + $0x80] sm:$0xff] %v4381_v13  ;;  %v4312_v33 = vmul.f32 %v8811_v9, %v4241_v17  ;;  %v6118_v46 = vadd.f32 %v6117_v57, %v5818_v62  ;;  %v5824_v54 = vpop.f32.mrb[30].mxu0 }
 0x332   : > { %v6548_v27 = vpop.eup %6547  ;;  %v4384_v49 = vadd.f32 %v8817_v12, %v4313_v28  ;;  %v4244_v4 = vmul.f32 %v6546_v34, %v9757_v8  ;;  %v6120_v44 = vadd.f32 %v6119_v45, %v3933_v48  ;;  %v5437_v22 = vpop.f32.mrb[28].mxu1  ;;  %v9763_v28 = vld [vmem:[#allocation24_spill] sm:$0xff] }
 0x333   : > { %v3957_v36 = vpop.f32.mrb[31].mxu0  ;;  %v4383_v11 = vadd.f32 %v8817_v12, %v4312_v33  ;;  %v4243_v59 = vmul.f32 %v6548_v27, %v9758_v52  ;;  %6557 = vrsqrt.f32 %v6118_v46  ;;  %v6121_v50 = vadd.f32 1e-05, %v5437_v22  ;;  %v2355_v14 = vpop.f32.mrb[29].mxu1  ;;  %v9764_v27 = vld [vmem:[#allocation25_spill] sm:$0xff] }
 0x334   : > { %4448 = vst [vmem:[%s8828_s11 + $0x98] sm:$0xff] %v4384_v49  ;;  %v4315_v55 = vmul.f32 %v8811_v9, %v4244_v4  ;;  %6559 = vrsqrt.f32 %v6120_v44  ;;  %v6123_v58 = vadd.f32 1e-05, %v2355_v14 }
 0x335   : > { %v6550_v35 = vpop.eup %6549  ;;  %4447 = vst [vmem:[%s8828_s11 + $0x90] sm:$0xff] %v4383_v11  ;;  %v4314_v23 = vmul.f32 %v8811_v9, %v4243_v59  ;;  %v6122_v19 = vadd.f32 %v6121_v50, %v5821_v25  ;;  %v5827_v2 = vpop.f32.mrb[32].mxu0 }
 0x336   : > { %v6552_v38 = vpop.eup %6551  ;;  %v4386_v26 = vadd.f32 %v8817_v12, %v4315_v55  ;;  %v4246_v3 = vmul.f32 %v6550_v35, %v9759_v60  ;;  %v6124_v1 = vadd.f32 %v6123_v58, %v3945_v10  ;;  %v5440_v63 = vpop.f32.mrb[30].mxu1  ;;  %v9765_v55 = vld [vmem:[#allocation27_spill] sm:$0xff] }
 0x337   : > { %v3969_v41 = vpop.f32.mrb[33].mxu0  ;;  %v4385_v62 = vadd.f32 %v8817_v12, %v4314_v23  ;;  %v4245_v39 = vmul.f32 %v6552_v38, %v9760_v30  ;;  %6561 = vrsqrt.f32 %v6122_v19  ;;  %v6125_v47 = vadd.f32 1e-05, %v5440_v63  ;;  %v2369_v37 = vpop.f32.mrb[31].mxu1  ;;  %v9766_v38 = vld [vmem:[#allocation28_spill] sm:$0xff] }
 0x338   : > { %4450 = vst [vmem:[%s8828_s11 + $0xa8] sm:$0xff] %v4386_v26  ;;  %v4317_v16 = vmul.f32 %v8811_v9, %v4246_v3  ;;  %6563 = vrsqrt.f32 %v6124_v1  ;;  %v6127_v5 = vadd.f32 1e-05, %v2369_v37 }
 0x339   : > { %v6554_v48 = vpop.eup %6553  ;;  %4449 = vst [vmem:[%s8828_s11 + $0xa0] sm:$0xff] %v4385_v62  ;;  %v4316_v15 = vmul.f32 %v8811_v9, %v4245_v39  ;;  %v6126_v43 = vadd.f32 %v6125_v47, %v5824_v54  ;;  %v5830_v0 = vpop.f32.mrb[34].mxu0 }
 0x33a   : > { %v6556_v29 = vpop.eup %6555  ;;  %v4388_v61 = vadd.f32 %v8817_v12, %v4317_v16  ;;  %v4248_v31 = vmul.f32 %v6554_v48, %v9761_v20  ;;  %v6128_v32 = vadd.f32 %v6127_v5, %v3957_v36  ;;  %v5443_v21 = vpop.f32.mrb[32].mxu1  ;;  %v9767_v16 = vld [vmem:[#allocation29_spill] sm:$0xff] }
 0x33b   : > { %v3981_v24 = vpop.f32.mrb[35].mxu0  ;;  %v4387_v25 = vadd.f32 %v8817_v12, %v4316_v15  ;;  %v4247_v7 = vmul.f32 %v6556_v29, %v9762_v56  ;;  %6565 = vrsqrt.f32 %v6126_v43  ;;  %v6129_v51 = vadd.f32 1e-05, %v5443_v21  ;;  %v2383_v40 = vpop.f32.mrb[33].mxu1  ;;  %v9768_v29 = vld [vmem:[#allocation90_spill] sm:$0xff] }
 0x33c   : > { %4452 = vst [vmem:[%s8828_s11 + $0xb8] sm:$0xff] %v4388_v61  ;;  %v4319_v53 = vmul.f32 %v8811_v9, %v4248_v31  ;;  %6567 = vrsqrt.f32 %v6128_v32  ;;  %v6131_v42 = vadd.f32 1e-05, %v2383_v40 }
 0x33d   : > { %v6558_v10 = vpop.eup %6557  ;;  %4451 = vst [vmem:[%s8828_s11 + $0xb0] sm:$0xff] %v4387_v25  ;;  %v4318_v13 = vmul.f32 %v8811_v9, %v4247_v7  ;;  %v6130_v6 = vadd.f32 %v6129_v51, %v5827_v2  ;;  %v5833_v17 = vpop.f32.mrb[36].mxu0 }
 0x33e   : > { %v6560_v57 = vpop.eup %6559  ;;  %v4390_v18 = vadd.f32 %v8817_v12, %v4319_v53  ;;  %v4250_v45 = vmul.f32 %v6558_v10, %v9763_v28  ;;  %v6132_v34 = vadd.f32 %v6131_v42, %v3969_v41  ;;  %v5446_v33 = vpop.f32.mrb[34].mxu1  ;;  %v9769_v53 = vld [vmem:[#allocation92_spill] sm:$0xff] }
 0x33f   : > { %v3993_v46 = vpop.f32.mrb[37].mxu0  ;;  %v4389_v54 = vadd.f32 %v8817_v12, %v4318_v13  ;;  %v4249_v49 = vmul.f32 %v6560_v57, %v9764_v27  ;;  %6569 = vrsqrt.f32 %v6130_v6  ;;  %v6133_v8 = vadd.f32 1e-05, %v5446_v33  ;;  %v2397_v4 = vpop.f32.mrb[35].mxu1  ;;  %v9770_v57 = vld [vmem:[#allocation96_spill] sm:$0xff] }
 0x340   : > { %4454 = vst [vmem:[%s8828_s11 + $0xc8] sm:$0xff] %v4390_v18  ;;  %v4321_v44 = vmul.f32 %v8811_v9, %v4250_v45  ;;  %6571 = vrsqrt.f32 %v6132_v34  ;;  %v6135_v22 = vadd.f32 1e-05, %v2397_v4 }
 0x341   : > { %v6562_v36 = vpop.eup %6561  ;;  %4453 = vst [vmem:[%s8828_s11 + $0xc0] sm:$0xff] %v4389_v54  ;;  %v4320_v11 = vmul.f32 %v8811_v9, %v4249_v49  ;;  %v6134_v52 = vadd.f32 %v6133_v8, %v5830_v0  ;;  %v5836_v59 = vpop.f32.mrb[38].mxu0 }
 0x342   : > { %v6564_v50 = vpop.eup %6563  ;;  %v4392_v14 = vadd.f32 %v8817_v12, %v4321_v44  ;;  %v4252_v58 = vmul.f32 %v6562_v36, %v9765_v55  ;;  %v6136_v35 = vadd.f32 %v6135_v22, %v3981_v24  ;;  %v5449_v23 = vpop.f32.mrb[36].mxu1  ;;  %v9771_v44 = vld [vmem:[#allocation99_spill] sm:$0xff] }
 0x343   : > { %v4005_v19 = vpop.f32.mrb[39].mxu0  ;;  %v4391_v2 = vadd.f32 %v8817_v12, %v4320_v11  ;;  %v4251_v26 = vmul.f32 %v6564_v50, %v9766_v38  ;;  %6573 = vrsqrt.f32 %v6134_v52  ;;  %v6137_v60 = vadd.f32 1e-05, %v5449_v23  ;;  %v2411_v3 = vpop.f32.mrb[37].mxu1  ;;  %v9772_v50 = vld [vmem:[#allocation102_spill] sm:$0xff] }
 0x344   : > { %4456 = vst [vmem:[%s8828_s11 + $0xd8] sm:$0xff] %v4392_v14  ;;  %v4323_v1 = vmul.f32 %v8811_v9, %v4252_v58  ;;  %6575 = vrsqrt.f32 %v6136_v35  ;;  %v6139_v63 = vadd.f32 1e-05, %v2411_v3 }
 0x345   : > { %v6566_v41 = vpop.eup %6565  ;;  %4455 = vst [vmem:[%s8828_s11 + $0xd0] sm:$0xff] %v4391_v2  ;;  %v4322_v62 = vmul.f32 %v8811_v9, %v4251_v26  ;;  %v6138_v30 = vadd.f32 %v6137_v60, %v5833_v17  ;;  %v5839_v39 = vpop.f32.mrb[40].mxu0 }
 0x346   : > { %v6568_v47 = vpop.eup %6567  ;;  %v4394_v37 = vadd.f32 %v8817_v12, %v4323_v1  ;;  %v4254_v5 = vmul.f32 %v6566_v41, %v9767_v16  ;;  %v6140_v48 = vadd.f32 %v6139_v63, %v3993_v46  ;;  %v5452_v15 = vpop.f32.mrb[38].mxu1  ;;  %v9773_v1 = vld [vmem:[#allocation104_spill] sm:$0xff] }
 0x347   : > { %v4017_v43 = vpop.f32.mrb[41].mxu0  ;;  %v4393_v0 = vadd.f32 %v8817_v12, %v4322_v62  ;;  %v4253_v61 = vmul.f32 %v6568_v47, %v9768_v29  ;;  %6577 = vrsqrt.f32 %v6138_v30  ;;  %v6141_v20 = vadd.f32 1e-05, %v5452_v15  ;;  %v2425_v31 = vpop.f32.mrb[39].mxu1  ;;  %v9774_v47 = vld [vmem:[#allocation108_spill] sm:$0xff] }
 0x348   : > { %4458 = vst [vmem:[%s8828_s11 + $0xe8] sm:$0xff] %v4394_v37  ;;  %v4325_v32 = vmul.f32 %v8811_v9, %v4254_v5  ;;  %6579 = vrsqrt.f32 %v6140_v48  ;;  %v6143_v21 = vadd.f32 1e-05, %v2425_v31 }
 0x349   : > { %v6570_v24 = vpop.eup %6569  ;;  %4457 = vst [vmem:[%s8828_s11 + $0xe0] sm:$0xff] %v4393_v0  ;;  %v4324_v25 = vmul.f32 %v8811_v9, %v4253_v61  ;;  %v6142_v56 = vadd.f32 %v6141_v20, %v5836_v59  ;;  %v5842_v7 = vpop.f32.mrb[42].mxu0 }
 0x34a   : > { %v6572_v51 = vpop.eup %6571  ;;  %v4396_v40 = vadd.f32 %v8817_v12, %v4325_v32  ;;  %v4256_v42 = vmul.f32 %v6570_v24, %v9769_v53  ;;  %v6144_v10 = vadd.f32 %v6143_v21, %v4005_v19  ;;  %v5455_v13 = vpop.f32.mrb[40].mxu1  ;;  %v9775_v32 = vld [vmem:[#allocation111_spill] sm:$0xff] }
 0x34b   : > { %v4029_v6 = vpop.f32.mrb[43].mxu0  ;;  %v4395_v17 = vadd.f32 %v8817_v12, %v4324_v25  ;;  %v4255_v18 = vmul.f32 %v6572_v51, %v9770_v57  ;;  %6581 = vrsqrt.f32 %v6142_v56  ;;  %v6145_v28 = vadd.f32 1e-05, %v5455_v13  ;;  %v2439_v45 = vpop.f32.mrb[41].mxu1  ;;  %v9776_v51 = vld [vmem:[#allocation114_spill] sm:$0xff] }
 0x34c   : > { %4460 = vst [vmem:[%s8828_s11 + $0xf8] sm:$0xff] %v4396_v40  ;;  %v4327_v34 = vmul.f32 %v8811_v9, %v4256_v42  ;;  %6583 = vrsqrt.f32 %v6144_v10  ;;  %v6147_v33 = vadd.f32 1e-05, %v2439_v45 }
 0x34d   : > { %v6574_v46 = vpop.eup %6573  ;;  %4459 = vst [vmem:[%s8828_s11 + $0xf0] sm:$0xff] %v4395_v17  ;;  %v4326_v54 = vmul.f32 %v8811_v9, %v4255_v18  ;;  %v6146_v27 = vadd.f32 %v6145_v28, %v5839_v39  ;;  %v5845_v49 = vpop.f32.mrb[44].mxu0 }
 0x34e   : > { %v6576_v8 = vpop.eup %6575  ;;  %v4398_v4 = vadd.f32 %v8817_v12, %v4327_v34  ;;  %v4258_v22 = vmul.f32 %v6574_v46, %v9771_v44  ;;  %v6148_v36 = vadd.f32 %v6147_v33, %v4017_v43  ;;  %v5458_v11 = vpop.f32.mrb[42].mxu1  ;;  %v9777_v34 = vld [vmem:[#allocation116_spill] sm:$0xff] }
 0x34f   : > { %v4041_v52 = vpop.f32.mrb[45].mxu0  ;;  %v4397_v59 = vadd.f32 %v8817_v12, %v4326_v54  ;;  %v4257_v14 = vmul.f32 %v6576_v8, %v9772_v50  ;;  %6585 = vrsqrt.f32 %v6146_v27  ;;  %v6149_v55 = vadd.f32 1e-05, %v5458_v11  ;;  %v2453_v58 = vpop.f32.mrb[43].mxu1  ;;  %v9778_v8 = vld [vmem:[#allocation120_spill] sm:$0xff] }
 0x350   : > { %4462 = vst [vmem:[%s8828_s11 + $0x108] sm:$0xff] %v4398_v4  ;;  %v4329_v35 = vmul.f32 %v8811_v9, %v4258_v22  ;;  %6587 = vrsqrt.f32 %v6148_v36  ;;  %v6151_v23 = vadd.f32 1e-05, %v2453_v58 }
 0x351   : > { %v6578_v19 = vpop.eup %6577  ;;  %4461 = vst [vmem:[%s8828_s11 + $0x100] sm:$0xff] %v4397_v59  ;;  %v4328_v2 = vmul.f32 %v8811_v9, %v4257_v14  ;;  %v6150_v38 = vadd.f32 %v6149_v55, %v5842_v7  ;;  %v5848_v26 = vpop.f32.mrb[46].mxu0 }
 0x352   : > { %v6580_v60 = vpop.eup %6579  ;;  %v4400_v3 = vadd.f32 %v8817_v12, %v4329_v35  ;;  %v4260_v63 = vmul.f32 %v6578_v19, %v9773_v1  ;;  %v6152_v41 = vadd.f32 %v6151_v23, %v4029_v6  ;;  %v5461_v62 = vpop.f32.mrb[44].mxu1  ;;  %v9779_v35 = vld [vmem:[#allocation123_spill] sm:$0xff] }
 0x353   : > { %v4053_v30 = vpop.f32.mrb[47].mxu0  ;;  %v4399_v39 = vadd.f32 %v8817_v12, %v4328_v2  ;;  %v4259_v37 = vmul.f32 %v6580_v60, %v9774_v47  ;;  %6589 = vrsqrt.f32 %v6150_v38  ;;  %v6153_v16 = vadd.f32 1e-05, %v5461_v62  ;;  %v2467_v5 = vpop.f32.mrb[45].mxu1  ;;  %v9780_v60 = vld [vmem:[#allocation126_spill] sm:$0xff] }
 0x354   : > { %4464 = vst [vmem:[%s8828_s11 + $0x118] sm:$0xff] %v4400_v3  ;;  %v4331_v48 = vmul.f32 %v8811_v9, %v4260_v63  ;;  %6591 = vrsqrt.f32 %v6152_v41  ;;  %v6155_v15 = vadd.f32 1e-05, %v2467_v5 }
 0x355   : > { %v6582_v43 = vpop.eup %6581  ;;  %4463 = vst [vmem:[%s8828_s11 + $0x110] sm:$0xff] %v4399_v39  ;;  %v4330_v0 = vmul.f32 %v8811_v9, %v4259_v37  ;;  %v6154_v29 = vadd.f32 %v6153_v16, %v5845_v49  ;;  %v5851_v61 = vpop.f32.mrb[48].mxu0 }
 0x356   : > { %v6584_v20 = vpop.eup %6583  ;;  %v4402_v31 = vadd.f32 %v8817_v12, %v4331_v48  ;;  %v4262_v21 = vmul.f32 %v6582_v43, %v9775_v32  ;;  %v6156_v24 = vadd.f32 %v6155_v15, %v4041_v52  ;;  %v5464_v25 = vpop.f32.mrb[46].mxu1  ;;  %v9781_v48 = vld [vmem:[#allocation128_spill] sm:$0xff] }
 0x357   : > { %v4065_v56 = vpop.f32.mrb[49].mxu0  ;;  %v4401_v7 = vadd.f32 %v8817_v12, %v4330_v0  ;;  %v4261_v40 = vmul.f32 %v6584_v20, %v9776_v51  ;;  %6593 = vrsqrt.f32 %v6154_v29  ;;  %v6157_v53 = vadd.f32 1e-05, %v5464_v25  ;;  %v2481_v42 = vpop.f32.mrb[47].mxu1  ;;  %v9782_v20 = vld [vmem:[#allocation132_spill] sm:$0xff] }
 0x358   : > { %4466 = vst [vmem:[%s8828_s11 + $0x128] sm:$0xff] %v4402_v31  ;;  %v4333_v10 = vmul.f32 %v8811_v9, %v4262_v21  ;;  %6595 = vrsqrt.f32 %v6156_v24  ;;  %v6159_v13 = vadd.f32 1e-05, %v2481_v42 }
 0x359   : > { %v6586_v6 = vpop.eup %6585  ;;  %4465 = vst [vmem:[%s8828_s11 + $0x120] sm:$0xff] %v4401_v7  ;;  %v4332_v17 = vmul.f32 %v8811_v9, %v4261_v40  ;;  %v6158_v57 = vadd.f32 %v6157_v53, %v5848_v26  ;;  %v5854_v18 = vpop.f32.mrb[50].mxu0 }
 0x35a   : > { %v6588_v28 = vpop.eup %6587  ;;  %v4404_v45 = vadd.f32 %v8817_v12, %v4333_v10  ;;  %v4264_v33 = vmul.f32 %v6586_v6, %v9777_v34  ;;  %v6160_v46 = vadd.f32 %v6159_v13, %v4053_v30  ;;  %v5467_v54 = vpop.f32.mrb[48].mxu1  ;;  %v9783_v10 = vld [vmem:[#allocation135_spill] sm:$0xff] }
 0x35b   : > { %v4077_v27 = vpop.f32.mrb[51].mxu0  ;;  %v4403_v49 = vadd.f32 %v8817_v12, %v4332_v17  ;;  %v4263_v4 = vmul.f32 %v6588_v28, %v9778_v8  ;;  %6597 = vrsqrt.f32 %v6158_v57  ;;  %v6161_v44 = vadd.f32 1e-05, %v5467_v54  ;;  %v2495_v22 = vpop.f32.mrb[49].mxu1  ;;  %v9784_v28 = vld [vmem:[#allocation138_spill] sm:$0xff] }
 0x35c   : > { %4468 = vst [vmem:[%s8828_s11 + $0x138] sm:$0xff] %v4404_v45  ;;  %v4335_v36 = vmul.f32 %v8811_v9, %v4264_v33  ;;  %6599 = vrsqrt.f32 %v6160_v46  ;;  %v6163_v11 = vadd.f32 1e-05, %v2495_v22 }
 0x35d   : > { %v6590_v52 = vpop.eup %6589  ;;  %4467 = vst [vmem:[%s8828_s11 + $0x130] sm:$0xff] %v4403_v49  ;;  %v4334_v59 = vmul.f32 %v8811_v9, %v4263_v4  ;;  %v6162_v50 = vadd.f32 %v6161_v44, %v5851_v61  ;;  %v5857_v14 = vpop.f32.mrb[52].mxu0 }
 0x35e   : > { %v6592_v55 = vpop.eup %6591  ;;  %v4406_v58 = vadd.f32 %v8817_v12, %v4335_v36  ;;  %v4266_v23 = vmul.f32 %v6590_v52, %v9779_v35  ;;  %v6164_v19 = vadd.f32 %v6163_v11, %v4065_v56  ;;  %v5470_v2 = vpop.f32.mrb[50].mxu1  ;;  %v9785_v36 = vld [vmem:[#allocation140_spill] sm:$0xff] }
 0x35f   : > { %v4089_v38 = vpop.f32.mrb[53].mxu0  ;;  %v4405_v26 = vadd.f32 %v8817_v12, %v4334_v59  ;;  %v4265_v3 = vmul.f32 %v6592_v55, %v9780_v60  ;;  %6601 = vrsqrt.f32 %v6162_v50  ;;  %v6165_v1 = vadd.f32 1e-05, %v5470_v2  ;;  %v2509_v63 = vpop.f32.mrb[51].mxu1  ;;  %v9786_v55 = vld [vmem:[#allocation144_spill] sm:$0xff] }
 0x360   : > { %4470 = vst [vmem:[%s8828_s11 + $0x148] sm:$0xff] %v4406_v58  ;;  %v4337_v41 = vmul.f32 %v8811_v9, %v4266_v23  ;;  %6603 = vrsqrt.f32 %v6164_v19  ;;  %v6167_v62 = vadd.f32 1e-05, %v2509_v63 }
 0x361   : > { %v6594_v30 = vpop.eup %6593  ;;  %4469 = vst [vmem:[%s8828_s11 + $0x140] sm:$0xff] %v4405_v26  ;;  %v4336_v39 = vmul.f32 %v8811_v9, %v4265_v3  ;;  %v6166_v47 = vadd.f32 %v6165_v1, %v5854_v18  ;;  %v5860_v37 = vpop.f32.mrb[54].mxu0 }
 0x362   : > { %v6596_v16 = vpop.eup %6595  ;;  %v4408_v5 = vadd.f32 %v8817_v12, %v4337_v41  ;;  %v4268_v15 = vmul.f32 %v6594_v30, %v9781_v48  ;;  %v6168_v43 = vadd.f32 %v6167_v62, %v4077_v27  ;;  %v5473_v0 = vpop.f32.mrb[52].mxu1  ;;  %v9787_v41 = vld [vmem:[#allocation147_spill] sm:$0xff] }
 0x363   : > { %v4101_v29 = vpop.f32.mrb[55].mxu0  ;;  %v4407_v61 = vadd.f32 %v8817_v12, %v4336_v39  ;;  %v4267_v31 = vmul.f32 %v6596_v16, %v9782_v20  ;;  %6605 = vrsqrt.f32 %v6166_v47  ;;  %v6169_v32 = vadd.f32 1e-05, %v5473_v0  ;;  %v2523_v21 = vpop.f32.mrb[53].mxu1  ;;  %v9788_v16 = vld [vmem:[#allocation150_spill] sm:$0xff] }
 0x364   : > { %4472 = vst [vmem:[%s8828_s11 + $0x158] sm:$0xff] %v4408_v5  ;;  %v4339_v24 = vmul.f32 %v8811_v9, %v4268_v15  ;;  %6607 = vrsqrt.f32 %v6168_v43  ;;  %v6171_v25 = vadd.f32 1e-05, %v2523_v21 }
 0x365   : > { %v6598_v56 = vpop.eup %6597  ;;  %4471 = vst [vmem:[%s8828_s11 + $0x150] sm:$0xff] %v4407_v61  ;;  %v4338_v7 = vmul.f32 %v8811_v9, %v4267_v31  ;;  %v6170_v51 = vadd.f32 %v6169_v32, %v5857_v14  ;;  %v5863_v40 = vpop.f32.mrb[56].mxu0  ;;  %v9034_v32 = vld [vmem:[%s9154_s4] ss:$0 sm:$0xff] }
 0x366   : > { %v6600_v53 = vpop.eup %6599  ;;  %v4410_v42 = vadd.f32 %v8817_v12, %v4339_v24  ;;  %v4270_v13 = vmul.f32 %v6598_v56, %v9783_v10  ;;  %v6172_v6 = vadd.f32 %v6171_v25, %v4089_v38  ;;  %v5476_v17 = vpop.f32.mrb[54].mxu1  ;;  %v9789_v24 = vld [vmem:[#allocation152_spill] sm:$0xff] }
 0x367   : > { %v4113_v57 = vpop.f32.mrb[57].mxu0  ;;  %v4409_v18 = vadd.f32 %v8817_v12, %v4338_v7  ;;  %v4269_v45 = vmul.f32 %v6600_v53, %v9784_v28  ;;  %6609 = vrsqrt.f32 %v6170_v51  ;;  %v6173_v34 = vadd.f32 1e-05, %v5476_v17  ;;  %v2537_v33 = vpop.f32.mrb[55].mxu1  ;;  %v9790_v53 = vld [vmem:[#allocation155_spill] sm:$0xff] }
 0x368   : > { %4474 = vst [vmem:[%s8828_s11 + $0x168] sm:$0xff] %v4410_v42  ;;  %v4341_v46 = vmul.f32 %v8811_v9, %v4270_v13  ;;  %6611 = vrsqrt.f32 %v6172_v6  ;;  %v6175_v54 = vadd.f32 1e-05, %v2537_v33  ;;  %v9791_v33 = vld [vmem:[#allocation158_spill] sm:$0xff] }
 0x369   : > { %v6602_v27 = vpop.eup %6601  ;;  %4473 = vst [vmem:[%s8828_s11 + $0x160] sm:$0xff] %v4409_v18  ;;  %v4340_v49 = vmul.f32 %v8811_v9, %v4269_v45  ;;  %v6174_v8 = vadd.f32 %v6173_v34, %v5860_v37  ;;  %v5866_v4 = vpop.f32.mrb[58].mxu0 }
 0x36a   : > { %v6604_v44 = vpop.eup %6603  ;;  %v4412_v22 = vadd.f32 %v8817_v12, %v4341_v46  ;;  %v4272_v11 = vmul.f32 %v6602_v27, %v9785_v36  ;;  %v6176_v52 = vadd.f32 %v6175_v54, %v4101_v29  ;;  %v5479_v59 = vpop.f32.mrb[56].mxu1 }
 0x36b   : > { %v4125_v50 = vpop.f32.mrb[59].mxu0  ;;  %v4411_v14 = vadd.f32 %v8817_v12, %v4340_v49  ;;  %v4271_v58 = vmul.f32 %v6604_v44, %v9786_v55  ;;  %6613 = vrsqrt.f32 %v6174_v8  ;;  %v6177_v35 = vadd.f32 1e-05, %v5479_v59  ;;  %v2551_v23 = vpop.f32.mrb[57].mxu1  ;;  %v9792_v8 = vld [vmem:[#allocation160_spill] sm:$0xff] }
 0x36c   : > { %4476 = vst [vmem:[%s8828_s11 + $0x178] sm:$0xff] %v4412_v22  ;;  %v4343_v19 = vmul.f32 %v8811_v9, %v4272_v11  ;;  %6615 = vrsqrt.f32 %v6176_v52  ;;  %v6179_v2 = vadd.f32 1e-05, %v2551_v23 }
 0x36d   : > { %v6606_v38 = vpop.eup %6605  ;;  %4475 = vst [vmem:[%s8828_s11 + $0x170] sm:$0xff] %v4411_v14  ;;  %v4342_v26 = vmul.f32 %v8811_v9, %v4271_v58  ;;  %v6178_v60 = vadd.f32 %v6177_v35, %v5863_v40  ;;  %v5869_v3 = vpop.f32.mrb[60].mxu0  ;;  %v9026_v9 = vld [vmem:[%s9153_s3] ss:$0 sm:$0xff]  ;;  %v9793_v58 = vld [vmem:[#allocation161_spill] sm:$0xff] }
 0x36e   : > { %v6608_v1 = vpop.eup %6607  ;;  %v4414_v63 = vadd.f32 %v8817_v12, %v4343_v19  ;;  %v4274_v62 = vmul.f32 %v6606_v38, %v9787_v41  ;;  %v6180_v30 = vadd.f32 %v6179_v2, %v4113_v57  ;;  %v5482_v39 = vpop.f32.mrb[58].mxu1  ;;  %v9794_v2 = vld [vmem:[#allocation164_spill] sm:$0xff]  ;;  %v9795_v41 = vld [vmem:[#allocation165_spill] sm:$0xff] }
 0x36f   : > { %v4137_v47 = vpop.f32.mrb[61].mxu0  ;;  %v4413_v37 = vadd.f32 %v8817_v12, %v4342_v26  ;;  %v4273_v5 = vmul.f32 %v6608_v1, %v9788_v16  ;;  %6617 = vrsqrt.f32 %v6178_v60  ;;  %v6181_v48 = vadd.f32 1e-05, %v5482_v39  ;;  %v2565_v15 = vpop.f32.mrb[59].mxu1  ;;  %v9796_v39 = vld [vmem:[#allocation168_spill] sm:$0xff] }
 0x370   : > { %4478 = vst [vmem:[%s8828_s11 + $0x188] sm:$0xff] %v4414_v63  ;;  %v4345_v43 = vmul.f32 %v9026_v9, %v4274_v62  ;;  %6619 = vrsqrt.f32 %v6180_v30  ;;  %v6183_v0 = vadd.f32 1e-05, %v2565_v15 }
 0x371   : > { %v6610_v29 = vpop.eup %6609  ;;  %4477 = vst [vmem:[%s8828_s11 + $0x180] sm:$0xff] %v4413_v37  ;;  %v4344_v12 = vmul.f32 %v9026_v9, %v4273_v5  ;;  %v6182_v61 = vadd.f32 %v6181_v48, %v5866_v4  ;;  %v5872_v20 = vpop.f32.mrb[62].mxu0 }
 0x372   : > { %v6612_v31 = vpop.eup %6611  ;;  %v4416_v21 = vadd.f32 %v9034_v32, %v4345_v43  ;;  %v4276_v25 = vmul.f32 %v6610_v29, %v9789_v24  ;;  %v6184_v56 = vadd.f32 %v6183_v0, %v4125_v50  ;;  %v5485_v7 = vpop.f32.mrb[60].mxu1  ;;  %v9797_v43 = vld [vmem:[#allocation171_spill] sm:$0xff] }
 0x373   : > { %v4149_v51 = vpop.f32.mrb[63].mxu0  ;;  %v4415_v40 = vadd.f32 %v9034_v32, %v4344_v12  ;;  %v4275_v42 = vmul.f32 %v6612_v31, %v9790_v53  ;;  %6621 = vrsqrt.f32 %v6182_v61  ;;  %v6185_v10 = vadd.f32 1e-05, %v5485_v7  ;;  %v2579_v13 = vpop.f32.mrb[61].mxu1  ;;  %v9798_v12 = vld [vmem:[#allocation176_spill] sm:$0xff] }
 0x374   : > { %4480 = vst [vmem:[%s8828_s11 + $0x198] sm:$0xff] %v4416_v21  ;;  %v4347_v6 = vmul.f32 %v9026_v9, %v4276_v25  ;;  %6623 = vrsqrt.f32 %v6184_v56  ;;  %v6187_v17 = vadd.f32 1e-05, %v2579_v13  ;;  %v9799_v56 = vld [vmem:[#allocation178_spill] sm:$0xff] }
 0x375   : > { %v6614_v57 = vpop.eup %6613  ;;  %4479 = vst [vmem:[%s8828_s11 + $0x190] sm:$0xff] %v4415_v40  ;;  %v4346_v18 = vmul.f32 %v9026_v9, %v4275_v42  ;;  %v6186_v28 = vadd.f32 %v6185_v10, %v5869_v3  ;;  %v9800_v40 = vld [vmem:[#allocation180_spill] sm:$0xff] }
 0x376   : > { %v6616_v45 = vpop.eup %6615  ;;  %v4418_v34 = vadd.f32 %v9034_v32, %v4347_v6  ;;  %v4278_v46 = vmul.f32 %v6614_v57, %v9791_v33  ;;  %v6188_v54 = vadd.f32 %v6187_v17, %v4137_v47  ;;  %v5488_v27 = vpop.f32.mrb[62].mxu1 }
 0x377   : > { %v4417_v49 = vadd.f32 %v9034_v32, %v4346_v18  ;;  %v4277_v4 = vmul.f32 %v6616_v45, %v9792_v8  ;;  %6625 = vrsqrt.f32 %v6186_v28  ;;  %v6189_v44 = vadd.f32 1e-05, %v5488_v27  ;;  %v2593_v22 = vpop.f32.mrb[63].mxu1 }
 0x378   : > { %4482 = vst [vmem:[%s8828_s11 + $0x1a8] sm:$0xff] %v4418_v34  ;;  %v4349_v36 = vmul.f32 %v9026_v9, %v4278_v46  ;;  %6627 = vrsqrt.f32 %v6188_v54  ;;  %v6191_v11 = vadd.f32 1e-05, %v2593_v22 }
 0x379   : > { %v6618_v52 = vpop.eup %6617  ;;  %4481 = vst [vmem:[%s8828_s11 + $0x1a0] sm:$0xff] %v4417_v49  ;;  %v4348_v59 = vmul.f32 %v9026_v9, %v4277_v4  ;;  %v6190_v50 = vadd.f32 %v6189_v44, %v5872_v20 }
 0x37a   : > { %v6620_v14 = vpop.eup %6619  ;;  %v4420_v55 = vadd.f32 %v9034_v32, %v4349_v36  ;;  %v4280_v35 = vmul.f32 %v6618_v52, %v9793_v58  ;;  %v6192_v23 = vadd.f32 %v6191_v11, %v4149_v51 }
 0x37b   : > { %v4419_v19 = vadd.f32 %v9034_v32, %v4348_v59  ;;  %v4279_v38 = vmul.f32 %v6620_v14, %v9794_v2  ;;  %6629 = vrsqrt.f32 %v6190_v50 }
 0x37c   : > { %4484 = vst [vmem:[%s8828_s11 + $0x1b8] sm:$0xff] %v4420_v55  ;;  %v4351_v26 = vmul.f32 %v9026_v9, %v4280_v35  ;;  %6631 = vrsqrt.f32 %v6192_v23 }
 0x37d   : > { %v6622_v60 = vpop.eup %6621  ;;  %4483 = vst [vmem:[%s8828_s11 + $0x1b0] sm:$0xff] %v4419_v19  ;;  %v4350_v3 = vmul.f32 %v9026_v9, %v4279_v38 }
 0x37e   : > { %v6624_v1 = vpop.eup %6623  ;;  %v4422_v63 = vadd.f32 %v9034_v32, %v4351_v26  ;;  %v4282_v62 = vmul.f32 %v6622_v60, %v9795_v41 }
 0x37f   : > { %v4421_v30 = vadd.f32 %v9034_v32, %v4350_v3  ;;  %v4281_v47 = vmul.f32 %v6624_v1, %v9796_v39 }
 0x380   : > { %4486 = vst [vmem:[%s8828_s11 + $0x1c8] sm:$0xff] %v4422_v63  ;;  %v4353_v37 = vmul.f32 %v9026_v9, %v4282_v62 }
 0x381   : > { %v6626_v16 = vpop.eup %6625  ;;  %4485 = vst [vmem:[%s8828_s11 + $0x1c0] sm:$0xff] %v4421_v30  ;;  %v4352_v5 = vmul.f32 %v9026_v9, %v4281_v47 }
 0x382   : > { %v6628_v48 = vpop.eup %6627  ;;  %v4424_v15 = vadd.f32 %v9034_v32, %v4353_v37  ;;  %v4284_v0 = vmul.f32 %v6626_v16, %v9797_v43 }
 0x383   : > { %v4423_v29 = vadd.f32 %v9034_v32, %v4352_v5  ;;  %v4283_v61 = vmul.f32 %v6628_v48, %v9798_v12 }
 0x384   : > { %4488 = vst [vmem:[%s8828_s11 + $0x1d8] sm:$0xff] %v4424_v15  ;;  %v4355_v20 = vmul.f32 %v9026_v9, %v4284_v0 }
 0x385   : > { %v6630_v31 = vpop.eup %6629  ;;  %4487 = vst [vmem:[%s8828_s11 + $0x1d0] sm:$0xff] %v4423_v29  ;;  %v4354_v21 = vmul.f32 %v9026_v9, %v4283_v61 }
 0x386   : > { %v6632_v24 = vpop.eup %6631  ;;  %v4426_v25 = vadd.f32 %v9034_v32, %v4355_v20  ;;  %v4286_v7 = vmul.f32 %v6630_v31, %v9799_v56 }
 0x387   : > { %v4425_v51 = vadd.f32 %v9034_v32, %v4354_v21  ;;  %v4285_v53 = vmul.f32 %v6632_v24, %v9800_v40  ;;  %4500 = sbr.rel (!%p9801_p8) target bundleno = 938 (0x3aa), region = 52 }
 0x388   : > { %4490 = vst [vmem:[%s8828_s11 + $0x1e8] sm:$0xff] %v4426_v25  ;;  %v4357_v42 = vmul.f32 %v9026_v9, %v4286_v7 }
 0x389   : > { %4489 = vst [vmem:[%s8828_s11 + $0x1e0] sm:$0xff] %v4425_v51  ;;  %v4356_v10 = vmul.f32 %v9026_v9, %v4285_v53 }
 0x38a   : > { %v4428_v13 = vadd.f32 %v9034_v32, %v4357_v42 }
 0x38b   : > { %v4427_v6 = vadd.f32 %v9034_v32, %v4356_v10 }
 0x38c   : > { %4492 = vst [vmem:[%s8828_s11 + $0x1f8] sm:$0xff] %v4428_v13 }
 0x38d   : > { %4491 = vst [vmem:[%s8828_s11 + $0x1f0] sm:$0xff] %v4427_v6 }
 0x38e   : > { %s9810_s29 = smov (!%p4503_p9, %s4502_s29), 64 }
 0x38f   : > { %s9092_s17 = sshll.u32 %s9810_s29, 7 }
 0x390   : > { %s4507_s26 = ssub.s32 8192, %s9092_s17 }
 0x391   : > { %4508 = vsyncadd %s4494_s7, %s4507_s26  ;;  %p4617_p10 = scmp.ne.s32.totalorder %s9092_s17, 0  ;;  %s4624_s30 = sshll.u32 %s6860_s22, 13 }
 0x392   : > { %s9102_s28 = scalar_lea.hbm %s9155_s5, %s4624_s30  ;;  %s4513_s23 = sshll.u32 %s8828_s11, 4  ;;  %s9105_s23 = int_to_ptr.vmem [resolvable:$true] %s4513_s23 }
 0x393   : > { %s6728_s25 = scalar_lea.vmem %s9105_s23, %s9092_s17  ;;  %s6806_s12 = smov [#allocation7]  }
 0x394   : > { %p6729_p1 = scmp.ne.s32.totalorder %s9105_s23, %s6728_s25  ;;  %s6732_s14 = sshll.u32 %s6806_s12, 4  ;;  %s6733_s14 = int_to_ptr.vmem [resolvable:$false] %s6732_s14 }
 0x395   : > { %s6734_s22 = scalar_lea.vmem %s6733_s14, 16384  ;;  %p6735_p4 = scmp.lt.s32.totalorder %s9105_s23, %s6733_s14 }
 0x396   : > { %p6730_p0 = pnand %p6729_p1, %p4617_p10  ;;  %p6736_p6 = scmp.lt.s32.totalorder %s6734_s22, %s6728_s25 }
 0x398   : > { %p6731_p7 = pneg %p6730_p0  ;;  %p6737_p11 = por %p6736_p6, %p6735_p4 }
 0x39a   : > { %p6738_p13 = pnand %p6737_p11, %p6731_p7 }
 0x39c   : > { %6741 = shalt.err (!%p6738_p13)
}
 0x39d   : > { %s6742_s11 = scalar_lea.hbm %s9102_s28, %s9092_s17  ;;  %s6746_s16 = scalar_lea.hbm %s9155_s5, 32000 }
 0x39e   : > { %p6743_p12 = scmp.ne.s32.totalorder %s9102_s28, %s6742_s11  ;;  %p6747_p3 = scmp.lt.u32.totalorder %s9102_s28, %s9155_s5 }
 0x39f   : > { %p6748_p8 = scmp.lt.u32.totalorder %s6746_s16, %s6742_s11  ;;  %p6750_p1 = scmp.lt.u32.totalorder %s6742_s11, %s9102_s28 }
 0x3a0   : > { %p6744_p2 = pnand %p6743_p12, %p4617_p10 }
 0x3a1   : > { %p6749_p9 = por %p6748_p8, %p6747_p3 }
 0x3a2   : > { %p6745_p5 = pneg %p6744_p2 }
 0x3a3   : > { %p6751_p0 = por %p6750_p1, %p6749_p9 }
 0x3a5   : > { %p6752_p7 = pnand %p6751_p0, %p6745_p5 }
 0x3a7   : > { %6755 = shalt.err (!%p6752_p7)
}
 0x3a8   : > { %s6807_s30 = smov 128   ;;  %s6808_s8 = smov 8  }
 0x3a9   : > { %4519 = dma.vmem_to_hbm [thread:$0]  (%p4617_p10), %s9105_s23, %s9092_s17, %s9102_s28, %s4494_s7, %s6807_s30, %s6807_s30, %s6808_s8  }
 0x3aa PF: > { %p6465_p4 = scmp.ge.s32.totalorder %s6798_s21, 2  ;;  %s4528_s9 = sand.u32 1, %s6786_s18  }
 0x3ab   : > { %p9802_p6 = scmp.ne.s32.totalorder %s9402_s6, 0  ;;  %s4529_s25 = scalar_lea.sflag [#allocation4], %s4528_s9 }
 0x3ad   : > { %p6460_p11 = pnand %p6465_p4, %p9802_p6 }
 0x3af   : > { %6781 = dma.done.wait (!%p6460_p11), %s4529_s25, 8192  }
 0x3b0   : > { %6783 = vsyncadd (!%p6460_p11), %s4529_s25, 4294959104  ;;  %p19_p13 = scmp.ge.s32.totalorder %s6864_s24, 6   ;;  %s9803_s18 = smov %s6790_s19 }
 0x3b1   : > { %s9804_s19 = smov %s6794_s20  ;;  %s9805_s20 = smov %s6876_s27 }
 0x3b2   : > { %s9806_s21 = smov %s6864_s24  ;;  %21 = sbr.rel (!%p19_p13) target bundleno = 6 (0x6), region = 89 }
 0x3b9   :  { %4534 = vsyncpa [#allocation3], 1 }
 0x3ba   :  { %4536 = vsyncpa [#allocation3 + $0x1], 1 }
 0x3bb   :  { %4537 = vsyncpa [#allocation6], 1 }
 0x3bc   :  { %4538 = vsyncpa [#allocation4], 1 }
 0x3bd   :  { %4540 = vsyncpa [#allocation4 + $0x1], 1 }

</bundles_post_ra>
